<compile_context>
chip_gen: v6e
topology: v6e:2x2x1
jax: 0.10.0
libtpu: 0.0.40
codegen_flags: <defaults>
</compile_context>

<pallas_src>
import math

import jax
import jax.numpy as jnp
from jax.experimental import pallas as pl
from jax.experimental.pallas import tpu as pltpu

# --- sizes from the PyTorch module ------------------------------------------
HIDDEN = 100          # hidden_size
INPUT = 12            # len(features)
LAYERS = 3            # num_layers
OUT = 1               # output_size
BATCH = 2
SEQ = 8

# --- padded kernel sizes ------------------------------------------------------
HP = 128              # hidden padded to lane width
BP = 8                # batch padded to sublane width
GP = 3 * HP           # packed gate width (r | z | n)


# --- Pallas kernel ------------------------------------------------------------
def gru_fc_kernel(x_ref, w_ih_ref, w_hh_ref, b_i_ref, b_hn_ref,
                  fc_wt_ref, fc_b_ref, out_ref, seq_buf, gi_buf):
    """3-layer GRU stack + final Linear, fully unrolled (L*T = 24 steps)."""
    TB, Hp = x_ref.shape                 # (T*BP, HP)
    L = w_ih_ref.shape[0]
    T = TB // BP

    h = jnp.zeros((BP, Hp), jnp.float32)
    h_bf = h.astype(jnp.bfloat16)

    for l in range(L):                   # static unroll (L = 3)
        src = x_ref if l == 0 else seq_buf

        # Hoisted input-to-hidden gates for the whole sequence: one MXU matmul
        # per layer instead of 3*T tiny ones.  r/z biases are pre-folded
        # (b_ir+b_hr, b_iz+b_hz); n carries only b_in here.  Staged to VMEM so
        # the unrolled time loop only keeps one (BP, 3*HP) row block live.
        gi_buf[...] = (jnp.dot(src[...], w_ih_ref[l],
                               preferred_element_type=jnp.float32)
                       + b_i_ref[l])                          # (T*BP, 3*HP) f32

        # hoist the (1, HP) -> (BP, HP) broadcast out of the unrolled t-loop
        b_hn = jnp.broadcast_to(b_hn_ref[l], (BP, Hp))

        for t in range(T):               # static unroll (T = 8)
            gi_t = gi_buf[t * BP:(t + 1) * BP]                # sublane-aligned

            if t == 0:
                # h0 == 0  =>  gh == 0: skip the hidden-to-hidden matmul.
                rz = jax.nn.sigmoid(gi_t[:, :2 * Hp])         # fused r|z
                r = rz[:, :Hp]
                z = rz[:, Hp:]
                n = jnp.tanh(gi_t[:, 2 * Hp:] + r * b_hn)
                h = n - z * n                                  # (1 - z) * n
            else:
                # single fused hidden-to-hidden matmul per step (bf16 operands)
                gh = jnp.dot(h_bf, w_hh_ref[l],
                             preferred_element_type=jnp.float32)  # (BP, 3*HP)

                # PyTorch GRU cell (gate slices are lane-tile aligned: 0/128/256)
                rz = jax.nn.sigmoid(gi_t[:, :2 * Hp] + gh[:, :2 * Hp])
                r = rz[:, :Hp]
                z = rz[:, Hp:]
                n = jnp.tanh(gi_t[:, 2 * Hp:] + r * (gh[:, 2 * Hp:] + b_hn))
                h = n + z * (h - n)      # == (1 - z) * n + z * h

            # one cast: feeds next step's matmul and the next layer's sequence
            h_bf = h.astype(jnp.bfloat16)
            if l < L - 1:                # last layer's sequence is never re-read
                seq_buf[t * BP:(t + 1) * BP, :] = h_bf

    # fc(out[:, -1, :]) — h_bf is the last layer's hidden at the last timestep
    out_ref[...] = (jnp.dot(h_bf, fc_wt_ref[...],
                            preferred_element_type=jnp.float32)
                    + fc_b_ref[...]).astype(out_ref.dtype)


# --- wrapper ------------------------------------------------------------------
def gru_model_forward(x, params):
    """x: (B, T, INPUT) float32  ->  (B, 1) float32."""
    B, T, F = x.shape

    # time-major, batch padded to BP sublanes, features zero-padded to HP lanes
    x_tm = jnp.transpose(x, (1, 0, 2))                           # (T, B, F)
    x_pad = jnp.pad(x_tm, ((0, 0), (0, BP - B), (0, HP - F)))    # (T, BP, HP)
    x_flat = x_pad.reshape(T * BP, HP).astype(jnp.bfloat16)      # (T*BP, HP)

    vmem = pl.BlockSpec(memory_space=pltpu.MemorySpace.VMEM)
    out = pl.pallas_call(
        gru_fc_kernel,
        out_shape=jax.ShapeDtypeStruct((BP, HP), jnp.float32),
        in_specs=[vmem] * 7,
        out_specs=vmem,
        scratch_shapes=[pltpu.VMEM((T * BP, HP), jnp.bfloat16),   # seq_buf
                        pltpu.VMEM((T * BP, GP), jnp.float32)],   # gi_buf
    )(x_flat, params["w_ih"], params["w_hh"], params["b_i"], params["b_hn"],
      params["fc_wt"], params["fc_b"])
    return out[:B, :OUT]


# --- deterministic parameter init (PyTorch-style uniform) + kernel packing -----
def init_params(key):
    H, F, L = HIDDEN, INPUT, LAYERS
    k_gru = 1.0 / math.sqrt(H)
    k_fc = 1.0 / math.sqrt(H)
    keys = jax.random.split(key, 4 * L + 2)

    raw = []  # per-layer (W_ih (3H,in), W_hh (3H,H), b_ih (3H,), b_hh (3H,))
    for l in range(L):
        in_dim = F if l == 0 else H
        W_ih = jax.random.uniform(keys[4 * l + 0], (3 * H, in_dim),
                                  minval=-k_gru, maxval=k_gru, dtype=jnp.float32)
        W_hh = jax.random.uniform(keys[4 * l + 1], (3 * H, H),
                                  minval=-k_gru, maxval=k_gru, dtype=jnp.float32)
        b_i = jax.random.uniform(keys[4 * l + 2], (3 * H,),
                                 minval=-k_gru, maxval=k_gru, dtype=jnp.float32)
        b_h = jax.random.uniform(keys[4 * l + 3], (3 * H,),
                                 minval=-k_gru, maxval=k_gru, dtype=jnp.float32)
        raw.append((W_ih, W_hh, b_i, b_h))

    fc_w = jax.random.uniform(keys[-2], (OUT, H),
                              minval=-k_fc, maxval=k_fc, dtype=jnp.float32)
    fc_b = jax.random.uniform(keys[-1], (OUT,),
                              minval=-k_fc, maxval=k_fc, dtype=jnp.float32)

    def pack_w(W, in_dim):
        # (3H, in) -> (HP, 3*HP) bf16, zero-padded, gate column order [r|z|n]
        Wg = W.reshape(3, H, in_dim)                     # (3, H_out, in)
        Wg = jnp.transpose(Wg, (0, 2, 1))                # (3, in, H_out)
        Wg = jnp.pad(Wg, ((0, 0), (0, HP - in_dim), (0, HP - H)))
        Wp = jnp.transpose(Wg, (1, 0, 2)).reshape(HP, GP)
        return Wp.astype(jnp.bfloat16)

    w_ih_k, w_hh_k, b_i_k, b_hn_k = [], [], [], []
    for (W_ih, W_hh, b_i, b_h) in raw:
        in_dim = W_ih.shape[1]
        w_ih_k.append(pack_w(W_ih, in_dim))
        w_hh_k.append(pack_w(W_hh, H))
        bi = b_i.reshape(3, H)
        bh = b_h.reshape(3, H)
        # fold r/z biases; keep b_in here, b_hn separate (must stay inside r*())
        fold = jnp.stack([bi[0] + bh[0], bi[1] + bh[1], bi[2]])       # (3, H)
        fold = jnp.pad(fold, ((0, 0), (0, HP - H))).reshape(1, GP)
        b_i_k.append(fold)
        b_hn_k.append(jnp.pad(bh[2], (0, HP - H)).reshape(1, HP))

    fc_wt = jnp.zeros((HP, HP), jnp.float32).at[:H, :OUT].set(fc_w.T)
    fc_bp = jnp.zeros((1, HP), jnp.float32).at[0, :OUT].set(fc_b)

    params = {
        "w_ih": jnp.stack(w_ih_k),            # (L, HP, 3*HP) bf16
        "w_hh": jnp.stack(w_hh_k),            # (L, HP, 3*HP) bf16
        "b_i": jnp.stack(b_i_k),              # (L, 1, 3*HP) f32
        "b_hn": jnp.stack(b_hn_k),            # (L, 1, HP)   f32
        "fc_wt": fc_wt.astype(jnp.bfloat16),  # (HP, HP) bf16
        "fc_b": fc_bp,                        # (1, HP)  f32
    }
    return params, raw, fc_w, fc_b


# --- pure-JAX f32 reference (mirrors torch.nn.GRU semantics) -------------------
def ref_forward(x, raw, fc_w, fc_b):
    B, T, _ = x.shape
    inp = x
    for (W_ih, W_hh, b_i, b_h) in raw:
        h = jnp.zeros((B, HIDDEN), jnp.float32)
        outs = []
        for t in range(T):
            xt = inp[:, t, :]
            gi = xt @ W_ih.T + b_i
            gh = h @ W_hh.T + b_h
            i_r, i_z, i_n = jnp.split(gi, 3, axis=1)
            h_r, h_z, h_n = jnp.split(gh, 3, axis=1)
            r = jax.nn.sigmoid(i_r + h_r)
            z = jax.nn.sigmoid(i_z + h_z)
            n = jnp.tanh(i_n + r * h_n)
            h = (1.0 - z) * n + z * h
            outs.append(h)
        inp = jnp.stack(outs, axis=1)
    return inp[:, -1, :] @ fc_w.T + fc_b


if __name__ == "__main__":
    key = jax.random.PRNGKey(0)
    k_param, k_x = jax.random.split(key)

    params, raw, fc_w, fc_b = init_params(k_param)
    x = jax.random.normal(k_x, (BATCH, SEQ, INPUT), dtype=jnp.float32)

    out = gru_model_forward(x, params)
    out = jax.block_until_ready(out)

    ref = ref_forward(x, raw, fc_w, fc_b)
    assert out.shape == (BATCH, OUT), out.shape
    # bf16 MXU operands -> validate against the f32 reference at loose tolerance
    max_err = float(jnp.max(jnp.abs(out - ref)))
    assert max_err < 5e-2, (max_err, out, ref)

    print("KERNEL_OK")
</pallas_src>

<mosaic_0001>
module attributes {stable_mosaic.version = 11 : i64} {
  func.func @gru_fc_kernel(%arg0: memref<64x128xbf16, #tpu.memory_space<vmem>>, %arg1: memref<3x128x384xbf16, #tpu.memory_space<vmem>>, %arg2: memref<3x128x384xbf16, #tpu.memory_space<vmem>>, %arg3: memref<3x1x384xf32, #tpu.memory_space<vmem>>, %arg4: memref<3x1x128xf32, #tpu.memory_space<vmem>>, %arg5: memref<128x128xbf16, #tpu.memory_space<vmem>>, %arg6: memref<1x128xf32, #tpu.memory_space<vmem>>, %arg7: memref<8x128xf32, #tpu.memory_space<vmem>>, %arg8: memref<64x128xbf16, #tpu.memory_space<vmem>>, %arg9: memref<64x384xf32, #tpu.memory_space<vmem>>) attributes {dimension_semantics = [], scalar_prefetch = 0 : i64, scratch_operands = 2 : i64, tpu.core_type = #tpu.core_type<tc>} {
    %c0 = arith.constant 0 : index
    %c0_0 = arith.constant 0 : index
    %0 = vector.load %arg0[%c0, %c0_0] : memref<64x128xbf16, #tpu.memory_space<vmem>>, vector<64x128xbf16>
    %c0_1 = arith.constant 0 : index
    %c0_2 = arith.constant 0 : index
    %c0_3 = arith.constant 0 : index
    %1 = vector.load %arg1[%c0_1, %c0_2, %c0_3] : memref<3x128x384xbf16, #tpu.memory_space<vmem>>, vector<1x128x384xbf16>
    %2 = vector.shape_cast %1 : vector<1x128x384xbf16> to vector<128x384xbf16>
    %cst = arith.constant dense<0.000000e+00> : vector<64x384xf32>
    %3 = tpu.matmul %0, %2, %cst {dimension_numbers = #tpu.dot_dimension_numbers<[1], [0], [0], [1], [0, 0, 1, 1], [], []>} : vector<64x128xbf16>, vector<128x384xbf16>, vector<64x384xf32> -> vector<64x384xf32>
    %c0_4 = arith.constant 0 : index
    %c0_5 = arith.constant 0 : index
    %c0_6 = arith.constant 0 : index
    %4 = vector.load %arg3[%c0_4, %c0_5, %c0_6] : memref<3x1x384xf32, #tpu.memory_space<vmem>>, vector<1x1x384xf32>
    %5 = vector.shape_cast %4 : vector<1x1x384xf32> to vector<1x384xf32>
    %6 = vector.broadcast %5 : vector<1x384xf32> to vector<64x384xf32>
    %7 = arith.addf %3, %6 : vector<64x384xf32>
    %c0_7 = arith.constant 0 : index
    %c0_8 = arith.constant 0 : index
    %8 = vector.load %arg9[%c0_7, %c0_8] : memref<64x384xf32, #tpu.memory_space<vmem>>, vector<64x384xf32>
    tpu.vector_store %arg9[%c0_7, %c0_8], %7 {strides = array<i32>} : memref<64x384xf32, #tpu.memory_space<vmem>>, vector<64x384xf32>,
    %c0_9 = arith.constant 0 : index
    %c0_10 = arith.constant 0 : index
    %c0_11 = arith.constant 0 : index
    %9 = vector.load %arg4[%c0_9, %c0_10, %c0_11] : memref<3x1x128xf32, #tpu.memory_space<vmem>>, vector<1x1x128xf32>
    %10 = vector.shape_cast %9 : vector<1x1x128xf32> to vector<1x128xf32>
    %11 = vector.shape_cast %10 : vector<1x128xf32> to vector<1x128xf32>
    %12 = vector.broadcast %11 : vector<1x128xf32> to vector<8x128xf32>
    %c0_12 = arith.constant 0 : index
    %c0_13 = arith.constant 0 : index
    %13 = vector.load %arg9[%c0_12, %c0_13] : memref<64x384xf32, #tpu.memory_space<vmem>>, vector<8x384xf32>
    %14 = vector.extract_strided_slice %13 {offsets = [0, 0], sizes = [8, 256], strides = [1, 1]} : vector<8x384xf32> to vector<8x256xf32>
    %15 = arith.negf %14 : vector<8x256xf32>
    %16 = math.exp %15 : vector<8x256xf32>
    %cst_14 = arith.constant 1.000000e+00 : f32
    %17 = vector.broadcast %cst_14 : f32 to vector<8x256xf32>
    %18 = arith.addf %17, %16 : vector<8x256xf32>
    %19 = arith.divf %17, %18 : vector<8x256xf32>
    %20 = vector.extract_strided_slice %19 {offsets = [0, 0], sizes = [8, 128], strides = [1, 1]} : vector<8x256xf32> to vector<8x128xf32>
    %21 = vector.extract_strided_slice %19 {offsets = [0, 128], sizes = [8, 128], strides = [1, 1]} : vector<8x256xf32> to vector<8x128xf32>
    %22 = vector.extract_strided_slice %13 {offsets = [0, 256], sizes = [8, 128], strides = [1, 1]} : vector<8x384xf32> to vector<8x128xf32>
    %23 = arith.mulf %20, %12 : vector<8x128xf32>
    %24 = arith.addf %22, %23 : vector<8x128xf32>
    %25 = math.tanh %24 : vector<8x128xf32>
    %26 = arith.mulf %21, %25 : vector<8x128xf32>
    %27 = arith.subf %25, %26 : vector<8x128xf32>
    %28 = arith.truncf %27 : vector<8x128xf32> to vector<8x128xbf16>
    %c0_15 = arith.constant 0 : index
    %c0_16 = arith.constant 0 : index
    %29 = vector.load %arg8[%c0_15, %c0_16] : memref<64x128xbf16, #tpu.memory_space<vmem>>, vector<8x128xbf16>
    tpu.vector_store %arg8[%c0_15, %c0_16], %28 {strides = array<i32>} : memref<64x128xbf16, #tpu.memory_space<vmem>>, vector<8x128xbf16>,
    %c8 = arith.constant 8 : index
    %c0_17 = arith.constant 0 : index
    %30 = vector.load %arg9[%c8, %c0_17] : memref<64x384xf32, #tpu.memory_space<vmem>>, vector<8x384xf32>
    %c0_18 = arith.constant 0 : index
    %c0_19 = arith.constant 0 : index
    %c0_20 = arith.constant 0 : index
    %31 = vector.load %arg2[%c0_18, %c0_19, %c0_20] : memref<3x128x384xbf16, #tpu.memory_space<vmem>>, vector<1x128x384xbf16>
    %32 = vector.shape_cast %31 : vector<1x128x384xbf16> to vector<128x384xbf16>
    %cst_21 = arith.constant dense<0.000000e+00> : vector<8x384xf32>
    %33 = tpu.matmul %28, %32, %cst_21 {dimension_numbers = #tpu.dot_dimension_numbers<[1], [0], [0], [1], [0, 0, 1, 1], [], []>} : vector<8x128xbf16>, vector<128x384xbf16>, vector<8x384xf32> -> vector<8x384xf32>
    %34 = vector.extract_strided_slice %30 {offsets = [0, 0], sizes = [8, 256], strides = [1, 1]} : vector<8x384xf32> to vector<8x256xf32>
    %35 = vector.extract_strided_slice %33 {offsets = [0, 0], sizes = [8, 256], strides = [1, 1]} : vector<8x384xf32> to vector<8x256xf32>
    %36 = arith.addf %34, %35 : vector<8x256xf32>
    %37 = arith.negf %36 : vector<8x256xf32>
    %38 = math.exp %37 : vector<8x256xf32>
    %cst_22 = arith.constant 1.000000e+00 : f32
    %39 = vector.broadcast %cst_22 : f32 to vector<8x256xf32>
    %40 = arith.addf %39, %38 : vector<8x256xf32>
    %41 = arith.divf %39, %40 : vector<8x256xf32>
    %42 = vector.extract_strided_slice %41 {offsets = [0, 0], sizes = [8, 128], strides = [1, 1]} : vector<8x256xf32> to vector<8x128xf32>
    %43 = vector.extract_strided_slice %41 {offsets = [0, 128], sizes = [8, 128], strides = [1, 1]} : vector<8x256xf32> to vector<8x128xf32>
    %44 = vector.extract_strided_slice %30 {offsets = [0, 256], sizes = [8, 128], strides = [1, 1]} : vector<8x384xf32> to vector<8x128xf32>
    %45 = vector.extract_strided_slice %33 {offsets = [0, 256], sizes = [8, 128], strides = [1, 1]} : vector<8x384xf32> to vector<8x128xf32>
    %46 = arith.addf %45, %12 : vector<8x128xf32>
    %47 = arith.mulf %42, %46 : vector<8x128xf32>
    %48 = arith.addf %44, %47 : vector<8x128xf32>
    %49 = math.tanh %48 : vector<8x128xf32>
    %50 = arith.subf %27, %49 : vector<8x128xf32>
    %51 = arith.mulf %43, %50 : vector<8x128xf32>
    %52 = arith.addf %49, %51 : vector<8x128xf32>
    %53 = arith.truncf %52 : vector<8x128xf32> to vector<8x128xbf16>
    %c8_23 = arith.constant 8 : index
    %c0_24 = arith.constant 0 : index
    %54 = vector.load %arg8[%c8_23, %c0_24] : memref<64x128xbf16, #tpu.memory_space<vmem>>, vector<8x128xbf16>
    tpu.vector_store %arg8[%c8_23, %c0_24], %53 {strides = array<i32>} : memref<64x128xbf16, #tpu.memory_space<vmem>>, vector<8x128xbf16>,
    %c16 = arith.constant 16 : index
    %c0_25 = arith.constant 0 : index
    %55 = vector.load %arg9[%c16, %c0_25] : memref<64x384xf32, #tpu.memory_space<vmem>>, vector<8x384xf32>
    %c0_26 = arith.constant 0 : index
    %c0_27 = arith.constant 0 : index
    %c0_28 = arith.constant 0 : index
    %56 = vector.load %arg2[%c0_26, %c0_27, %c0_28] : memref<3x128x384xbf16, #tpu.memory_space<vmem>>, vector<1x128x384xbf16>
    %57 = vector.shape_cast %56 : vector<1x128x384xbf16> to vector<128x384xbf16>
    %cst_29 = arith.constant dense<0.000000e+00> : vector<8x384xf32>
    %58 = tpu.matmul %53, %57, %cst_29 {dimension_numbers = #tpu.dot_dimension_numbers<[1], [0], [0], [1], [0, 0, 1, 1], [], []>} : vector<8x128xbf16>, vector<128x384xbf16>, vector<8x384xf32> -> vector<8x384xf32>
    %59 = vector.extract_strided_slice %55 {offsets = [0, 0], sizes = [8, 256], strides = [1, 1]} : vector<8x384xf32> to vector<8x256xf32>
    %60 = vector.extract_strided_slice %58 {offsets = [0, 0], sizes = [8, 256], strides = [1, 1]} : vector<8x384xf32> to vector<8x256xf32>
    %61 = arith.addf %59, %60 : vector<8x256xf32>
    %62 = arith.negf %61 : vector<8x256xf32>
    %63 = math.exp %62 : vector<8x256xf32>
    %cst_30 = arith.constant 1.000000e+00 : f32
    %64 = vector.broadcast %cst_30 : f32 to vector<8x256xf32>
    %65 = arith.addf %64, %63 : vector<8x256xf32>
    %66 = arith.divf %64, %65 : vector<8x256xf32>
    %67 = vector.extract_strided_slice %66 {offsets = [0, 0], sizes = [8, 128], strides = [1, 1]} : vector<8x256xf32> to vector<8x128xf32>
    %68 = vector.extract_strided_slice %66 {offsets = [0, 128], sizes = [8, 128], strides = [1, 1]} : vector<8x256xf32> to vector<8x128xf32>
    %69 = vector.extract_strided_slice %55 {offsets = [0, 256], sizes = [8, 128], strides = [1, 1]} : vector<8x384xf32> to vector<8x128xf32>
    %70 = vector.extract_strided_slice %58 {offsets = [0, 256], sizes = [8, 128], strides = [1, 1]} : vector<8x384xf32> to vector<8x128xf32>
    %71 = arith.addf %70, %12 : vector<8x128xf32>
    %72 = arith.mulf %67, %71 : vector<8x128xf32>
    %73 = arith.addf %69, %72 : vector<8x128xf32>
    %74 = math.tanh %73 : vector<8x128xf32>
    %75 = arith.subf %52, %74 : vector<8x128xf32>
    %76 = arith.mulf %68, %75 : vector<8x128xf32>
    %77 = arith.addf %74, %76 : vector<8x128xf32>
    %78 = arith.truncf %77 : vector<8x128xf32> to vector<8x128xbf16>
    %c16_31 = arith.constant 16 : index
    %c0_32 = arith.constant 0 : index
    %79 = vector.load %arg8[%c16_31, %c0_32] : memref<64x128xbf16, #tpu.memory_space<vmem>>, vector<8x128xbf16>
    tpu.vector_store %arg8[%c16_31, %c0_32], %78 {strides = array<i32>} : memref<64x128xbf16, #tpu.memory_space<vmem>>, vector<8x128xbf16>,
    %c24 = arith.constant 24 : index
    %c0_33 = arith.constant 0 : index
    %80 = vector.load %arg9[%c24, %c0_33] : memref<64x384xf32, #tpu.memory_space<vmem>>, vector<8x384xf32>
    %c0_34 = arith.constant 0 : index
    %c0_35 = arith.constant 0 : index
    %c0_36 = arith.constant 0 : index
    %81 = vector.load %arg2[%c0_34, %c0_35, %c0_36] : memref<3x128x384xbf16, #tpu.memory_space<vmem>>, vector<1x128x384xbf16>
    %82 = vector.shape_cast %81 : vector<1x128x384xbf16> to vector<128x384xbf16>
    %cst_37 = arith.constant dense<0.000000e+00> : vector<8x384xf32>
    %83 = tpu.matmul %78, %82, %cst_37 {dimension_numbers = #tpu.dot_dimension_numbers<[1], [0], [0], [1], [0, 0, 1, 1], [], []>} : vector<8x128xbf16>, vector<128x384xbf16>, vector<8x384xf32> -> vector<8x384xf32>
    %84 = vector.extract_strided_slice %80 {offsets = [0, 0], sizes = [8, 256], strides = [1, 1]} : vector<8x384xf32> to vector<8x256xf32>
    %85 = vector.extract_strided_slice %83 {offsets = [0, 0], sizes = [8, 256], strides = [1, 1]} : vector<8x384xf32> to vector<8x256xf32>
    %86 = arith.addf %84, %85 : vector<8x256xf32>
    %87 = arith.negf %86 : vector<8x256xf32>
    %88 = math.exp %87 : vector<8x256xf32>
    %cst_38 = arith.constant 1.000000e+00 : f32
    %89 = vector.broadcast %cst_38 : f32 to vector<8x256xf32>
    %90 = arith.addf %89, %88 : vector<8x256xf32>
    %91 = arith.divf %89, %90 : vector<8x256xf32>
    %92 = vector.extract_strided_slice %91 {offsets = [0, 0], sizes = [8, 128], strides = [1, 1]} : vector<8x256xf32> to vector<8x128xf32>
    %93 = vector.extract_strided_slice %91 {offsets = [0, 128], sizes = [8, 128], strides = [1, 1]} : vector<8x256xf32> to vector<8x128xf32>
    %94 = vector.extract_strided_slice %80 {offsets = [0, 256], sizes = [8, 128], strides = [1, 1]} : vector<8x384xf32> to vector<8x128xf32>
    %95 = vector.extract_strided_slice %83 {offsets = [0, 256], sizes = [8, 128], strides = [1, 1]} : vector<8x384xf32> to vector<8x128xf32>
    %96 = arith.addf %95, %12 : vector<8x128xf32>
    %97 = arith.mulf %92, %96 : vector<8x128xf32>
    %98 = arith.addf %94, %97 : vector<8x128xf32>
    %99 = math.tanh %98 : vector<8x128xf32>
    %100 = arith.subf %77, %99 : vector<8x128xf32>
    %101 = arith.mulf %93, %100 : vector<8x128xf32>
    %102 = arith.addf %99, %101 : vector<8x128xf32>
    %103 = arith.truncf %102 : vector<8x128xf32> to vector<8x128xbf16>
    %c24_39 = arith.constant 24 : index
    %c0_40 = arith.constant 0 : index
    %104 = vector.load %arg8[%c24_39, %c0_40] : memref<64x128xbf16, #tpu.memory_space<vmem>>, vector<8x128xbf16>
    tpu.vector_store %arg8[%c24_39, %c0_40], %103 {strides = array<i32>} : memref<64x128xbf16, #tpu.memory_space<vmem>>, vector<8x128xbf16>,
    %c32 = arith.constant 32 : index
    %c0_41 = arith.constant 0 : index
    %105 = vector.load %arg9[%c32, %c0_41] : memref<64x384xf32, #tpu.memory_space<vmem>>, vector<8x384xf32>
    %c0_42 = arith.constant 0 : index
    %c0_43 = arith.constant 0 : index
    %c0_44 = arith.constant 0 : index
    %106 = vector.load %arg2[%c0_42, %c0_43, %c0_44] : memref<3x128x384xbf16, #tpu.memory_space<vmem>>, vector<1x128x384xbf16>
    %107 = vector.shape_cast %106 : vector<1x128x384xbf16> to vector<128x384xbf16>
    %cst_45 = arith.constant dense<0.000000e+00> : vector<8x384xf32>
    %108 = tpu.matmul %103, %107, %cst_45 {dimension_numbers = #tpu.dot_dimension_numbers<[1], [0], [0], [1], [0, 0, 1, 1], [], []>} : vector<8x128xbf16>, vector<128x384xbf16>, vector<8x384xf32> -> vector<8x384xf32>
    %109 = vector.extract_strided_slice %105 {offsets = [0, 0], sizes = [8, 256], strides = [1, 1]} : vector<8x384xf32> to vector<8x256xf32>
    %110 = vector.extract_strided_slice %108 {offsets = [0, 0], sizes = [8, 256], strides = [1, 1]} : vector<8x384xf32> to vector<8x256xf32>
    %111 = arith.addf %109, %110 : vector<8x256xf32>
    %112 = arith.negf %111 : vector<8x256xf32>
    %113 = math.exp %112 : vector<8x256xf32>
    %cst_46 = arith.constant 1.000000e+00 : f32
    %114 = vector.broadcast %cst_46 : f32 to vector<8x256xf32>
    %115 = arith.addf %114, %113 : vector<8x256xf32>
    %116 = arith.divf %114, %115 : vector<8x256xf32>
    %117 = vector.extract_strided_slice %116 {offsets = [0, 0], sizes = [8, 128], strides = [1, 1]} : vector<8x256xf32> to vector<8x128xf32>
    %118 = vector.extract_strided_slice %116 {offsets = [0, 128], sizes = [8, 128], strides = [1, 1]} : vector<8x256xf32> to vector<8x128xf32>
    %119 = vector.extract_strided_slice %105 {offsets = [0, 256], sizes = [8, 128], strides = [1, 1]} : vector<8x384xf32> to vector<8x128xf32>
    %120 = vector.extract_strided_slice %108 {offsets = [0, 256], sizes = [8, 128], strides = [1, 1]} : vector<8x384xf32> to vector<8x128xf32>
    %121 = arith.addf %120, %12 : vector<8x128xf32>
    %122 = arith.mulf %117, %121 : vector<8x128xf32>
    %123 = arith.addf %119, %122 : vector<8x128xf32>
    %124 = math.tanh %123 : vector<8x128xf32>
    %125 = arith.subf %102, %124 : vector<8x128xf32>
    %126 = arith.mulf %118, %125 : vector<8x128xf32>
    %127 = arith.addf %124, %126 : vector<8x128xf32>
    %128 = arith.truncf %127 : vector<8x128xf32> to vector<8x128xbf16>
    %c32_47 = arith.constant 32 : index
    %c0_48 = arith.constant 0 : index
    %129 = vector.load %arg8[%c32_47, %c0_48] : memref<64x128xbf16, #tpu.memory_space<vmem>>, vector<8x128xbf16>
    tpu.vector_store %arg8[%c32_47, %c0_48], %128 {strides = array<i32>} : memref<64x128xbf16, #tpu.memory_space<vmem>>, vector<8x128xbf16>,
    %c40 = arith.constant 40 : index
    %c0_49 = arith.constant 0 : index
    %130 = vector.load %arg9[%c40, %c0_49] : memref<64x384xf32, #tpu.memory_space<vmem>>, vector<8x384xf32>
    %c0_50 = arith.constant 0 : index
    %c0_51 = arith.constant 0 : index
    %c0_52 = arith.constant 0 : index
    %131 = vector.load %arg2[%c0_50, %c0_51, %c0_52] : memref<3x128x384xbf16, #tpu.memory_space<vmem>>, vector<1x128x384xbf16>
    %132 = vector.shape_cast %131 : vector<1x128x384xbf16> to vector<128x384xbf16>
    %cst_53 = arith.constant dense<0.000000e+00> : vector<8x384xf32>
    %133 = tpu.matmul %128, %132, %cst_53 {dimension_numbers = #tpu.dot_dimension_numbers<[1], [0], [0], [1], [0, 0, 1, 1], [], []>} : vector<8x128xbf16>, vector<128x384xbf16>, vector<8x384xf32> -> vector<8x384xf32>
    %134 = vector.extract_strided_slice %130 {offsets = [0, 0], sizes = [8, 256], strides = [1, 1]} : vector<8x384xf32> to vector<8x256xf32>
    %135 = vector.extract_strided_slice %133 {offsets = [0, 0], sizes = [8, 256], strides = [1, 1]} : vector<8x384xf32> to vector<8x256xf32>
    %136 = arith.addf %134, %135 : vector<8x256xf32>
    %137 = arith.negf %136 : vector<8x256xf32>
    %138 = math.exp %137 : vector<8x256xf32>
    %cst_54 = arith.constant 1.000000e+00 : f32
    %139 = vector.broadcast %cst_54 : f32 to vector<8x256xf32>
    %140 = arith.addf %139, %138 : vector<8x256xf32>
    %141 = arith.divf %139, %140 : vector<8x256xf32>
    %142 = vector.extract_strided_slice %141 {offsets = [0, 0], sizes = [8, 128], strides = [1, 1]} : vector<8x256xf32> to vector<8x128xf32>
    %143 = vector.extract_strided_slice %141 {offsets = [0, 128], sizes = [8, 128], strides = [1, 1]} : vector<8x256xf32> to vector<8x128xf32>
    %144 = vector.extract_strided_slice %130 {offsets = [0, 256], sizes = [8, 128], strides = [1, 1]} : vector<8x384xf32> to vector<8x128xf32>
    %145 = vector.extract_strided_slice %133 {offsets = [0, 256], sizes = [8, 128], strides = [1, 1]} : vector<8x384xf32> to vector<8x128xf32>
    %146 = arith.addf %145, %12 : vector<8x128xf32>
    %147 = arith.mulf %142, %146 : vector<8x128xf32>
    %148 = arith.addf %144, %147 : vector<8x128xf32>
    %149 = math.tanh %148 : vector<8x128xf32>
    %150 = arith.subf %127, %149 : vector<8x128xf32>
    %151 = arith.mulf %143, %150 : vector<8x128xf32>
    %152 = arith.addf %149, %151 : vector<8x128xf32>
    %153 = arith.truncf %152 : vector<8x128xf32> to vector<8x128xbf16>
    %c40_55 = arith.constant 40 : index
    %c0_56 = arith.constant 0 : index
    %154 = vector.load %arg8[%c40_55, %c0_56] : memref<64x128xbf16, #tpu.memory_space<vmem>>, vector<8x128xbf16>
    tpu.vector_store %arg8[%c40_55, %c0_56], %153 {strides = array<i32>} : memref<64x128xbf16, #tpu.memory_space<vmem>>, vector<8x128xbf16>,
    %c48 = arith.constant 48 : index
    %c0_57 = arith.constant 0 : index
    %155 = vector.load %arg9[%c48, %c0_57] : memref<64x384xf32, #tpu.memory_space<vmem>>, vector<8x384xf32>
    %c0_58 = arith.constant 0 : index
    %c0_59 = arith.constant 0 : index
    %c0_60 = arith.constant 0 : index
    %156 = vector.load %arg2[%c0_58, %c0_59, %c0_60] : memref<3x128x384xbf16, #tpu.memory_space<vmem>>, vector<1x128x384xbf16>
    %157 = vector.shape_cast %156 : vector<1x128x384xbf16> to vector<128x384xbf16>
    %cst_61 = arith.constant dense<0.000000e+00> : vector<8x384xf32>
    %158 = tpu.matmul %153, %157, %cst_61 {dimension_numbers = #tpu.dot_dimension_numbers<[1], [0], [0], [1], [0, 0, 1, 1], [], []>} : vector<8x128xbf16>, vector<128x384xbf16>, vector<8x384xf32> -> vector<8x384xf32>
    %159 = vector.extract_strided_slice %155 {offsets = [0, 0], sizes = [8, 256], strides = [1, 1]} : vector<8x384xf32> to vector<8x256xf32>
    %160 = vector.extract_strided_slice %158 {offsets = [0, 0], sizes = [8, 256], strides = [1, 1]} : vector<8x384xf32> to vector<8x256xf32>
    %161 = arith.addf %159, %160 : vector<8x256xf32>
    %162 = arith.negf %161 : vector<8x256xf32>
    %163 = math.exp %162 : vector<8x256xf32>
    %cst_62 = arith.constant 1.000000e+00 : f32
    %164 = vector.broadcast %cst_62 : f32 to vector<8x256xf32>
    %165 = arith.addf %164, %163 : vector<8x256xf32>
    %166 = arith.divf %164, %165 : vector<8x256xf32>
    %167 = vector.extract_strided_slice %166 {offsets = [0, 0], sizes = [8, 128], strides = [1, 1]} : vector<8x256xf32> to vector<8x128xf32>
    %168 = vector.extract_strided_slice %166 {offsets = [0, 128], sizes = [8, 128], strides = [1, 1]} : vector<8x256xf32> to vector<8x128xf32>
    %169 = vector.extract_strided_slice %155 {offsets = [0, 256], sizes = [8, 128], strides = [1, 1]} : vector<8x384xf32> to vector<8x128xf32>
    %170 = vector.extract_strided_slice %158 {offsets = [0, 256], sizes = [8, 128], strides = [1, 1]} : vector<8x384xf32> to vector<8x128xf32>
    %171 = arith.addf %170, %12 : vector<8x128xf32>
    %172 = arith.mulf %167, %171 : vector<8x128xf32>
    %173 = arith.addf %169, %172 : vector<8x128xf32>
    %174 = math.tanh %173 : vector<8x128xf32>
    %175 = arith.subf %152, %174 : vector<8x128xf32>
    %176 = arith.mulf %168, %175 : vector<8x128xf32>
    %177 = arith.addf %174, %176 : vector<8x128xf32>
    %178 = arith.truncf %177 : vector<8x128xf32> to vector<8x128xbf16>
    %c48_63 = arith.constant 48 : index
    %c0_64 = arith.constant 0 : index
    %179 = vector.load %arg8[%c48_63, %c0_64] : memref<64x128xbf16, #tpu.memory_space<vmem>>, vector<8x128xbf16>
    tpu.vector_store %arg8[%c48_63, %c0_64], %178 {strides = array<i32>} : memref<64x128xbf16, #tpu.memory_space<vmem>>, vector<8x128xbf16>,
    %c56 = arith.constant 56 : index
    %c0_65 = arith.constant 0 : index
    %180 = vector.load %arg9[%c56, %c0_65] : memref<64x384xf32, #tpu.memory_space<vmem>>, vector<8x384xf32>
    %c0_66 = arith.constant 0 : index
    %c0_67 = arith.constant 0 : index
    %c0_68 = arith.constant 0 : index
    %181 = vector.load %arg2[%c0_66, %c0_67, %c0_68] : memref<3x128x384xbf16, #tpu.memory_space<vmem>>, vector<1x128x384xbf16>
    %182 = vector.shape_cast %181 : vector<1x128x384xbf16> to vector<128x384xbf16>
    %cst_69 = arith.constant dense<0.000000e+00> : vector<8x384xf32>
    %183 = tpu.matmul %178, %182, %cst_69 {dimension_numbers = #tpu.dot_dimension_numbers<[1], [0], [0], [1], [0, 0, 1, 1], [], []>} : vector<8x128xbf16>, vector<128x384xbf16>, vector<8x384xf32> -> vector<8x384xf32>
    %184 = vector.extract_strided_slice %180 {offsets = [0, 0], sizes = [8, 256], strides = [1, 1]} : vector<8x384xf32> to vector<8x256xf32>
    %185 = vector.extract_strided_slice %183 {offsets = [0, 0], sizes = [8, 256], strides = [1, 1]} : vector<8x384xf32> to vector<8x256xf32>
    %186 = arith.addf %184, %185 : vector<8x256xf32>
    %187 = arith.negf %186 : vector<8x256xf32>
    %188 = math.exp %187 : vector<8x256xf32>
    %cst_70 = arith.constant 1.000000e+00 : f32
    %189 = vector.broadcast %cst_70 : f32 to vector<8x256xf32>
    %190 = arith.addf %189, %188 : vector<8x256xf32>
    %191 = arith.divf %189, %190 : vector<8x256xf32>
    %192 = vector.extract_strided_slice %191 {offsets = [0, 0], sizes = [8, 128], strides = [1, 1]} : vector<8x256xf32> to vector<8x128xf32>
    %193 = vector.extract_strided_slice %191 {offsets = [0, 128], sizes = [8, 128], strides = [1, 1]} : vector<8x256xf32> to vector<8x128xf32>
    %194 = vector.extract_strided_slice %180 {offsets = [0, 256], sizes = [8, 128], strides = [1, 1]} : vector<8x384xf32> to vector<8x128xf32>
    %195 = vector.extract_strided_slice %183 {offsets = [0, 256], sizes = [8, 128], strides = [1, 1]} : vector<8x384xf32> to vector<8x128xf32>
    %196 = arith.addf %195, %12 : vector<8x128xf32>
    %197 = arith.mulf %192, %196 : vector<8x128xf32>
    %198 = arith.addf %194, %197 : vector<8x128xf32>
    %199 = math.tanh %198 : vector<8x128xf32>
    %200 = arith.subf %177, %199 : vector<8x128xf32>
    %201 = arith.mulf %193, %200 : vector<8x128xf32>
    %202 = arith.addf %199, %201 : vector<8x128xf32>
    %203 = arith.truncf %202 : vector<8x128xf32> to vector<8x128xbf16>
    %c56_71 = arith.constant 56 : index
    %c0_72 = arith.constant 0 : index
    %204 = vector.load %arg8[%c56_71, %c0_72] : memref<64x128xbf16, #tpu.memory_space<vmem>>, vector<8x128xbf16>
    tpu.vector_store %arg8[%c56_71, %c0_72], %203 {strides = array<i32>} : memref<64x128xbf16, #tpu.memory_space<vmem>>, vector<8x128xbf16>,
    %c0_73 = arith.constant 0 : index
    %c0_74 = arith.constant 0 : index
    %205 = vector.load %arg8[%c0_73, %c0_74] : memref<64x128xbf16, #tpu.memory_space<vmem>>, vector<64x128xbf16>
    %c1 = arith.constant 1 : index
    %c0_75 = arith.constant 0 : index
    %c0_76 = arith.constant 0 : index
    %206 = vector.load %arg1[%c1, %c0_75, %c0_76] : memref<3x128x384xbf16, #tpu.memory_space<vmem>>, vector<1x128x384xbf16>
    %207 = vector.shape_cast %206 : vector<1x128x384xbf16> to vector<128x384xbf16>
    %cst_77 = arith.constant dense<0.000000e+00> : vector<64x384xf32>
    %208 = tpu.matmul %205, %207, %cst_77 {dimension_numbers = #tpu.dot_dimension_numbers<[1], [0], [0], [1], [0, 0, 1, 1], [], []>} : vector<64x128xbf16>, vector<128x384xbf16>, vector<64x384xf32> -> vector<64x384xf32>
    %c1_78 = arith.constant 1 : index
    %c0_79 = arith.constant 0 : index
    %c0_80 = arith.constant 0 : index
    %209 = vector.load %arg3[%c1_78, %c0_79, %c0_80] : memref<3x1x384xf32, #tpu.memory_space<vmem>>, vector<1x1x384xf32>
    %210 = vector.shape_cast %209 : vector<1x1x384xf32> to vector<1x384xf32>
    %211 = vector.broadcast %210 : vector<1x384xf32> to vector<64x384xf32>
    %212 = arith.addf %208, %211 : vector<64x384xf32>
    %c0_81 = arith.constant 0 : index
    %c0_82 = arith.constant 0 : index
    %213 = vector.load %arg9[%c0_81, %c0_82] : memref<64x384xf32, #tpu.memory_space<vmem>>, vector<64x384xf32>
    tpu.vector_store %arg9[%c0_81, %c0_82], %212 {strides = array<i32>} : memref<64x384xf32, #tpu.memory_space<vmem>>, vector<64x384xf32>,
    %c1_83 = arith.constant 1 : index
    %c0_84 = arith.constant 0 : index
    %c0_85 = arith.constant 0 : index
    %214 = vector.load %arg4[%c1_83, %c0_84, %c0_85] : memref<3x1x128xf32, #tpu.memory_space<vmem>>, vector<1x1x128xf32>
    %215 = vector.shape_cast %214 : vector<1x1x128xf32> to vector<1x128xf32>
    %216 = vector.shape_cast %215 : vector<1x128xf32> to vector<1x128xf32>
    %217 = vector.broadcast %216 : vector<1x128xf32> to vector<8x128xf32>
    %c0_86 = arith.constant 0 : index
    %c0_87 = arith.constant 0 : index
    %218 = vector.load %arg9[%c0_86, %c0_87] : memref<64x384xf32, #tpu.memory_space<vmem>>, vector<8x384xf32>
    %219 = vector.extract_strided_slice %218 {offsets = [0, 0], sizes = [8, 256], strides = [1, 1]} : vector<8x384xf32> to vector<8x256xf32>
    %220 = arith.negf %219 : vector<8x256xf32>
    %221 = math.exp %220 : vector<8x256xf32>
    %cst_88 = arith.constant 1.000000e+00 : f32
    %222 = vector.broadcast %cst_88 : f32 to vector<8x256xf32>
    %223 = arith.addf %222, %221 : vector<8x256xf32>
    %224 = arith.divf %222, %223 : vector<8x256xf32>
    %225 = vector.extract_strided_slice %224 {offsets = [0, 0], sizes = [8, 128], strides = [1, 1]} : vector<8x256xf32> to vector<8x128xf32>
    %226 = vector.extract_strided_slice %224 {offsets = [0, 128], sizes = [8, 128], strides = [1, 1]} : vector<8x256xf32> to vector<8x128xf32>
    %227 = vector.extract_strided_slice %218 {offsets = [0, 256], sizes = [8, 128], strides = [1, 1]} : vector<8x384xf32> to vector<8x128xf32>
    %228 = arith.mulf %225, %217 : vector<8x128xf32>
    %229 = arith.addf %227, %228 : vector<8x128xf32>
    %230 = math.tanh %229 : vector<8x128xf32>
    %231 = arith.mulf %226, %230 : vector<8x128xf32>
    %232 = arith.subf %230, %231 : vector<8x128xf32>
    %233 = arith.truncf %232 : vector<8x128xf32> to vector<8x128xbf16>
    %c0_89 = arith.constant 0 : index
    %c0_90 = arith.constant 0 : index
    %234 = vector.load %arg8[%c0_89, %c0_90] : memref<64x128xbf16, #tpu.memory_space<vmem>>, vector<8x128xbf16>
    tpu.vector_store %arg8[%c0_89, %c0_90], %233 {strides = array<i32>} : memref<64x128xbf16, #tpu.memory_space<vmem>>, vector<8x128xbf16>,
    %c8_91 = arith.constant 8 : index
    %c0_92 = arith.constant 0 : index
    %235 = vector.load %arg9[%c8_91, %c0_92] : memref<64x384xf32, #tpu.memory_space<vmem>>, vector<8x384xf32>
    %c1_93 = arith.constant 1 : index
    %c0_94 = arith.constant 0 : index
    %c0_95 = arith.constant 0 : index
    %236 = vector.load %arg2[%c1_93, %c0_94, %c0_95] : memref<3x128x384xbf16, #tpu.memory_space<vmem>>, vector<1x128x384xbf16>
    %237 = vector.shape_cast %236 : vector<1x128x384xbf16> to vector<128x384xbf16>
    %cst_96 = arith.constant dense<0.000000e+00> : vector<8x384xf32>
    %238 = tpu.matmul %233, %237, %cst_96 {dimension_numbers = #tpu.dot_dimension_numbers<[1], [0], [0], [1], [0, 0, 1, 1], [], []>} : vector<8x128xbf16>, vector<128x384xbf16>, vector<8x384xf32> -> vector<8x384xf32>
    %239 = vector.extract_strided_slice %235 {offsets = [0, 0], sizes = [8, 256], strides = [1, 1]} : vector<8x384xf32> to vector<8x256xf32>
    %240 = vector.extract_strided_slice %238 {offsets = [0, 0], sizes = [8, 256], strides = [1, 1]} : vector<8x384xf32> to vector<8x256xf32>
    %241 = arith.addf %239, %240 : vector<8x256xf32>
    %242 = arith.negf %241 : vector<8x256xf32>
    %243 = math.exp %242 : vector<8x256xf32>
    %cst_97 = arith.constant 1.000000e+00 : f32
    %244 = vector.broadcast %cst_97 : f32 to vector<8x256xf32>
    %245 = arith.addf %244, %243 : vector<8x256xf32>
    %246 = arith.divf %244, %245 : vector<8x256xf32>
    %247 = vector.extract_strided_slice %246 {offsets = [0, 0], sizes = [8, 128], strides = [1, 1]} : vector<8x256xf32> to vector<8x128xf32>
    %248 = vector.extract_strided_slice %246 {offsets = [0, 128], sizes = [8, 128], strides = [1, 1]} : vector<8x256xf32> to vector<8x128xf32>
    %249 = vector.extract_strided_slice %235 {offsets = [0, 256], sizes = [8, 128], strides = [1, 1]} : vector<8x384xf32> to vector<8x128xf32>
    %250 = vector.extract_strided_slice %238 {offsets = [0, 256], sizes = [8, 128], strides = [1, 1]} : vector<8x384xf32> to vector<8x128xf32>
    %251 = arith.addf %250, %217 : vector<8x128xf32>
    %252 = arith.mulf %247, %251 : vector<8x128xf32>
    %253 = arith.addf %249, %252 : vector<8x128xf32>
    %254 = math.tanh %253 : vector<8x128xf32>
    %255 = arith.subf %232, %254 : vector<8x128xf32>
    %256 = arith.mulf %248, %255 : vector<8x128xf32>
    %257 = arith.addf %254, %256 : vector<8x128xf32>
    %258 = arith.truncf %257 : vector<8x128xf32> to vector<8x128xbf16>
    %c8_98 = arith.constant 8 : index
    %c0_99 = arith.constant 0 : index
    %259 = vector.load %arg8[%c8_98, %c0_99] : memref<64x128xbf16, #tpu.memory_space<vmem>>, vector<8x128xbf16>
    tpu.vector_store %arg8[%c8_98, %c0_99], %258 {strides = array<i32>} : memref<64x128xbf16, #tpu.memory_space<vmem>>, vector<8x128xbf16>,
    %c16_100 = arith.constant 16 : index
    %c0_101 = arith.constant 0 : index
    %260 = vector.load %arg9[%c16_100, %c0_101] : memref<64x384xf32, #tpu.memory_space<vmem>>, vector<8x384xf32>
    %c1_102 = arith.constant 1 : index
    %c0_103 = arith.constant 0 : index
    %c0_104 = arith.constant 0 : index
    %261 = vector.load %arg2[%c1_102, %c0_103, %c0_104] : memref<3x128x384xbf16, #tpu.memory_space<vmem>>, vector<1x128x384xbf16>
    %262 = vector.shape_cast %261 : vector<1x128x384xbf16> to vector<128x384xbf16>
    %cst_105 = arith.constant dense<0.000000e+00> : vector<8x384xf32>
    %263 = tpu.matmul %258, %262, %cst_105 {dimension_numbers = #tpu.dot_dimension_numbers<[1], [0], [0], [1], [0, 0, 1, 1], [], []>} : vector<8x128xbf16>, vector<128x384xbf16>, vector<8x384xf32> -> vector<8x384xf32>
    %264 = vector.extract_strided_slice %260 {offsets = [0, 0], sizes = [8, 256], strides = [1, 1]} : vector<8x384xf32> to vector<8x256xf32>
    %265 = vector.extract_strided_slice %263 {offsets = [0, 0], sizes = [8, 256], strides = [1, 1]} : vector<8x384xf32> to vector<8x256xf32>
    %266 = arith.addf %264, %265 : vector<8x256xf32>
    %267 = arith.negf %266 : vector<8x256xf32>
    %268 = math.exp %267 : vector<8x256xf32>
    %cst_106 = arith.constant 1.000000e+00 : f32
    %269 = vector.broadcast %cst_106 : f32 to vector<8x256xf32>
    %270 = arith.addf %269, %268 : vector<8x256xf32>
    %271 = arith.divf %269, %270 : vector<8x256xf32>
    %272 = vector.extract_strided_slice %271 {offsets = [0, 0], sizes = [8, 128], strides = [1, 1]} : vector<8x256xf32> to vector<8x128xf32>
    %273 = vector.extract_strided_slice %271 {offsets = [0, 128], sizes = [8, 128], strides = [1, 1]} : vector<8x256xf32> to vector<8x128xf32>
    %274 = vector.extract_strided_slice %260 {offsets = [0, 256], sizes = [8, 128], strides = [1, 1]} : vector<8x384xf32> to vector<8x128xf32>
    %275 = vector.extract_strided_slice %263 {offsets = [0, 256], sizes = [8, 128], strides = [1, 1]} : vector<8x384xf32> to vector<8x128xf32>
    %276 = arith.addf %275, %217 : vector<8x128xf32>
    %277 = arith.mulf %272, %276 : vector<8x128xf32>
    %278 = arith.addf %274, %277 : vector<8x128xf32>
    %279 = math.tanh %278 : vector<8x128xf32>
    %280 = arith.subf %257, %279 : vector<8x128xf32>
    %281 = arith.mulf %273, %280 : vector<8x128xf32>
    %282 = arith.addf %279, %281 : vector<8x128xf32>
    %283 = arith.truncf %282 : vector<8x128xf32> to vector<8x128xbf16>
    %c16_107 = arith.constant 16 : index
    %c0_108 = arith.constant 0 : index
    %284 = vector.load %arg8[%c16_107, %c0_108] : memref<64x128xbf16, #tpu.memory_space<vmem>>, vector<8x128xbf16>
    tpu.vector_store %arg8[%c16_107, %c0_108], %283 {strides = array<i32>} : memref<64x128xbf16, #tpu.memory_space<vmem>>, vector<8x128xbf16>,
    %c24_109 = arith.constant 24 : index
    %c0_110 = arith.constant 0 : index
    %285 = vector.load %arg9[%c24_109, %c0_110] : memref<64x384xf32, #tpu.memory_space<vmem>>, vector<8x384xf32>
    %c1_111 = arith.constant 1 : index
    %c0_112 = arith.constant 0 : index
    %c0_113 = arith.constant 0 : index
    %286 = vector.load %arg2[%c1_111, %c0_112, %c0_113] : memref<3x128x384xbf16, #tpu.memory_space<vmem>>, vector<1x128x384xbf16>
    %287 = vector.shape_cast %286 : vector<1x128x384xbf16> to vector<128x384xbf16>
    %cst_114 = arith.constant dense<0.000000e+00> : vector<8x384xf32>
    %288 = tpu.matmul %283, %287, %cst_114 {dimension_numbers = #tpu.dot_dimension_numbers<[1], [0], [0], [1], [0, 0, 1, 1], [], []>} : vector<8x128xbf16>, vector<128x384xbf16>, vector<8x384xf32> -> vector<8x384xf32>
    %289 = vector.extract_strided_slice %285 {offsets = [0, 0], sizes = [8, 256], strides = [1, 1]} : vector<8x384xf32> to vector<8x256xf32>
    %290 = vector.extract_strided_slice %288 {offsets = [0, 0], sizes = [8, 256], strides = [1, 1]} : vector<8x384xf32> to vector<8x256xf32>
    %291 = arith.addf %289, %290 : vector<8x256xf32>
    %292 = arith.negf %291 : vector<8x256xf32>
    %293 = math.exp %292 : vector<8x256xf32>
    %cst_115 = arith.constant 1.000000e+00 : f32
    %294 = vector.broadcast %cst_115 : f32 to vector<8x256xf32>
    %295 = arith.addf %294, %293 : vector<8x256xf32>
    %296 = arith.divf %294, %295 : vector<8x256xf32>
    %297 = vector.extract_strided_slice %296 {offsets = [0, 0], sizes = [8, 128], strides = [1, 1]} : vector<8x256xf32> to vector<8x128xf32>
    %298 = vector.extract_strided_slice %296 {offsets = [0, 128], sizes = [8, 128], strides = [1, 1]} : vector<8x256xf32> to vector<8x128xf32>
    %299 = vector.extract_strided_slice %285 {offsets = [0, 256], sizes = [8, 128], strides = [1, 1]} : vector<8x384xf32> to vector<8x128xf32>
    %300 = vector.extract_strided_slice %288 {offsets = [0, 256], sizes = [8, 128], strides = [1, 1]} : vector<8x384xf32> to vector<8x128xf32>
    %301 = arith.addf %300, %217 : vector<8x128xf32>
    %302 = arith.mulf %297, %301 : vector<8x128xf32>
    %303 = arith.addf %299, %302 : vector<8x128xf32>
    %304 = math.tanh %303 : vector<8x128xf32>
    %305 = arith.subf %282, %304 : vector<8x128xf32>
    %306 = arith.mulf %298, %305 : vector<8x128xf32>
    %307 = arith.addf %304, %306 : vector<8x128xf32>
    %308 = arith.truncf %307 : vector<8x128xf32> to vector<8x128xbf16>
    %c24_116 = arith.constant 24 : index
    %c0_117 = arith.constant 0 : index
    %309 = vector.load %arg8[%c24_116, %c0_117] : memref<64x128xbf16, #tpu.memory_space<vmem>>, vector<8x128xbf16>
    tpu.vector_store %arg8[%c24_116, %c0_117], %308 {strides = array<i32>} : memref<64x128xbf16, #tpu.memory_space<vmem>>, vector<8x128xbf16>,
    %c32_118 = arith.constant 32 : index
    %c0_119 = arith.constant 0 : index
    %310 = vector.load %arg9[%c32_118, %c0_119] : memref<64x384xf32, #tpu.memory_space<vmem>>, vector<8x384xf32>
    %c1_120 = arith.constant 1 : index
    %c0_121 = arith.constant 0 : index
    %c0_122 = arith.constant 0 : index
    %311 = vector.load %arg2[%c1_120, %c0_121, %c0_122] : memref<3x128x384xbf16, #tpu.memory_space<vmem>>, vector<1x128x384xbf16>
    %312 = vector.shape_cast %311 : vector<1x128x384xbf16> to vector<128x384xbf16>
    %cst_123 = arith.constant dense<0.000000e+00> : vector<8x384xf32>
    %313 = tpu.matmul %308, %312, %cst_123 {dimension_numbers = #tpu.dot_dimension_numbers<[1], [0], [0], [1], [0, 0, 1, 1], [], []>} : vector<8x128xbf16>, vector<128x384xbf16>, vector<8x384xf32> -> vector<8x384xf32>
    %314 = vector.extract_strided_slice %310 {offsets = [0, 0], sizes = [8, 256], strides = [1, 1]} : vector<8x384xf32> to vector<8x256xf32>
    %315 = vector.extract_strided_slice %313 {offsets = [0, 0], sizes = [8, 256], strides = [1, 1]} : vector<8x384xf32> to vector<8x256xf32>
    %316 = arith.addf %314, %315 : vector<8x256xf32>
    %317 = arith.negf %316 : vector<8x256xf32>
    %318 = math.exp %317 : vector<8x256xf32>
    %cst_124 = arith.constant 1.000000e+00 : f32
    %319 = vector.broadcast %cst_124 : f32 to vector<8x256xf32>
    %320 = arith.addf %319, %318 : vector<8x256xf32>
    %321 = arith.divf %319, %320 : vector<8x256xf32>
    %322 = vector.extract_strided_slice %321 {offsets = [0, 0], sizes = [8, 128], strides = [1, 1]} : vector<8x256xf32> to vector<8x128xf32>
    %323 = vector.extract_strided_slice %321 {offsets = [0, 128], sizes = [8, 128], strides = [1, 1]} : vector<8x256xf32> to vector<8x128xf32>
    %324 = vector.extract_strided_slice %310 {offsets = [0, 256], sizes = [8, 128], strides = [1, 1]} : vector<8x384xf32> to vector<8x128xf32>
    %325 = vector.extract_strided_slice %313 {offsets = [0, 256], sizes = [8, 128], strides = [1, 1]} : vector<8x384xf32> to vector<8x128xf32>
    %326 = arith.addf %325, %217 : vector<8x128xf32>
    %327 = arith.mulf %322, %326 : vector<8x128xf32>
    %328 = arith.addf %324, %327 : vector<8x128xf32>
    %329 = math.tanh %328 : vector<8x128xf32>
    %330 = arith.subf %307, %329 : vector<8x128xf32>
    %331 = arith.mulf %323, %330 : vector<8x128xf32>
    %332 = arith.addf %329, %331 : vector<8x128xf32>
    %333 = arith.truncf %332 : vector<8x128xf32> to vector<8x128xbf16>
    %c32_125 = arith.constant 32 : index
    %c0_126 = arith.constant 0 : index
    %334 = vector.load %arg8[%c32_125, %c0_126] : memref<64x128xbf16, #tpu.memory_space<vmem>>, vector<8x128xbf16>
    tpu.vector_store %arg8[%c32_125, %c0_126], %333 {strides = array<i32>} : memref<64x128xbf16, #tpu.memory_space<vmem>>, vector<8x128xbf16>,
    %c40_127 = arith.constant 40 : index
    %c0_128 = arith.constant 0 : index
    %335 = vector.load %arg9[%c40_127, %c0_128] : memref<64x384xf32, #tpu.memory_space<vmem>>, vector<8x384xf32>
    %c1_129 = arith.constant 1 : index
    %c0_130 = arith.constant 0 : index
    %c0_131 = arith.constant 0 : index
    %336 = vector.load %arg2[%c1_129, %c0_130, %c0_131] : memref<3x128x384xbf16, #tpu.memory_space<vmem>>, vector<1x128x384xbf16>
    %337 = vector.shape_cast %336 : vector<1x128x384xbf16> to vector<128x384xbf16>
    %cst_132 = arith.constant dense<0.000000e+00> : vector<8x384xf32>
    %338 = tpu.matmul %333, %337, %cst_132 {dimension_numbers = #tpu.dot_dimension_numbers<[1], [0], [0], [1], [0, 0, 1, 1], [], []>} : vector<8x128xbf16>, vector<128x384xbf16>, vector<8x384xf32> -> vector<8x384xf32>
    %339 = vector.extract_strided_slice %335 {offsets = [0, 0], sizes = [8, 256], strides = [1, 1]} : vector<8x384xf32> to vector<8x256xf32>
    %340 = vector.extract_strided_slice %338 {offsets = [0, 0], sizes = [8, 256], strides = [1, 1]} : vector<8x384xf32> to vector<8x256xf32>
    %341 = arith.addf %339, %340 : vector<8x256xf32>
    %342 = arith.negf %341 : vector<8x256xf32>
    %343 = math.exp %342 : vector<8x256xf32>
    %cst_133 = arith.constant 1.000000e+00 : f32
    %344 = vector.broadcast %cst_133 : f32 to vector<8x256xf32>
    %345 = arith.addf %344, %343 : vector<8x256xf32>
    %346 = arith.divf %344, %345 : vector<8x256xf32>
    %347 = vector.extract_strided_slice %346 {offsets = [0, 0], sizes = [8, 128], strides = [1, 1]} : vector<8x256xf32> to vector<8x128xf32>
    %348 = vector.extract_strided_slice %346 {offsets = [0, 128], sizes = [8, 128], strides = [1, 1]} : vector<8x256xf32> to vector<8x128xf32>
    %349 = vector.extract_strided_slice %335 {offsets = [0, 256], sizes = [8, 128], strides = [1, 1]} : vector<8x384xf32> to vector<8x128xf32>
    %350 = vector.extract_strided_slice %338 {offsets = [0, 256], sizes = [8, 128], strides = [1, 1]} : vector<8x384xf32> to vector<8x128xf32>
    %351 = arith.addf %350, %217 : vector<8x128xf32>
    %352 = arith.mulf %347, %351 : vector<8x128xf32>
    %353 = arith.addf %349, %352 : vector<8x128xf32>
    %354 = math.tanh %353 : vector<8x128xf32>
    %355 = arith.subf %332, %354 : vector<8x128xf32>
    %356 = arith.mulf %348, %355 : vector<8x128xf32>
    %357 = arith.addf %354, %356 : vector<8x128xf32>
    %358 = arith.truncf %357 : vector<8x128xf32> to vector<8x128xbf16>
    %c40_134 = arith.constant 40 : index
    %c0_135 = arith.constant 0 : index
    %359 = vector.load %arg8[%c40_134, %c0_135] : memref<64x128xbf16, #tpu.memory_space<vmem>>, vector<8x128xbf16>
    tpu.vector_store %arg8[%c40_134, %c0_135], %358 {strides = array<i32>} : memref<64x128xbf16, #tpu.memory_space<vmem>>, vector<8x128xbf16>,
    %c48_136 = arith.constant 48 : index
    %c0_137 = arith.constant 0 : index
    %360 = vector.load %arg9[%c48_136, %c0_137] : memref<64x384xf32, #tpu.memory_space<vmem>>, vector<8x384xf32>
    %c1_138 = arith.constant 1 : index
    %c0_139 = arith.constant 0 : index
    %c0_140 = arith.constant 0 : index
    %361 = vector.load %arg2[%c1_138, %c0_139, %c0_140] : memref<3x128x384xbf16, #tpu.memory_space<vmem>>, vector<1x128x384xbf16>
    %362 = vector.shape_cast %361 : vector<1x128x384xbf16> to vector<128x384xbf16>
    %cst_141 = arith.constant dense<0.000000e+00> : vector<8x384xf32>
    %363 = tpu.matmul %358, %362, %cst_141 {dimension_numbers = #tpu.dot_dimension_numbers<[1], [0], [0], [1], [0, 0, 1, 1], [], []>} : vector<8x128xbf16>, vector<128x384xbf16>, vector<8x384xf32> -> vector<8x384xf32>
    %364 = vector.extract_strided_slice %360 {offsets = [0, 0], sizes = [8, 256], strides = [1, 1]} : vector<8x384xf32> to vector<8x256xf32>
    %365 = vector.extract_strided_slice %363 {offsets = [0, 0], sizes = [8, 256], strides = [1, 1]} : vector<8x384xf32> to vector<8x256xf32>
    %366 = arith.addf %364, %365 : vector<8x256xf32>
    %367 = arith.negf %366 : vector<8x256xf32>
    %368 = math.exp %367 : vector<8x256xf32>
    %cst_142 = arith.constant 1.000000e+00 : f32
    %369 = vector.broadcast %cst_142 : f32 to vector<8x256xf32>
    %370 = arith.addf %369, %368 : vector<8x256xf32>
    %371 = arith.divf %369, %370 : vector<8x256xf32>
    %372 = vector.extract_strided_slice %371 {offsets = [0, 0], sizes = [8, 128], strides = [1, 1]} : vector<8x256xf32> to vector<8x128xf32>
    %373 = vector.extract_strided_slice %371 {offsets = [0, 128], sizes = [8, 128], strides = [1, 1]} : vector<8x256xf32> to vector<8x128xf32>
    %374 = vector.extract_strided_slice %360 {offsets = [0, 256], sizes = [8, 128], strides = [1, 1]} : vector<8x384xf32> to vector<8x128xf32>
    %375 = vector.extract_strided_slice %363 {offsets = [0, 256], sizes = [8, 128], strides = [1, 1]} : vector<8x384xf32> to vector<8x128xf32>
    %376 = arith.addf %375, %217 : vector<8x128xf32>
    %377 = arith.mulf %372, %376 : vector<8x128xf32>
    %378 = arith.addf %374, %377 : vector<8x128xf32>
    %379 = math.tanh %378 : vector<8x128xf32>
    %380 = arith.subf %357, %379 : vector<8x128xf32>
    %381 = arith.mulf %373, %380 : vector<8x128xf32>
    %382 = arith.addf %379, %381 : vector<8x128xf32>
    %383 = arith.truncf %382 : vector<8x128xf32> to vector<8x128xbf16>
    %c48_143 = arith.constant 48 : index
    %c0_144 = arith.constant 0 : index
    %384 = vector.load %arg8[%c48_143, %c0_144] : memref<64x128xbf16, #tpu.memory_space<vmem>>, vector<8x128xbf16>
    tpu.vector_store %arg8[%c48_143, %c0_144], %383 {strides = array<i32>} : memref<64x128xbf16, #tpu.memory_space<vmem>>, vector<8x128xbf16>,
    %c56_145 = arith.constant 56 : index
    %c0_146 = arith.constant 0 : index
    %385 = vector.load %arg9[%c56_145, %c0_146] : memref<64x384xf32, #tpu.memory_space<vmem>>, vector<8x384xf32>
    %c1_147 = arith.constant 1 : index
    %c0_148 = arith.constant 0 : index
    %c0_149 = arith.constant 0 : index
    %386 = vector.load %arg2[%c1_147, %c0_148, %c0_149] : memref<3x128x384xbf16, #tpu.memory_space<vmem>>, vector<1x128x384xbf16>
    %387 = vector.shape_cast %386 : vector<1x128x384xbf16> to vector<128x384xbf16>
    %cst_150 = arith.constant dense<0.000000e+00> : vector<8x384xf32>
    %388 = tpu.matmul %383, %387, %cst_150 {dimension_numbers = #tpu.dot_dimension_numbers<[1], [0], [0], [1], [0, 0, 1, 1], [], []>} : vector<8x128xbf16>, vector<128x384xbf16>, vector<8x384xf32> -> vector<8x384xf32>
    %389 = vector.extract_strided_slice %385 {offsets = [0, 0], sizes = [8, 256], strides = [1, 1]} : vector<8x384xf32> to vector<8x256xf32>
    %390 = vector.extract_strided_slice %388 {offsets = [0, 0], sizes = [8, 256], strides = [1, 1]} : vector<8x384xf32> to vector<8x256xf32>
    %391 = arith.addf %389, %390 : vector<8x256xf32>
    %392 = arith.negf %391 : vector<8x256xf32>
    %393 = math.exp %392 : vector<8x256xf32>
    %cst_151 = arith.constant 1.000000e+00 : f32
    %394 = vector.broadcast %cst_151 : f32 to vector<8x256xf32>
    %395 = arith.addf %394, %393 : vector<8x256xf32>
    %396 = arith.divf %394, %395 : vector<8x256xf32>
    %397 = vector.extract_strided_slice %396 {offsets = [0, 0], sizes = [8, 128], strides = [1, 1]} : vector<8x256xf32> to vector<8x128xf32>
    %398 = vector.extract_strided_slice %396 {offsets = [0, 128], sizes = [8, 128], strides = [1, 1]} : vector<8x256xf32> to vector<8x128xf32>
    %399 = vector.extract_strided_slice %385 {offsets = [0, 256], sizes = [8, 128], strides = [1, 1]} : vector<8x384xf32> to vector<8x128xf32>
    %400 = vector.extract_strided_slice %388 {offsets = [0, 256], sizes = [8, 128], strides = [1, 1]} : vector<8x384xf32> to vector<8x128xf32>
    %401 = arith.addf %400, %217 : vector<8x128xf32>
    %402 = arith.mulf %397, %401 : vector<8x128xf32>
    %403 = arith.addf %399, %402 : vector<8x128xf32>
    %404 = math.tanh %403 : vector<8x128xf32>
    %405 = arith.subf %382, %404 : vector<8x128xf32>
    %406 = arith.mulf %398, %405 : vector<8x128xf32>
    %407 = arith.addf %404, %406 : vector<8x128xf32>
    %408 = arith.truncf %407 : vector<8x128xf32> to vector<8x128xbf16>
    %c56_152 = arith.constant 56 : index
    %c0_153 = arith.constant 0 : index
    %409 = vector.load %arg8[%c56_152, %c0_153] : memref<64x128xbf16, #tpu.memory_space<vmem>>, vector<8x128xbf16>
    tpu.vector_store %arg8[%c56_152, %c0_153], %408 {strides = array<i32>} : memref<64x128xbf16, #tpu.memory_space<vmem>>, vector<8x128xbf16>,
    %c0_154 = arith.constant 0 : index
    %c0_155 = arith.constant 0 : index
    %410 = vector.load %arg8[%c0_154, %c0_155] : memref<64x128xbf16, #tpu.memory_space<vmem>>, vector<64x128xbf16>
    %c2 = arith.constant 2 : index
    %c0_156 = arith.constant 0 : index
    %c0_157 = arith.constant 0 : index
    %411 = vector.load %arg1[%c2, %c0_156, %c0_157] : memref<3x128x384xbf16, #tpu.memory_space<vmem>>, vector<1x128x384xbf16>
    %412 = vector.shape_cast %411 : vector<1x128x384xbf16> to vector<128x384xbf16>
    %cst_158 = arith.constant dense<0.000000e+00> : vector<64x384xf32>
    %413 = tpu.matmul %410, %412, %cst_158 {dimension_numbers = #tpu.dot_dimension_numbers<[1], [0], [0], [1], [0, 0, 1, 1], [], []>} : vector<64x128xbf16>, vector<128x384xbf16>, vector<64x384xf32> -> vector<64x384xf32>
    %c2_159 = arith.constant 2 : index
    %c0_160 = arith.constant 0 : index
    %c0_161 = arith.constant 0 : index
    %414 = vector.load %arg3[%c2_159, %c0_160, %c0_161] : memref<3x1x384xf32, #tpu.memory_space<vmem>>, vector<1x1x384xf32>
    %415 = vector.shape_cast %414 : vector<1x1x384xf32> to vector<1x384xf32>
    %416 = vector.broadcast %415 : vector<1x384xf32> to vector<64x384xf32>
    %417 = arith.addf %413, %416 : vector<64x384xf32>
    %c0_162 = arith.constant 0 : index
    %c0_163 = arith.constant 0 : index
    %418 = vector.load %arg9[%c0_162, %c0_163] : memref<64x384xf32, #tpu.memory_space<vmem>>, vector<64x384xf32>
    tpu.vector_store %arg9[%c0_162, %c0_163], %417 {strides = array<i32>} : memref<64x384xf32, #tpu.memory_space<vmem>>, vector<64x384xf32>,
    %c2_164 = arith.constant 2 : index
    %c0_165 = arith.constant 0 : index
    %c0_166 = arith.constant 0 : index
    %419 = vector.load %arg4[%c2_164, %c0_165, %c0_166] : memref<3x1x128xf32, #tpu.memory_space<vmem>>, vector<1x1x128xf32>
    %420 = vector.shape_cast %419 : vector<1x1x128xf32> to vector<1x128xf32>
    %421 = vector.shape_cast %420 : vector<1x128xf32> to vector<1x128xf32>
    %422 = vector.broadcast %421 : vector<1x128xf32> to vector<8x128xf32>
    %c0_167 = arith.constant 0 : index
    %c0_168 = arith.constant 0 : index
    %423 = vector.load %arg9[%c0_167, %c0_168] : memref<64x384xf32, #tpu.memory_space<vmem>>, vector<8x384xf32>
    %424 = vector.extract_strided_slice %423 {offsets = [0, 0], sizes = [8, 256], strides = [1, 1]} : vector<8x384xf32> to vector<8x256xf32>
    %425 = arith.negf %424 : vector<8x256xf32>
    %426 = math.exp %425 : vector<8x256xf32>
    %cst_169 = arith.constant 1.000000e+00 : f32
    %427 = vector.broadcast %cst_169 : f32 to vector<8x256xf32>
    %428 = arith.addf %427, %426 : vector<8x256xf32>
    %429 = arith.divf %427, %428 : vector<8x256xf32>
    %430 = vector.extract_strided_slice %429 {offsets = [0, 0], sizes = [8, 128], strides = [1, 1]} : vector<8x256xf32> to vector<8x128xf32>
    %431 = vector.extract_strided_slice %429 {offsets = [0, 128], sizes = [8, 128], strides = [1, 1]} : vector<8x256xf32> to vector<8x128xf32>
    %432 = vector.extract_strided_slice %423 {offsets = [0, 256], sizes = [8, 128], strides = [1, 1]} : vector<8x384xf32> to vector<8x128xf32>
    %433 = arith.mulf %430, %422 : vector<8x128xf32>
    %434 = arith.addf %432, %433 : vector<8x128xf32>
    %435 = math.tanh %434 : vector<8x128xf32>
    %436 = arith.mulf %431, %435 : vector<8x128xf32>
    %437 = arith.subf %435, %436 : vector<8x128xf32>
    %438 = arith.truncf %437 : vector<8x128xf32> to vector<8x128xbf16>
    %c8_170 = arith.constant 8 : index
    %c0_171 = arith.constant 0 : index
    %439 = vector.load %arg9[%c8_170, %c0_171] : memref<64x384xf32, #tpu.memory_space<vmem>>, vector<8x384xf32>
    %c2_172 = arith.constant 2 : index
    %c0_173 = arith.constant 0 : index
    %c0_174 = arith.constant 0 : index
    %440 = vector.load %arg2[%c2_172, %c0_173, %c0_174] : memref<3x128x384xbf16, #tpu.memory_space<vmem>>, vector<1x128x384xbf16>
    %441 = vector.shape_cast %440 : vector<1x128x384xbf16> to vector<128x384xbf16>
    %cst_175 = arith.constant dense<0.000000e+00> : vector<8x384xf32>
    %442 = tpu.matmul %438, %441, %cst_175 {dimension_numbers = #tpu.dot_dimension_numbers<[1], [0], [0], [1], [0, 0, 1, 1], [], []>} : vector<8x128xbf16>, vector<128x384xbf16>, vector<8x384xf32> -> vector<8x384xf32>
    %443 = vector.extract_strided_slice %439 {offsets = [0, 0], sizes = [8, 256], strides = [1, 1]} : vector<8x384xf32> to vector<8x256xf32>
    %444 = vector.extract_strided_slice %442 {offsets = [0, 0], sizes = [8, 256], strides = [1, 1]} : vector<8x384xf32> to vector<8x256xf32>
    %445 = arith.addf %443, %444 : vector<8x256xf32>
    %446 = arith.negf %445 : vector<8x256xf32>
    %447 = math.exp %446 : vector<8x256xf32>
    %cst_176 = arith.constant 1.000000e+00 : f32
    %448 = vector.broadcast %cst_176 : f32 to vector<8x256xf32>
    %449 = arith.addf %448, %447 : vector<8x256xf32>
    %450 = arith.divf %448, %449 : vector<8x256xf32>
    %451 = vector.extract_strided_slice %450 {offsets = [0, 0], sizes = [8, 128], strides = [1, 1]} : vector<8x256xf32> to vector<8x128xf32>
    %452 = vector.extract_strided_slice %450 {offsets = [0, 128], sizes = [8, 128], strides = [1, 1]} : vector<8x256xf32> to vector<8x128xf32>
    %453 = vector.extract_strided_slice %439 {offsets = [0, 256], sizes = [8, 128], strides = [1, 1]} : vector<8x384xf32> to vector<8x128xf32>
    %454 = vector.extract_strided_slice %442 {offsets = [0, 256], sizes = [8, 128], strides = [1, 1]} : vector<8x384xf32> to vector<8x128xf32>
    %455 = arith.addf %454, %422 : vector<8x128xf32>
    %456 = arith.mulf %451, %455 : vector<8x128xf32>
    %457 = arith.addf %453, %456 : vector<8x128xf32>
    %458 = math.tanh %457 : vector<8x128xf32>
    %459 = arith.subf %437, %458 : vector<8x128xf32>
    %460 = arith.mulf %452, %459 : vector<8x128xf32>
    %461 = arith.addf %458, %460 : vector<8x128xf32>
    %462 = arith.truncf %461 : vector<8x128xf32> to vector<8x128xbf16>
    %c16_177 = arith.constant 16 : index
    %c0_178 = arith.constant 0 : index
    %463 = vector.load %arg9[%c16_177, %c0_178] : memref<64x384xf32, #tpu.memory_space<vmem>>, vector<8x384xf32>
    %c2_179 = arith.constant 2 : index
    %c0_180 = arith.constant 0 : index
    %c0_181 = arith.constant 0 : index
    %464 = vector.load %arg2[%c2_179, %c0_180, %c0_181] : memref<3x128x384xbf16, #tpu.memory_space<vmem>>, vector<1x128x384xbf16>
    %465 = vector.shape_cast %464 : vector<1x128x384xbf16> to vector<128x384xbf16>
    %cst_182 = arith.constant dense<0.000000e+00> : vector<8x384xf32>
    %466 = tpu.matmul %462, %465, %cst_182 {dimension_numbers = #tpu.dot_dimension_numbers<[1], [0], [0], [1], [0, 0, 1, 1], [], []>} : vector<8x128xbf16>, vector<128x384xbf16>, vector<8x384xf32> -> vector<8x384xf32>
    %467 = vector.extract_strided_slice %463 {offsets = [0, 0], sizes = [8, 256], strides = [1, 1]} : vector<8x384xf32> to vector<8x256xf32>
    %468 = vector.extract_strided_slice %466 {offsets = [0, 0], sizes = [8, 256], strides = [1, 1]} : vector<8x384xf32> to vector<8x256xf32>
    %469 = arith.addf %467, %468 : vector<8x256xf32>
    %470 = arith.negf %469 : vector<8x256xf32>
    %471 = math.exp %470 : vector<8x256xf32>
    %cst_183 = arith.constant 1.000000e+00 : f32
    %472 = vector.broadcast %cst_183 : f32 to vector<8x256xf32>
    %473 = arith.addf %472, %471 : vector<8x256xf32>
    %474 = arith.divf %472, %473 : vector<8x256xf32>
    %475 = vector.extract_strided_slice %474 {offsets = [0, 0], sizes = [8, 128], strides = [1, 1]} : vector<8x256xf32> to vector<8x128xf32>
    %476 = vector.extract_strided_slice %474 {offsets = [0, 128], sizes = [8, 128], strides = [1, 1]} : vector<8x256xf32> to vector<8x128xf32>
    %477 = vector.extract_strided_slice %463 {offsets = [0, 256], sizes = [8, 128], strides = [1, 1]} : vector<8x384xf32> to vector<8x128xf32>
    %478 = vector.extract_strided_slice %466 {offsets = [0, 256], sizes = [8, 128], strides = [1, 1]} : vector<8x384xf32> to vector<8x128xf32>
    %479 = arith.addf %478, %422 : vector<8x128xf32>
    %480 = arith.mulf %475, %479 : vector<8x128xf32>
    %481 = arith.addf %477, %480 : vector<8x128xf32>
    %482 = math.tanh %481 : vector<8x128xf32>
    %483 = arith.subf %461, %482 : vector<8x128xf32>
    %484 = arith.mulf %476, %483 : vector<8x128xf32>
    %485 = arith.addf %482, %484 : vector<8x128xf32>
    %486 = arith.truncf %485 : vector<8x128xf32> to vector<8x128xbf16>
    %c24_184 = arith.constant 24 : index
    %c0_185 = arith.constant 0 : index
    %487 = vector.load %arg9[%c24_184, %c0_185] : memref<64x384xf32, #tpu.memory_space<vmem>>, vector<8x384xf32>
    %c2_186 = arith.constant 2 : index
    %c0_187 = arith.constant 0 : index
    %c0_188 = arith.constant 0 : index
    %488 = vector.load %arg2[%c2_186, %c0_187, %c0_188] : memref<3x128x384xbf16, #tpu.memory_space<vmem>>, vector<1x128x384xbf16>
    %489 = vector.shape_cast %488 : vector<1x128x384xbf16> to vector<128x384xbf16>
    %cst_189 = arith.constant dense<0.000000e+00> : vector<8x384xf32>
    %490 = tpu.matmul %486, %489, %cst_189 {dimension_numbers = #tpu.dot_dimension_numbers<[1], [0], [0], [1], [0, 0, 1, 1], [], []>} : vector<8x128xbf16>, vector<128x384xbf16>, vector<8x384xf32> -> vector<8x384xf32>
    %491 = vector.extract_strided_slice %487 {offsets = [0, 0], sizes = [8, 256], strides = [1, 1]} : vector<8x384xf32> to vector<8x256xf32>
    %492 = vector.extract_strided_slice %490 {offsets = [0, 0], sizes = [8, 256], strides = [1, 1]} : vector<8x384xf32> to vector<8x256xf32>
    %493 = arith.addf %491, %492 : vector<8x256xf32>
    %494 = arith.negf %493 : vector<8x256xf32>
    %495 = math.exp %494 : vector<8x256xf32>
    %cst_190 = arith.constant 1.000000e+00 : f32
    %496 = vector.broadcast %cst_190 : f32 to vector<8x256xf32>
    %497 = arith.addf %496, %495 : vector<8x256xf32>
    %498 = arith.divf %496, %497 : vector<8x256xf32>
    %499 = vector.extract_strided_slice %498 {offsets = [0, 0], sizes = [8, 128], strides = [1, 1]} : vector<8x256xf32> to vector<8x128xf32>
    %500 = vector.extract_strided_slice %498 {offsets = [0, 128], sizes = [8, 128], strides = [1, 1]} : vector<8x256xf32> to vector<8x128xf32>
    %501 = vector.extract_strided_slice %487 {offsets = [0, 256], sizes = [8, 128], strides = [1, 1]} : vector<8x384xf32> to vector<8x128xf32>
    %502 = vector.extract_strided_slice %490 {offsets = [0, 256], sizes = [8, 128], strides = [1, 1]} : vector<8x384xf32> to vector<8x128xf32>
    %503 = arith.addf %502, %422 : vector<8x128xf32>
    %504 = arith.mulf %499, %503 : vector<8x128xf32>
    %505 = arith.addf %501, %504 : vector<8x128xf32>
    %506 = math.tanh %505 : vector<8x128xf32>
    %507 = arith.subf %485, %506 : vector<8x128xf32>
    %508 = arith.mulf %500, %507 : vector<8x128xf32>
    %509 = arith.addf %506, %508 : vector<8x128xf32>
    %510 = arith.truncf %509 : vector<8x128xf32> to vector<8x128xbf16>
    %c32_191 = arith.constant 32 : index
    %c0_192 = arith.constant 0 : index
    %511 = vector.load %arg9[%c32_191, %c0_192] : memref<64x384xf32, #tpu.memory_space<vmem>>, vector<8x384xf32>
    %c2_193 = arith.constant 2 : index
    %c0_194 = arith.constant 0 : index
    %c0_195 = arith.constant 0 : index
    %512 = vector.load %arg2[%c2_193, %c0_194, %c0_195] : memref<3x128x384xbf16, #tpu.memory_space<vmem>>, vector<1x128x384xbf16>
    %513 = vector.shape_cast %512 : vector<1x128x384xbf16> to vector<128x384xbf16>
    %cst_196 = arith.constant dense<0.000000e+00> : vector<8x384xf32>
    %514 = tpu.matmul %510, %513, %cst_196 {dimension_numbers = #tpu.dot_dimension_numbers<[1], [0], [0], [1], [0, 0, 1, 1], [], []>} : vector<8x128xbf16>, vector<128x384xbf16>, vector<8x384xf32> -> vector<8x384xf32>
    %515 = vector.extract_strided_slice %511 {offsets = [0, 0], sizes = [8, 256], strides = [1, 1]} : vector<8x384xf32> to vector<8x256xf32>
    %516 = vector.extract_strided_slice %514 {offsets = [0, 0], sizes = [8, 256], strides = [1, 1]} : vector<8x384xf32> to vector<8x256xf32>
    %517 = arith.addf %515, %516 : vector<8x256xf32>
    %518 = arith.negf %517 : vector<8x256xf32>
    %519 = math.exp %518 : vector<8x256xf32>
    %cst_197 = arith.constant 1.000000e+00 : f32
    %520 = vector.broadcast %cst_197 : f32 to vector<8x256xf32>
    %521 = arith.addf %520, %519 : vector<8x256xf32>
    %522 = arith.divf %520, %521 : vector<8x256xf32>
    %523 = vector.extract_strided_slice %522 {offsets = [0, 0], sizes = [8, 128], strides = [1, 1]} : vector<8x256xf32> to vector<8x128xf32>
    %524 = vector.extract_strided_slice %522 {offsets = [0, 128], sizes = [8, 128], strides = [1, 1]} : vector<8x256xf32> to vector<8x128xf32>
    %525 = vector.extract_strided_slice %511 {offsets = [0, 256], sizes = [8, 128], strides = [1, 1]} : vector<8x384xf32> to vector<8x128xf32>
    %526 = vector.extract_strided_slice %514 {offsets = [0, 256], sizes = [8, 128], strides = [1, 1]} : vector<8x384xf32> to vector<8x128xf32>
    %527 = arith.addf %526, %422 : vector<8x128xf32>
    %528 = arith.mulf %523, %527 : vector<8x128xf32>
    %529 = arith.addf %525, %528 : vector<8x128xf32>
    %530 = math.tanh %529 : vector<8x128xf32>
    %531 = arith.subf %509, %530 : vector<8x128xf32>
    %532 = arith.mulf %524, %531 : vector<8x128xf32>
    %533 = arith.addf %530, %532 : vector<8x128xf32>
    %534 = arith.truncf %533 : vector<8x128xf32> to vector<8x128xbf16>
    %c40_198 = arith.constant 40 : index
    %c0_199 = arith.constant 0 : index
    %535 = vector.load %arg9[%c40_198, %c0_199] : memref<64x384xf32, #tpu.memory_space<vmem>>, vector<8x384xf32>
    %c2_200 = arith.constant 2 : index
    %c0_201 = arith.constant 0 : index
    %c0_202 = arith.constant 0 : index
    %536 = vector.load %arg2[%c2_200, %c0_201, %c0_202] : memref<3x128x384xbf16, #tpu.memory_space<vmem>>, vector<1x128x384xbf16>
    %537 = vector.shape_cast %536 : vector<1x128x384xbf16> to vector<128x384xbf16>
    %cst_203 = arith.constant dense<0.000000e+00> : vector<8x384xf32>
    %538 = tpu.matmul %534, %537, %cst_203 {dimension_numbers = #tpu.dot_dimension_numbers<[1], [0], [0], [1], [0, 0, 1, 1], [], []>} : vector<8x128xbf16>, vector<128x384xbf16>, vector<8x384xf32> -> vector<8x384xf32>
    %539 = vector.extract_strided_slice %535 {offsets = [0, 0], sizes = [8, 256], strides = [1, 1]} : vector<8x384xf32> to vector<8x256xf32>
    %540 = vector.extract_strided_slice %538 {offsets = [0, 0], sizes = [8, 256], strides = [1, 1]} : vector<8x384xf32> to vector<8x256xf32>
    %541 = arith.addf %539, %540 : vector<8x256xf32>
    %542 = arith.negf %541 : vector<8x256xf32>
    %543 = math.exp %542 : vector<8x256xf32>
    %cst_204 = arith.constant 1.000000e+00 : f32
    %544 = vector.broadcast %cst_204 : f32 to vector<8x256xf32>
    %545 = arith.addf %544, %543 : vector<8x256xf32>
    %546 = arith.divf %544, %545 : vector<8x256xf32>
    %547 = vector.extract_strided_slice %546 {offsets = [0, 0], sizes = [8, 128], strides = [1, 1]} : vector<8x256xf32> to vector<8x128xf32>
    %548 = vector.extract_strided_slice %546 {offsets = [0, 128], sizes = [8, 128], strides = [1, 1]} : vector<8x256xf32> to vector<8x128xf32>
    %549 = vector.extract_strided_slice %535 {offsets = [0, 256], sizes = [8, 128], strides = [1, 1]} : vector<8x384xf32> to vector<8x128xf32>
    %550 = vector.extract_strided_slice %538 {offsets = [0, 256], sizes = [8, 128], strides = [1, 1]} : vector<8x384xf32> to vector<8x128xf32>
    %551 = arith.addf %550, %422 : vector<8x128xf32>
    %552 = arith.mulf %547, %551 : vector<8x128xf32>
    %553 = arith.addf %549, %552 : vector<8x128xf32>
    %554 = math.tanh %553 : vector<8x128xf32>
    %555 = arith.subf %533, %554 : vector<8x128xf32>
    %556 = arith.mulf %548, %555 : vector<8x128xf32>
    %557 = arith.addf %554, %556 : vector<8x128xf32>
    %558 = arith.truncf %557 : vector<8x128xf32> to vector<8x128xbf16>
    %c48_205 = arith.constant 48 : index
    %c0_206 = arith.constant 0 : index
    %559 = vector.load %arg9[%c48_205, %c0_206] : memref<64x384xf32, #tpu.memory_space<vmem>>, vector<8x384xf32>
    %c2_207 = arith.constant 2 : index
    %c0_208 = arith.constant 0 : index
    %c0_209 = arith.constant 0 : index
    %560 = vector.load %arg2[%c2_207, %c0_208, %c0_209] : memref<3x128x384xbf16, #tpu.memory_space<vmem>>, vector<1x128x384xbf16>
    %561 = vector.shape_cast %560 : vector<1x128x384xbf16> to vector<128x384xbf16>
    %cst_210 = arith.constant dense<0.000000e+00> : vector<8x384xf32>
    %562 = tpu.matmul %558, %561, %cst_210 {dimension_numbers = #tpu.dot_dimension_numbers<[1], [0], [0], [1], [0, 0, 1, 1], [], []>} : vector<8x128xbf16>, vector<128x384xbf16>, vector<8x384xf32> -> vector<8x384xf32>
    %563 = vector.extract_strided_slice %559 {offsets = [0, 0], sizes = [8, 256], strides = [1, 1]} : vector<8x384xf32> to vector<8x256xf32>
    %564 = vector.extract_strided_slice %562 {offsets = [0, 0], sizes = [8, 256], strides = [1, 1]} : vector<8x384xf32> to vector<8x256xf32>
    %565 = arith.addf %563, %564 : vector<8x256xf32>
    %566 = arith.negf %565 : vector<8x256xf32>
    %567 = math.exp %566 : vector<8x256xf32>
    %cst_211 = arith.constant 1.000000e+00 : f32
    %568 = vector.broadcast %cst_211 : f32 to vector<8x256xf32>
    %569 = arith.addf %568, %567 : vector<8x256xf32>
    %570 = arith.divf %568, %569 : vector<8x256xf32>
    %571 = vector.extract_strided_slice %570 {offsets = [0, 0], sizes = [8, 128], strides = [1, 1]} : vector<8x256xf32> to vector<8x128xf32>
    %572 = vector.extract_strided_slice %570 {offsets = [0, 128], sizes = [8, 128], strides = [1, 1]} : vector<8x256xf32> to vector<8x128xf32>
    %573 = vector.extract_strided_slice %559 {offsets = [0, 256], sizes = [8, 128], strides = [1, 1]} : vector<8x384xf32> to vector<8x128xf32>
    %574 = vector.extract_strided_slice %562 {offsets = [0, 256], sizes = [8, 128], strides = [1, 1]} : vector<8x384xf32> to vector<8x128xf32>
    %575 = arith.addf %574, %422 : vector<8x128xf32>
    %576 = arith.mulf %571, %575 : vector<8x128xf32>
    %577 = arith.addf %573, %576 : vector<8x128xf32>
    %578 = math.tanh %577 : vector<8x128xf32>
    %579 = arith.subf %557, %578 : vector<8x128xf32>
    %580 = arith.mulf %572, %579 : vector<8x128xf32>
    %581 = arith.addf %578, %580 : vector<8x128xf32>
    %582 = arith.truncf %581 : vector<8x128xf32> to vector<8x128xbf16>
    %c56_212 = arith.constant 56 : index
    %c0_213 = arith.constant 0 : index
    %583 = vector.load %arg9[%c56_212, %c0_213] : memref<64x384xf32, #tpu.memory_space<vmem>>, vector<8x384xf32>
    %c2_214 = arith.constant 2 : index
    %c0_215 = arith.constant 0 : index
    %c0_216 = arith.constant 0 : index
    %584 = vector.load %arg2[%c2_214, %c0_215, %c0_216] : memref<3x128x384xbf16, #tpu.memory_space<vmem>>, vector<1x128x384xbf16>
    %585 = vector.shape_cast %584 : vector<1x128x384xbf16> to vector<128x384xbf16>
    %cst_217 = arith.constant dense<0.000000e+00> : vector<8x384xf32>
    %586 = tpu.matmul %582, %585, %cst_217 {dimension_numbers = #tpu.dot_dimension_numbers<[1], [0], [0], [1], [0, 0, 1, 1], [], []>} : vector<8x128xbf16>, vector<128x384xbf16>, vector<8x384xf32> -> vector<8x384xf32>
    %587 = vector.extract_strided_slice %583 {offsets = [0, 0], sizes = [8, 256], strides = [1, 1]} : vector<8x384xf32> to vector<8x256xf32>
    %588 = vector.extract_strided_slice %586 {offsets = [0, 0], sizes = [8, 256], strides = [1, 1]} : vector<8x384xf32> to vector<8x256xf32>
    %589 = arith.addf %587, %588 : vector<8x256xf32>
    %590 = arith.negf %589 : vector<8x256xf32>
    %591 = math.exp %590 : vector<8x256xf32>
    %cst_218 = arith.constant 1.000000e+00 : f32
    %592 = vector.broadcast %cst_218 : f32 to vector<8x256xf32>
    %593 = arith.addf %592, %591 : vector<8x256xf32>
    %594 = arith.divf %592, %593 : vector<8x256xf32>
    %595 = vector.extract_strided_slice %594 {offsets = [0, 0], sizes = [8, 128], strides = [1, 1]} : vector<8x256xf32> to vector<8x128xf32>
    %596 = vector.extract_strided_slice %594 {offsets = [0, 128], sizes = [8, 128], strides = [1, 1]} : vector<8x256xf32> to vector<8x128xf32>
    %597 = vector.extract_strided_slice %583 {offsets = [0, 256], sizes = [8, 128], strides = [1, 1]} : vector<8x384xf32> to vector<8x128xf32>
    %598 = vector.extract_strided_slice %586 {offsets = [0, 256], sizes = [8, 128], strides = [1, 1]} : vector<8x384xf32> to vector<8x128xf32>
    %599 = arith.addf %598, %422 : vector<8x128xf32>
    %600 = arith.mulf %595, %599 : vector<8x128xf32>
    %601 = arith.addf %597, %600 : vector<8x128xf32>
    %602 = math.tanh %601 : vector<8x128xf32>
    %603 = arith.subf %581, %602 : vector<8x128xf32>
    %604 = arith.mulf %596, %603 : vector<8x128xf32>
    %605 = arith.addf %602, %604 : vector<8x128xf32>
    %606 = arith.truncf %605 : vector<8x128xf32> to vector<8x128xbf16>
    %c0_219 = arith.constant 0 : index
    %c0_220 = arith.constant 0 : index
    %607 = vector.load %arg5[%c0_219, %c0_220] : memref<128x128xbf16, #tpu.memory_space<vmem>>, vector<128x128xbf16>
    %cst_221 = arith.constant dense<0.000000e+00> : vector<8x128xf32>
    %608 = tpu.matmul %606, %607, %cst_221 {dimension_numbers = #tpu.dot_dimension_numbers<[1], [0], [0], [1], [0, 0, 1, 1], [], []>} : vector<8x128xbf16>, vector<128x128xbf16>, vector<8x128xf32> -> vector<8x128xf32>
    %c0_222 = arith.constant 0 : index
    %c0_223 = arith.constant 0 : index
    %609 = vector.load %arg6[%c0_222, %c0_223] : memref<1x128xf32, #tpu.memory_space<vmem>>, vector<1x128xf32>
    %610 = vector.broadcast %609 : vector<1x128xf32> to vector<8x128xf32>
    %611 = arith.addf %608, %610 : vector<8x128xf32>
    %c0_224 = arith.constant 0 : index
    %c0_225 = arith.constant 0 : index
    %612 = vector.load %arg7[%c0_224, %c0_225] : memref<8x128xf32, #tpu.memory_space<vmem>>, vector<8x128xf32>
    tpu.vector_store %arg7[%c0_224, %c0_225], %611 {strides = array<i32>} : memref<8x128xf32, #tpu.memory_space<vmem>>, vector<8x128xf32>,
    return
  }
}

</mosaic_0001>

<bundles_post_ra>
// kernel: tpu_custom_call.1
= control target key start
LH: loop header
LB: loop body
LE: loop exit
PB: predicated region body
PF: predicated region fallthrough
CT: control target
= control target key end

     0   :  { %12 = vsyncpa [#allocation5], 0  ;;  %s9372_s0 = inlined_call_operand.hbm [shape: bf16[64,128], index: 0, kind: input, shape index: {}]   ;;  %s9373_s1 = inlined_call_operand.hbm [shape: bf16[3,128,384], index: 1, kind: input, shape index: {}]   ;;  %s9374_s2 = inlined_call_operand.hbm [shape: bf16[3,128,384], index: 2, kind: input, shape index: {}]   ;;  %s9375_s3 = inlined_call_operand.hbm [shape: f32[3,1,384], index: 3, kind: input, shape index: {}]   ;;  %s9376_s4 = inlined_call_operand.vmem [shape: f32[3,1,128], index: 4, kind: input, shape index: {}]   ;;  %s9377_s5 = inlined_call_operand.hbm [shape: bf16[128,128], index: 5, kind: input, shape index: {}]   ;;  %s9378_s6 = inlined_call_operand.vmem [shape: f32[1,128], index: 6, kind: input, shape index: {}]   ;;  %s9379_s7 = inlined_call_operand.hbm [shape: f32[8,128], index: 7, kind: output, shape index: {}]  }
   0x1   :  { %13 = vsyncpa [#allocation8], 0 }
   0x2   :  { %14 = vsyncpa [#allocation11], 0 }
   0x3   :  { %15 = vsyncpa [#allocation6], 0  ;;  %s8065_s24 = smov [#allocation7]  }
   0x4   :  { %s33_s25 = sshll.u32 %s8065_s24, 4  ;;  %s34_s25 = int_to_ptr.vmem [resolvable:$true] %s33_s25 }
   0x5   :  { %s7945_s26 = scalar_lea.vmem %s34_s25, 9216  ;;  %p7950_p1 = scmp.lt.s32.totalorder %s34_s25, %s34_s25 }
   0x6   :  { %p7946_p0 = scmp.ne.s32.totalorder %s34_s25, %s7945_s26  ;;  %p7951_p2 = scmp.lt.s32.totalorder %s7945_s26, %s7945_s26 }
   0x8   :  { %p7952_p3 = por %p7951_p2, %p7950_p1 }
   0xa   :  { %p7953_p4 = pnand %p7952_p3, %p7946_p0 }
   0xc   :  { %7956 = shalt.err (!%p7953_p4)
}
   0xd   :  { %s8066_s27 = smov 192   ;;  %s8067_s28 = smov 12  }
   0xe   :  { %39 = dma.hbm_to_vmem [thread:$0]  %s9373_s1, 9216, %s34_s25, [#allocation8], %s8066_s27, %s8066_s27, %s8067_s28  }
   0xf   :  { %s8068_s8 = smov [#allocation10]  }
  0x10   :  { %s57_s9 = sshll.u32 %s8068_s8, 4  ;;  %s58_s9 = int_to_ptr.vmem [resolvable:$true] %s57_s9 }
  0x11   :  { %s7965_s10 = scalar_lea.vmem %s58_s9, 144  ;;  %s7969_s11 = scalar_lea.vmem %s58_s9, 160 }
  0x12   :  { %p7966_p5 = scmp.ne.s32.totalorder %s58_s9, %s7965_s10  ;;  %p7970_p6 = scmp.lt.s32.totalorder %s58_s9, %s58_s9 }
  0x13   :  { %p7971_p7 = scmp.lt.s32.totalorder %s7969_s11, %s7965_s10 }
  0x15   :  { %p7972_p8 = por %p7971_p7, %p7970_p6 }
  0x17   :  { %p7973_p9 = pnand %p7972_p8, %p7966_p5 }
  0x19   :  { %7976 = shalt.err (!%p7973_p9)
}
  0x1a   :  { %s8069_s12 = smov 48   ;;  %s8070_s13 = smov 3  }
  0x1b   :  { %63 = dma.hbm_to_vmem [thread:$0]  %s9375_s3, 144, %s58_s9, [#allocation11], %s8069_s12, %s8069_s12, %s8070_s13  }
  0x1c   :  { %s8071_s16 = smov [#allocation4]  }
  0x1d   :  { %s21_s17 = sshll.u32 %s8071_s16, 4  ;;  %s22_s17 = int_to_ptr.vmem [resolvable:$true] %s21_s17 }
  0x1e   :  { %s7985_s1 = scalar_lea.vmem %s22_s17, 512  ;;  %p7990_p11 = scmp.lt.s32.totalorder %s22_s17, %s22_s17 }
  0x1f   :  { %p7986_p10 = scmp.ne.s32.totalorder %s22_s17, %s7985_s1  ;;  %p7991_p12 = scmp.lt.s32.totalorder %s7985_s1, %s7985_s1 }
  0x21   :  { %p7992_p13 = por %p7991_p12, %p7990_p11 }
  0x23   :  { %p7993_p0 = pnand %p7992_p13, %p7986_p10 }
  0x25   :  { %7996 = shalt.err (!%p7993_p0)
}
  0x26   :  { %s8072_s18 = smov 64   ;;  %s8073_s19 = smov 4  }
  0x27   :  { %27 = dma.hbm_to_vmem [thread:$0]  %s9372_s0, 512, %s22_s17, [#allocation5], %s8072_s18, %s8072_s18, %s8073_s19  }
  0x28   :  { %s8074_s22 = smov [#allocation9]   ;;  %s8075_s3 = smov [#allocation12]  }
  0x29   :  { %s45_s23 = sshll.u32 %s8074_s22, 4  ;;  %s71_s24 = sshll.u32 %s8075_s3, 4  ;;  %s46_s23 = int_to_ptr.vmem [resolvable:$true] %s45_s23  ;;  %s72_s24 = int_to_ptr.vmem [resolvable:$true] %s71_s24 }
  0x2a   :  { %s8005_s25 = scalar_lea.vmem %s46_s23, 9216  ;;  %p8010_p2 = scmp.lt.s32.totalorder %s46_s23, %s46_s23 }
  0x2b   :  { %p8006_p1 = scmp.ne.s32.totalorder %s46_s23, %s8005_s25  ;;  %p8011_p3 = scmp.lt.s32.totalorder %s8005_s25, %s8005_s25 }
  0x2d   :  { %p8012_p4 = por %p8011_p3, %p8010_p2 }
  0x2f   :  { %p8013_p5 = pnand %p8012_p4, %p8006_p1 }
  0x31   :  { %8016 = shalt.err (!%p8013_p5)
}
  0x32   :  { %51 = dma.hbm_to_vmem [thread:$0]  %s9374_s2, 9216, %s46_s23, [#allocation8], %s8066_s27, %s8066_s27, %s8067_s28  }
  0x33   :  { %s8025_s0 = scalar_lea.vmem %s72_s24, 1024  ;;  %p8030_p7 = scmp.lt.s32.totalorder %s72_s24, %s72_s24 }
  0x34   :  { %p8026_p6 = scmp.ne.s32.totalorder %s72_s24, %s8025_s0  ;;  %p8031_p8 = scmp.lt.s32.totalorder %s8025_s0, %s8025_s0 }
  0x36   :  { %p8032_p9 = por %p8031_p8, %p8030_p7 }
  0x38   :  { %p8033_p10 = pnand %p8032_p9, %p8026_p6 }
  0x3a   :  { %8036 = shalt.err (!%p8033_p10)
}
  0x3b   :  { %77 = dma.hbm_to_vmem [thread:$0]  %s9377_s5, 1024, %s72_s24, [#allocation11], %s8072_s18, %s8072_s18, %s8073_s19  }
  0x3c   :  { %8057 = dma.done.wait [#allocation5], 512  }
  0x3d   :  { %8058 = vsyncadd [#allocation5], 4294966784 }
  0x3e   :  { %8059 = dma.done.wait [#allocation8], 18432  }
  0x3f   :  { %8060 = vsyncadd [#allocation8], 4294948864 }
  0x40   :  { %8061 = dma.done.wait [#allocation11], 1168  }
  0x41   :  { %8062 = vsyncadd [#allocation11], 4294966128  ;;  %v9380_v0 = vmov 0   ;;  %v7339_v1 = vld [vmem:[#allocation7 + $0xac] ss:$12 sps:$4 sm:$0xff]   ;;  %v7365_v12 = vld [vmem:[#allocation4] sm:$0xff]   ;;  %v138_v54 = vlaneseq }
  0x42   :  { %337 = vmatprep.mubr.bf16.mxu0 %v9380_v0  ;;  %v7341_v2 = vld [vmem:[#allocation7 + $0xa8] ss:$12 sps:$4 sm:$0xff]   ;;  %305 = vmatprep.subr.bf16.mxu0 %v7339_v1  ;;  %v7344_v4 = vld [vmem:[#allocation7 + $0x90] ss:$12 sps:$4 sm:$0xff]   ;;  %v7347_v6 = vld [vmem:[#allocation7 + $0x78] ss:$12 sps:$4 sm:$0xff]  }
  0x43   :  { %v7342_v3 = vld [vmem:[#allocation7 + $0x94] ss:$12 sps:$4 sm:$0xff]   ;;  %306 = vmatpush1.bf16.msra.mxu0 %v7341_v2  ;;  %v7345_v5 = vld [vmem:[#allocation7 + $0x7c] ss:$12 sps:$4 sm:$0xff]   ;;  %v7348_v7 = vld [vmem:[#allocation7 + $0x64] ss:$12 sps:$4 sm:$0xff]   ;;  %6828 = vmatprep.mubr.bf16.mxu1 %v7365_v12 }
  0x44   :  { %307 = vmatprep.subr.bf16.mxu0 %v7342_v3  ;;  %v7360_v8 = vld [vmem:[#allocation7 + $0xb0] ss:$12 sps:$4 sm:$0xff]   ;;  %v7350_v9 = vld [vmem:[#allocation7 + $0x60] ss:$12 sps:$4 sm:$0xff]   ;;  %v7364_v11 = vld [vmem:[#allocation7 + $0x98] ss:$12 sps:$4 sm:$0xff]  }
  0x45   :  { %v7351_v10 = vld [vmem:[#allocation7 + $0x4c] ss:$12 sps:$4 sm:$0xff]   ;;  %6812 = vmatprep.subr.bf16.mxu1 %v7360_v8  ;;  %v7353_v14 = vld [vmem:[#allocation7 + $0x48] ss:$12 sps:$4 sm:$0xff]   ;;  %v7356_v17 = vld [vmem:[#allocation7 + $0x30] ss:$12 sps:$4 sm:$0xff]  }
  0x46   :  { %6813 = vmatpush3.bf16.msra.mxu1 %v7360_v8  ;;  %v7366_v13 = vld [vmem:[#allocation7 + $0x80] ss:$12 sps:$4 sm:$0xff]   ;;  %v7367_v16 = vld [vmem:[#allocation7 + $0x68] ss:$12 sps:$4 sm:$0xff]   ;;  %v7368_v19 = vld [vmem:[#allocation7 + $0x50] ss:$12 sps:$4 sm:$0xff]  }
  0x47   :  { %308 = vmatpush1.bf16.msra.mxu0 %v7344_v4  ;;  %6814 = vmatprep.subr.bf16.mxu1 %v7364_v11  ;;  %v7354_v15 = vld [vmem:[#allocation7 + $0x34] ss:$12 sps:$4 sm:$0xff]   ;;  %v7357_v18 = vld [vmem:[#allocation7 + $0x1c] ss:$12 sps:$4 sm:$0xff]   ;;  %v7359_v20 = vld [vmem:[#allocation7 + $0x18] ss:$12 sps:$4 sm:$0xff]  }
  0x48   :  { %309 = vmatprep.subr.bf16.mxu0 %v7345_v5  ;;  %v7361_v21 = vld [vmem:[#allocation7 + $0x4] ss:$12 sps:$4 sm:$0xff]   ;;  %v7363_v23 = vld [vmem:[#allocation7] ss:$12 sps:$4 sm:$0xff]   ;;  %v7371_v25 = vld [vmem:[#allocation7 + $0x8] ss:$12 sps:$4 sm:$0xff]  }
  0x49   :  { %v7369_v22 = vld [vmem:[#allocation7 + $0x38] ss:$12 sps:$4 sm:$0xff]   ;;  %v7370_v24 = vld [vmem:[#allocation7 + $0x20] ss:$12 sps:$4 sm:$0xff]   ;;  %v8144_v27 = vld [vmem:[#allocation9 + $0xa8] ss:$12 sps:$4 sm:$0xff]  }
  0x4a   :  { %6815 = vmatpush3.bf16.msra.mxu1 %v7364_v11  ;;  %v7372_v26 = vld [vmem:[#allocation4 + $0x8] sm:$0xff]   ;;  %v9382_v29 = vmov 0.0   ;;  %v7376_v30 = vld [vmem:[#allocation9 + $0xb0] ss:$12 sps:$4 sm:$0xff]   ;;  %v8151_v31 = vld [vmem:[#allocation9 + $0x94] ss:$12 sps:$4 sm:$0xff]  }
  0x4b   :  { %310 = vmatpush1.bf16.msra.mxu0 %v7347_v6  ;;  %6816 = vmatprep.subr.bf16.mxu1 %v7366_v13  ;;  %v8146_v28 = vld [vmem:[#allocation9 + $0xac] ss:$12 sps:$4 sm:$0xff]   ;;  %v8154_v32 = vld [vmem:[#allocation9 + $0x90] ss:$12 sps:$4 sm:$0xff]   ;;  %v7389_v40 = vld [vmem:[#allocation9 + $0x68] ss:$12 sps:$4 sm:$0xff]  }
  0x4c   :  { %311 = vmatprep.subr.bf16.mxu0 %v7348_v7  ;;  %v7380_v33 = vld [vmem:[#allocation9 + $0x98] ss:$12 sps:$4 sm:$0xff]   ;;  %v8158_v34 = vld [vmem:[#allocation9 + $0x7c] ss:$12 sps:$4 sm:$0xff]   ;;  %v7384_v36 = vld [vmem:[#allocation9 + $0x80] ss:$12 sps:$4 sm:$0xff]  }
  0x4d   :  { %v8161_v35 = vld [vmem:[#allocation9 + $0x78] ss:$12 sps:$4 sm:$0xff]   ;;  %v7385_v37 = vld [vmem:[#allocation4 + $0x10] sm:$0xff]   ;;  %v8168_v39 = vld [vmem:[#allocation9 + $0x60] ss:$12 sps:$4 sm:$0xff]   ;;  %vm8078_vm0 = vmmov 0  }
  0x4e   :  { %6817 = vmatpush3.bf16.msra.mxu1 %v7366_v13  ;;  %v8165_v38 = vld [vmem:[#allocation9 + $0x64] ss:$12 sps:$4 sm:$0xff]   ;;  %v8172_v41 = vld [vmem:[#allocation9 + $0x4c] ss:$12 sps:$4 sm:$0xff]   ;;  %v8175_v42 = vld [vmem:[#allocation9 + $0x48] ss:$12 sps:$4 sm:$0xff]  }
  0x4f   :  { %312 = vmatpush1.bf16.msra.mxu0 %v7350_v9  ;;  %6818 = vmatprep.subr.bf16.mxu1 %v7367_v16  ;;  %v7393_v43 = vld [vmem:[#allocation9 + $0x50] ss:$12 sps:$4 sm:$0xff]   ;;  %v8179_v45 = vld [vmem:[#allocation9 + $0x34] ss:$12 sps:$4 sm:$0xff]   ;;  %v7398_v47 = vld [vmem:[#allocation9 + $0x38] ss:$12 sps:$4 sm:$0xff]  }
  0x50   :  { %313 = vmatprep.subr.bf16.mxu0 %v7351_v10  ;;  %v7394_v44 = vld [vmem:[#allocation4 + $0x18] sm:$0xff]   ;;  %v7402_v50 = vld [vmem:[#allocation9 + $0x20] ss:$12 sps:$4 sm:$0xff]   ;;  %v8193_v51 = vld [vmem:[#allocation9 + $0x4] ss:$12 sps:$4 sm:$0xff]   ;;  %v139_v55 = vshrl.u32 %v138_v54, 7 }
  0x51   :  { %v8181_v46 = vld [vmem:[#allocation9 + $0x30] ss:$12 sps:$4 sm:$0xff]   ;;  %v8190_v49 = vld [vmem:[#allocation9 + $0x18] ss:$12 sps:$4 sm:$0xff]   ;;  %v8198_v52 = vld [vmem:[#allocation9] ss:$12 sps:$4 sm:$0xff]  }
  0x52   :  { %6819 = vmatpush3.bf16.msra.mxu1 %v7367_v16  ;;  %v8183_v48 = vld [vmem:[#allocation9 + $0x1c] ss:$12 sps:$4 sm:$0xff]   ;;  %v8206_v56 = vsub.s32 0, %v139_v55  ;;  %v136_v57 = vld [vmem:[#allocation10] sm:$0x7]  ;;  %v8212_v61 = vsub.s32 1, %v139_v55 }
  0x53   :  { %314 = vmatpush1.bf16.msra.mxu0 %v7353_v14  ;;  %6820 = vmatprep.subr.bf16.mxu1 %v7368_v19  ;;  %v7406_v53 = vld [vmem:[#allocation9 + $0x8] ss:$12 sps:$4 sm:$0xff]   ;;  %v8218_v6 = vsub.s32 2, %v139_v55  ;;  %v8228_v10 = vld [vmem:[%s9376_s4] ss:$0 sm:$0xff]  ;;  %s8079_s16 = smov [#allocation13]  }
  0x54   :  { %315 = vmatprep.subr.bf16.mxu0 %v7354_v15  ;;  %v8209_v58 = vrot.slane %v136_v57, %v8206_v56  ;;  %v8215_v63 = vrot.slane %v136_v57, %v8212_v61  ;;  %s6061_s17 = sshll.u32 %s8079_s16, 4  ;;  %s6062_s17 = int_to_ptr.vmem [resolvable:$true] %s6061_s17 }
  0x55   :  { %v8223_v9 = vrot.slane %v136_v57, %v8218_v6  ;;  %s8037_s1 = scalar_lea.vmem %s6062_s17, 128  ;;  %p8042_p12 = scmp.lt.s32.totalorder %s6062_s17, %s6062_s17 }
  0x56   :  { %6821 = vmatpush3.bf16.msra.mxu1 %v7368_v19  ;;  %p8038_p11 = scmp.ne.s32.totalorder %s6062_s17, %s8037_s1  ;;  %p8043_p13 = scmp.lt.s32.totalorder %s8037_s1, %s8037_s1 }
  0x57   :  { %316 = vmatpush1.bf16.msra.mxu0 %v7356_v17  ;;  %6822 = vmatprep.subr.bf16.mxu1 %v7369_v22 }
  0x58   :  { %317 = vmatprep.subr.bf16.mxu0 %v7357_v18  ;;  %p8044_p0 = por %p8043_p13, %p8042_p12 }
  0x5a   :  { %6823 = vmatpush3.bf16.msra.mxu1 %v7369_v22  ;;  %v7407_v22 = vld [vmem:[#allocation9 + $0xb0] ss:$12 sps:$4 sm:$0xff]   ;;  %p8045_p1 = pnand %p8044_p0, %p8038_p11 }
  0x5b   :  { %318 = vmatpush1.bf16.msra.mxu0 %v7359_v20  ;;  %6824 = vmatprep.subr.bf16.mxu1 %v7370_v24 }
  0x5c   :  { %319 = vmatprep.subr.bf16.mxu0 %v7361_v21 }
  0x5e   :  { %6825 = vmatpush3.bf16.msra.mxu1 %v7370_v24  ;;  %v7409_v24 = vld [vmem:[#allocation9 + $0x80] ss:$12 sps:$4 sm:$0xff]  }
  0x5f   :  { %320 = vmatpush1.bf16.msra.mxu0 %v7363_v23  ;;  %6826 = vmatprep.subr.bf16.mxu1 %v7371_v25  ;;  %v7408_v23 = vld [vmem:[#allocation9 + $0x98] ss:$12 sps:$4 sm:$0xff]  }
  0x60   :  { %659 = vmatprep.subr.bf16.mxu0 %v8146_v28 }
  0x62   :  { %338 = vmatmul.mubr.bf16.vlgmr.msra.gmra.mxu0 %v7365_v12  ;;  %6827 = vmatpush3.bf16.msra.mxu1 %v7371_v25  ;;  %v7410_v25 = vld [vmem:[#allocation9 + $0x68] ss:$12 sps:$4 sm:$0xff]  }
  0x63   :  { %347 = vmatprep.mubr.bf16.mxu0 %v9380_v0  ;;  %6836 = vmatprep.subr.bf16.mxu1 %v9382_v29 }
  0x64   :  { %660 = vmatpush1.bf16.msra.mxu0 %v8144_v27 }
  0x65   :  { %6829 = vmatmul.mubr.bf16.vlgmr.msra.gmra.mxu1 %v7372_v26  ;;  %661 = vmatprep.subr.bf16.mxu0 %v8151_v31 }
  0x66   :  { %6837 = vmatpush3.bf16.msra.mxu1 %v7376_v30  ;;  %6832 = vmatprep.mubr.bf16.mxu1 %v7385_v37  ;;  %v7412_v30 = vld [vmem:[#allocation9 + $0x38] ss:$12 sps:$4 sm:$0xff]  }
  0x67   :  { %6838 = vmatprep.subr.bf16.mxu1 %v9382_v29 }
  0x68   :  { %662 = vmatpush1.bf16.msra.mxu0 %v8154_v32 }
  0x69   :  { %663 = vmatprep.subr.bf16.mxu0 %v8158_v34 }
  0x6a   :  { %348 = vmatmul.mubr.bf16.gmra.mxu0 %v7372_v26  ;;  %6839 = vmatpush3.bf16.msra.mxu1 %v7380_v33  ;;  %v7411_v26 = vld [vmem:[#allocation9 + $0x50] ss:$12 sps:$4 sm:$0xff]   ;;  %v7413_v33 = vld [vmem:[#allocation9 + $0x20] ss:$12 sps:$4 sm:$0xff]  }
  0x6b   :  { %357 = vmatprep.mubr.bf16.mxu0 %v9380_v0  ;;  %6840 = vmatprep.subr.bf16.mxu1 %v9382_v29 }
  0x6c   :  { %664 = vmatpush1.bf16.msra.mxu0 %v8161_v35 }
  0x6d   :  { %665 = vmatprep.subr.bf16.mxu0 %v8165_v38  ;;  %6833 = vmatmul.mubr.bf16.gmra.mxu1 %v7394_v44 }
  0x6e   :  { %6841 = vmatpush3.bf16.msra.mxu1 %v7384_v36  ;;  %6852 = vmatprep.mubr.msk.bf16.mxu1 %vm8078_vm0, %v9382_v29  ;;  %v7414_v36 = vld [vmem:[#allocation9 + $0x8] ss:$12 sps:$4 sm:$0xff]  }
  0x6f   :  { %6842 = vmatprep.subr.bf16.mxu1 %v9382_v29 }
  0x70   :  { %666 = vmatpush1.bf16.msra.mxu0 %v8168_v39 }
  0x71   :  { %667 = vmatprep.subr.bf16.mxu0 %v8172_v41 }
  0x72   :  { %358 = vmatmul.mubr.bf16.gmra.mxu0 %v7385_v37  ;;  %6843 = vmatpush3.bf16.msra.mxu1 %v7389_v40 }
  0x73   :  { %367 = vmatprep.mubr.bf16.mxu0 %v9380_v0  ;;  %6844 = vmatprep.subr.bf16.mxu1 %v9382_v29 }
  0x74   :  { %668 = vmatpush1.bf16.msra.mxu0 %v8175_v42 }
  0x75   :  { %669 = vmatprep.subr.bf16.mxu0 %v8179_v45 }
  0x76   :  { %6845 = vmatpush3.bf16.msra.mxu1 %v7393_v43 }
  0x77   :  { %6846 = vmatprep.subr.bf16.mxu1 %v9382_v29 }
  0x78   :  { %670 = vmatpush1.bf16.msra.mxu0 %v8181_v46 }
  0x79   :  { %671 = vmatprep.subr.bf16.mxu0 %v8183_v48 }
  0x7a   :  { %368 = vmatmul.mubr.bf16.gmra.mxu0 %v7394_v44  ;;  %6847 = vmatpush3.bf16.msra.mxu1 %v7398_v47 }
  0x7b   :  { %691 = vmatprep.mubr.bf16.mxu0 %v9380_v0  ;;  %6848 = vmatprep.subr.bf16.mxu1 %v9382_v29 }
  0x7c   :  { %672 = vmatpush1.bf16.msra.mxu0 %v8190_v49 }
  0x7d   :  { %673 = vmatprep.subr.bf16.mxu0 %v8193_v51 }
  0x7e   :  { %6849 = vmatpush3.bf16.msra.mxu1 %v7402_v50 }
  0x7f   :  { %6850 = vmatprep.subr.bf16.mxu1 %v9382_v29 }
  0x80   :  { %674 = vmatpush1.bf16.msra.mxu0 %v8198_v52 }
  0x81   :  { %926 = vmatprep.subr.bf16.mxu0 %v8146_v28 }
  0x82   :  { %6851 = vmatpush3.bf16.msra.mxu1 %v7406_v53 }
  0x83   :  { %6856 = vmatprep.subr.bf16.mxu1 %v9382_v29 }
 0x122   :  { %v339_v59 = vpop.f32.mrf.mxu0 }
 0x123   :  { %v340_v60 = vadd.f32 %v339_v59, %v8209_v58 }
 0x124   :  { %v341_v1 = vpop.f32.mrf.mxu0 }
 0x125   :  { %v6101_v62 = vmul.f32 -1.442695, %v340_v60  ;;  %v342_v2 = vadd.f32 %v341_v1, %v8215_v63  ;;  %v8220_v7 = vpop.f32.mrf.mxu1 }
 0x126   :  { %v343_v37 = vpop.f32.mrf.mxu0 }
 0x127   :  { %7695 = vpow2.f32 %v6101_v62  ;;  %v6102_v3 = vmul.f32 -1.442695, %v342_v2  ;;  %v412_v13 = vpop.f32.mrf.mxu1 }
 0x128   :  { %v413_v14 = vadd.f32 %v412_v13, %v8223_v9  ;;  %v345_v40 = vpop.f32.mrf.mxu0 }
 0x129   :  { %7697 = vpow2.f32 %v6102_v3  ;;  %v8275_v55 = vpop.f32.mrf.mxu1 }
 0x12a   :  { %v8263_v43 = vpop.f32.mrf.mxu0 }
 0x12b   :  { %v415_v59 = vpop.f32.mrf.mxu1 }
 0x12c   :  { %v8265_v44 = vpop.f32.mrf.mxu0 }
 0x12d   :  { %v8281_v62 = vpop.f32.mrf.mxu1 }
 0x12e   :  { %v8267_v47 = vpop.f32.mrf.mxu0 }
 0x12f   :  { %v8285_v2 = vpop.f32.mrf.mxu1 }
 0x130   :  { %v8269_v50 = vpop.f32.mrf.mxu0 }
 0x132   :  { %v8271_v53 = vpop.f32.mrf.mxu0 }
 0x134   :  { %v7696_v4 = vpop.eup %7695  ;;  %v8273_v54 = vpop.f32.mrf.mxu0 }
 0x135   :  { %v483_v5 = vadd.f32 1.0, %v7696_v4  ;;  %v8289_v4 = vpop.f32.mrf.mxu1 }
 0x136   :  { %v7698_v8 = vpop.eup %7697  ;;  %v8277_v57 = vpop.f32.mrf.mxu0 }
 0x137   :  { %7699 = vrcp.f32 %v483_v5  ;;  %v484_v12 = vadd.f32 1.0, %v7698_v8  ;;  %v8293_v8 = vpop.f32.mrf.mxu1 }
 0x138   :  { %v8279_v60 = vpop.f32.mrf.mxu0 }
 0x139   :  { %7701 = vrcp.f32 %v484_v12  ;;  %v344_v12 = vadd.f32 %v343_v37, %v8209_v58 }
 0x13a   :  { %v8283_v1 = vpop.f32.mrf.mxu0 }
 0x13c   :  { %v8287_v3 = vpop.f32.mrf.mxu0 }
 0x13e   :  { %v8291_v5 = vpop.f32.mrf.mxu0 }
 0x144   :  { %v7700_v11 = vpop.eup %7699 }
 0x145   :  { %v489_v15 = vmul.f32 %v7700_v11, %v8228_v10  ;;  %v8295_v11 = vpop.f32.mrf.mxu0 }
 0x146   :  { %v7702_v17 = vpop.eup %7701 }
 0x147   :  { %v490_v16 = vadd.f32 %v489_v15, %v413_v14 }
 0x149   :  { %7703 = vtanh.f32 %v490_v16 }
 0x156   :  { %v7704_v18 = vpop.eup %7703 }
 0x157   :  { %v492_v19 = vmul.f32 %v7704_v18, %v7702_v17 }
 0x159   :  { %v8232_v20 = vsub.f32 %v7704_v18, %v492_v19 }
 0x15b   :  { %v494_v21 = vpack.c.bf16 %v8232_v20, %v8232_v20 }
 0x15d   :  { %495 = vst [vmem:[#allocation2] sm:$0xf] %v494_v21  ;;  %692 = vmatmul.mubr.bf16.vlgmr.msra.gmra.mxu0 %v494_v21  ;;  %6853 = vmatmul.mubr.bf16.vlgmr.msra.gmra.mxu1 %v494_v21 }
 0x15e   :  { %927 = vmatpush1.bf16.msra.mxu0 %v8144_v27  ;;  %958 = vmatprep.mubr.bf16.mxu0 %v9380_v0 }
 0x15f   :  { %928 = vmatprep.subr.bf16.mxu0 %v8151_v31  ;;  %6872 = vmatprep.mubr.msk.bf16.mxu1 %vm8078_vm0, %v9382_v29 }
 0x160   :  { %6857 = vmatpush3.bf16.msra.mxu1 %v7407_v22 }
 0x161   :  { %6858 = vmatprep.subr.bf16.mxu1 %v9382_v29 }
 0x162   :  { %929 = vmatpush1.bf16.msra.mxu0 %v8154_v32 }
 0x163   :  { %930 = vmatprep.subr.bf16.mxu0 %v8158_v34 }
 0x164   :  { %6859 = vmatpush3.bf16.msra.mxu1 %v7408_v23 }
 0x165   :  { %6860 = vmatprep.subr.bf16.mxu1 %v9382_v29 }
 0x166   :  { %931 = vmatpush1.bf16.msra.mxu0 %v8161_v35 }
 0x167   :  { %932 = vmatprep.subr.bf16.mxu0 %v8165_v38 }
 0x168   :  { %6861 = vmatpush3.bf16.msra.mxu1 %v7409_v24  ;;  %v346_v24 = vadd.f32 %v345_v40, %v8215_v63 }
 0x169   :  { %6862 = vmatprep.subr.bf16.mxu1 %v9382_v29 }
 0x16a   :  { %933 = vmatpush1.bf16.msra.mxu0 %v8168_v39 }
 0x16b   :  { %934 = vmatprep.subr.bf16.mxu0 %v8172_v41 }
 0x16c   :  { %6863 = vmatpush3.bf16.msra.mxu1 %v7410_v25 }
 0x16d   :  { %6864 = vmatprep.subr.bf16.mxu1 %v9382_v29 }
 0x16e   :  { %935 = vmatpush1.bf16.msra.mxu0 %v8175_v42 }
 0x16f   :  { %936 = vmatprep.subr.bf16.mxu0 %v8179_v45 }
 0x170   :  { %6865 = vmatpush3.bf16.msra.mxu1 %v7411_v26 }
 0x171   :  { %6866 = vmatprep.subr.bf16.mxu1 %v9382_v29 }
 0x172   :  { %937 = vmatpush1.bf16.msra.mxu0 %v8181_v46 }
 0x173   :  { %938 = vmatprep.subr.bf16.mxu0 %v8183_v48 }
 0x174   :  { %6867 = vmatpush3.bf16.msra.mxu1 %v7412_v30 }
 0x175   :  { %6868 = vmatprep.subr.bf16.mxu1 %v9382_v29 }
 0x176   :  { %939 = vmatpush1.bf16.msra.mxu0 %v8190_v49 }
 0x177   :  { %940 = vmatprep.subr.bf16.mxu0 %v8193_v51 }
 0x178   :  { %6869 = vmatpush3.bf16.msra.mxu1 %v7413_v33 }
 0x179   :  { %6870 = vmatprep.subr.bf16.mxu1 %v9382_v29 }
 0x17a   :  { %941 = vmatpush1.bf16.msra.mxu0 %v8198_v52 }
 0x17b   :  { %1193 = vmatprep.subr.bf16.mxu0 %v8146_v28 }
 0x17c   :  { %6871 = vmatpush3.bf16.msra.mxu1 %v7414_v36 }
 0x17d   :  { %6876 = vmatprep.subr.bf16.mxu1 %v9382_v29 }
 0x21d   :  { %v693_v13 = vpop.f32.mrf.mxu0  ;;  %v734_v14 = vpop.f32.mrf.mxu1 }
 0x21e   :  { %v740_v15 = vadd.f32 %v693_v13, %v344_v12  ;;  %v754_v37 = vadd.f32 %v8228_v10, %v734_v14  ;;  %v416_v13 = vadd.f32 %v415_v59, %v8223_v9  ;;  %v7416_v59 = vld [vmem:[#allocation9 + $0x98] ss:$12 sps:$4 sm:$0xff]   ;;  %v7417_v14 = vld [vmem:[#allocation9 + $0x80] ss:$12 sps:$4 sm:$0xff]  }
 0x21f   :  { %v695_v16 = vpop.f32.mrf.mxu0  ;;  %v6854_v17 = vpop.f32.mrf.mxu1 }
 0x220   :  { %v6127_v18 = vmul.f32 -1.442695, %v740_v15  ;;  %v741_v25 = vadd.f32 %v695_v16, %v346_v24  ;;  %v7418_v24 = vld [vmem:[#allocation9 + $0x68] ss:$12 sps:$4 sm:$0xff]  }
 0x221   :  { %v697_v19 = vpop.f32.mrf.mxu0  ;;  %v737_v21 = vpop.f32.mrf.mxu1 }
 0x222   :  { %7705 = vpow2.f32 %v6127_v18  ;;  %v6128_v26 = vmul.f32 -1.442695, %v741_v25  ;;  %v7419_v25 = vld [vmem:[#allocation9 + $0x50] ss:$12 sps:$4 sm:$0xff]  }
 0x223   :  { %v698_v22 = vpop.f32.mrf.mxu0  ;;  %v6855_v23 = vpop.f32.mrf.mxu1 }
 0x224   :  { %7707 = vpow2.f32 %v6128_v26  ;;  %v7420_v26 = vld [vmem:[#allocation9 + $0x38] ss:$12 sps:$4 sm:$0xff]  }
 0x22f   :  { %v7706_v30 = vpop.eup %7705 }
 0x230   :  { %v748_v33 = vadd.f32 1.0, %v7706_v30  ;;  %v7422_v30 = vld [vmem:[#allocation9 + $0x8] ss:$12 sps:$4 sm:$0xff]  }
 0x231   :  { %v7708_v36 = vpop.eup %7707 }
 0x232   :  { %7709 = vrcp.f32 %v748_v33  ;;  %v749_v19 = vadd.f32 1.0, %v7708_v36  ;;  %v350_v33 = vadd.f32 %v8263_v43, %v8209_v58 }
 0x23f   :  { %v7710_v12 = vpop.eup %7709 }
 0x240   :  { %v755_v15 = vmul.f32 %v7710_v12, %v754_v37 }
 0x242   :  { %v756_v17 = vadd.f32 %v755_v15, %v416_v13 }
 0x244   :  { %7711 = vtanh.f32 %v756_v17 }
 0x245   :  { %7713 = vrcp.f32 %v749_v19 }
 0x251   :  { %v7712_v18 = vpop.eup %7711 }
 0x252   :  { %v758_v40 = vsub.f32 %v8232_v20, %v7712_v18  ;;  %v7714_v16 = vpop.eup %7713  ;;  %v7415_v20 = vld [vmem:[#allocation9 + $0xb0] ss:$12 sps:$4 sm:$0xff]  }
 0x254   :  { %v759_v21 = vmul.f32 %v7714_v16, %v758_v40 }
 0x256   :  { %v8302_v22 = vadd.f32 %v7712_v18, %v759_v21  ;;  %v352_v21 = vadd.f32 %v8265_v44, %v8215_v63 }
 0x258   :  { %v761_v23 = vpack.c.bf16 %v8302_v22, %v8302_v22 }
 0x25a   :  { %762 = vst [vmem:[#allocation2 + $0x4] sm:$0xf] %v761_v23  ;;  %959 = vmatmul.mubr.bf16.vlgmr.msra.gmra.mxu0 %v761_v23  ;;  %6873 = vmatmul.mubr.bf16.vlgmr.msra.gmra.mxu1 %v761_v23 }
 0x25b   :  { %1194 = vmatpush1.bf16.msra.mxu0 %v8144_v27  ;;  %1225 = vmatprep.mubr.bf16.mxu0 %v9380_v0 }
 0x25c   :  { %1195 = vmatprep.subr.bf16.mxu0 %v8151_v31  ;;  %6892 = vmatprep.mubr.msk.bf16.mxu1 %vm8078_vm0, %v9382_v29 }
 0x25d   :  { %6877 = vmatpush3.bf16.msra.mxu1 %v7415_v20 }
 0x25e   :  { %6878 = vmatprep.subr.bf16.mxu1 %v9382_v29 }
 0x25f   :  { %1196 = vmatpush1.bf16.msra.mxu0 %v8154_v32 }
 0x260   :  { %1197 = vmatprep.subr.bf16.mxu0 %v8158_v34 }
 0x261   :  { %6879 = vmatpush3.bf16.msra.mxu1 %v7416_v59 }
 0x262   :  { %6880 = vmatprep.subr.bf16.mxu1 %v9382_v29 }
 0x263   :  { %1198 = vmatpush1.bf16.msra.mxu0 %v8161_v35 }
 0x264   :  { %1199 = vmatprep.subr.bf16.mxu0 %v8165_v38 }
 0x265   :  { %6881 = vmatpush3.bf16.msra.mxu1 %v7417_v14 }
 0x266   :  { %6882 = vmatprep.subr.bf16.mxu1 %v9382_v29 }
 0x267   :  { %1200 = vmatpush1.bf16.msra.mxu0 %v8168_v39 }
 0x268   :  { %1201 = vmatprep.subr.bf16.mxu0 %v8172_v41 }
 0x269   :  { %6883 = vmatpush3.bf16.msra.mxu1 %v7418_v24 }
 0x26a   :  { %6884 = vmatprep.subr.bf16.mxu1 %v9382_v29 }
 0x26b   :  { %1202 = vmatpush1.bf16.msra.mxu0 %v8175_v42 }
 0x26c   :  { %1203 = vmatprep.subr.bf16.mxu0 %v8179_v45 }
 0x26d   :  { %6885 = vmatpush3.bf16.msra.mxu1 %v7419_v25 }
 0x26e   :  { %6886 = vmatprep.subr.bf16.mxu1 %v9382_v29 }
 0x26f   :  { %1204 = vmatpush1.bf16.msra.mxu0 %v8181_v46 }
 0x270   :  { %1205 = vmatprep.subr.bf16.mxu0 %v8183_v48 }
 0x271   :  { %6887 = vmatpush3.bf16.msra.mxu1 %v7420_v26  ;;  %v421_v26 = vadd.f32 %v8220_v7, %v8223_v9 }
 0x272   :  { %6888 = vmatprep.subr.bf16.mxu1 %v9382_v29 }
 0x273   :  { %1206 = vmatpush1.bf16.msra.mxu0 %v8190_v49 }
 0x274   :  { %1207 = vmatprep.subr.bf16.mxu0 %v8193_v51 }
 0x277   :  { %1208 = vmatpush1.bf16.msra.mxu0 %v8198_v52 }
 0x278   :  { %1460 = vmatprep.subr.bf16.mxu0 %v8146_v28  ;;  %v7421_v28 = vld [vmem:[#allocation9 + $0x20] ss:$12 sps:$4 sm:$0xff]  }
 0x279   :  { %6889 = vmatpush3.bf16.msra.mxu1 %v7421_v28 }
 0x27a   :  { %6890 = vmatprep.subr.bf16.mxu1 %v9382_v29 }
 0x27d   :  { %6891 = vmatpush3.bf16.msra.mxu1 %v7422_v30 }
 0x27e   :  { %6896 = vmatprep.subr.bf16.mxu1 %v9382_v29 }
 0x31a   :  { %v960_v36 = vpop.f32.mrf.mxu0  ;;  %v1001_v37 = vpop.f32.mrf.mxu1 }
 0x31b   :  { %v1007_v12 = vadd.f32 %v960_v36, %v350_v33  ;;  %v1021_v24 = vadd.f32 %v8228_v10, %v1001_v37 }
 0x31c   :  { %v962_v13 = vpop.f32.mrf.mxu0  ;;  %v6874_v15 = vpop.f32.mrf.mxu1 }
 0x31d   :  { %v6153_v17 = vmul.f32 -1.442695, %v1007_v12  ;;  %v1008_v23 = vadd.f32 %v962_v13, %v352_v21 }
 0x31e   :  { %v964_v19 = vpop.f32.mrf.mxu0  ;;  %v1004_v18 = vpop.f32.mrf.mxu1 }
 0x31f   :  { %7715 = vpow2.f32 %v6153_v17  ;;  %v6154_v20 = vmul.f32 -1.442695, %v1008_v23 }
 0x320   :  { %v965_v40 = vpop.f32.mrf.mxu0  ;;  %v6875_v16 = vpop.f32.mrf.mxu1 }
 0x321   :  { %7717 = vpow2.f32 %v6154_v20 }
 0x32c   :  { %v7716_v59 = vpop.eup %7715 }
 0x32d   :  { %v1015_v14 = vadd.f32 1.0, %v7716_v59  ;;  %v356_v59 = vadd.f32 %v8269_v50, %v8215_v63 }
 0x32e   :  { %v7718_v43 = vpop.eup %7717 }
 0x32f   :  { %7719 = vrcp.f32 %v1015_v14  ;;  %v1016_v33 = vadd.f32 1.0, %v7718_v43 }
 0x33c   :  { %v7720_v25 = vpop.eup %7719 }
 0x33d   :  { %v1022_v28 = vmul.f32 %v7720_v25, %v1021_v24 }
 0x33f   :  { %v1023_v30 = vadd.f32 %v1022_v28, %v421_v26 }
 0x341   :  { %7721 = vtanh.f32 %v1023_v30  ;;  %v424_v30 = vadd.f32 %v8275_v55, %v8223_v9  ;;  %v8386_v55 = vld [vmem:[#allocation9 + $0xac] ss:$12 sps:$4 sm:$0xff]  }
 0x342   :  { %7723 = vrcp.f32 %v1016_v33 }
 0x34e   :  { %v7722_v36 = vpop.eup %7721 }
 0x34f   :  { %v1025_v44 = vsub.f32 %v8302_v22, %v7722_v36  ;;  %v7724_v12 = vpop.eup %7723 }
 0x351   :  { %v1026_v13 = vmul.f32 %v7724_v12, %v1025_v44 }
 0x353   :  { %v8341_v15 = vadd.f32 %v7722_v36, %v1026_v13 }
 0x355   :  { %v1028_v17 = vpack.c.bf16 %v8341_v15, %v8341_v15 }
 0x357   :  { %1029 = vst [vmem:[#allocation2 + $0x8] sm:$0xf] %v1028_v17  ;;  %1226 = vmatmul.mubr.bf16.vlgmr.msra.gmra.mxu0 %v1028_v17  ;;  %6893 = vmatmul.mubr.bf16.vlgmr.msra.gmra.mxu1 %v1028_v17 }
 0x358   :  { %1461 = vmatpush1.bf16.msra.mxu0 %v8144_v27  ;;  %1492 = vmatprep.mubr.bf16.mxu0 %v9380_v0  ;;  %v7423_v27 = vld [vmem:[#allocation9 + $0xb0] ss:$12 sps:$4 sm:$0xff]  }
 0x359   :  { %1462 = vmatprep.subr.bf16.mxu0 %v8151_v31  ;;  %6912 = vmatprep.mubr.msk.bf16.mxu1 %vm8078_vm0, %v9382_v29  ;;  %v7424_v31 = vld [vmem:[#allocation9 + $0x98] ss:$12 sps:$4 sm:$0xff]  }
 0x35a   :  { %6897 = vmatpush3.bf16.msra.mxu1 %v7423_v27 }
 0x35b   :  { %6898 = vmatprep.subr.bf16.mxu1 %v9382_v29 }
 0x35c   :  { %1463 = vmatpush1.bf16.msra.mxu0 %v8154_v32  ;;  %v7425_v32 = vld [vmem:[#allocation9 + $0x80] ss:$12 sps:$4 sm:$0xff]  }
 0x35d   :  { %1464 = vmatprep.subr.bf16.mxu0 %v8158_v34  ;;  %v7426_v34 = vld [vmem:[#allocation9 + $0x68] ss:$12 sps:$4 sm:$0xff]  }
 0x35e   :  { %6899 = vmatpush3.bf16.msra.mxu1 %v7424_v31 }
 0x35f   :  { %6900 = vmatprep.subr.bf16.mxu1 %v9382_v29 }
 0x360   :  { %1465 = vmatpush1.bf16.msra.mxu0 %v8161_v35  ;;  %v7427_v35 = vld [vmem:[#allocation9 + $0x50] ss:$12 sps:$4 sm:$0xff]  }
 0x361   :  { %1466 = vmatprep.subr.bf16.mxu0 %v8165_v38  ;;  %v7428_v38 = vld [vmem:[#allocation9 + $0x38] ss:$12 sps:$4 sm:$0xff]  }
 0x362   :  { %6901 = vmatpush3.bf16.msra.mxu1 %v7425_v32  ;;  %v8388_v32 = vld [vmem:[#allocation9 + $0xa8] ss:$12 sps:$4 sm:$0xff]  }
 0x363   :  { %6902 = vmatprep.subr.bf16.mxu1 %v9382_v29 }
 0x364   :  { %1467 = vmatpush1.bf16.msra.mxu0 %v8168_v39  ;;  %v7429_v39 = vld [vmem:[#allocation9 + $0x20] ss:$12 sps:$4 sm:$0xff]  }
 0x365   :  { %1468 = vmatprep.subr.bf16.mxu0 %v8172_v41  ;;  %v7430_v41 = vld [vmem:[#allocation9 + $0x8] ss:$12 sps:$4 sm:$0xff]  }
 0x366   :  { %6903 = vmatpush3.bf16.msra.mxu1 %v7426_v34  ;;  %v8392_v34 = vld [vmem:[#allocation9 + $0x94] ss:$12 sps:$4 sm:$0xff]  }
 0x367   :  { %6904 = vmatprep.subr.bf16.mxu1 %v9382_v29 }
 0x368   :  { %1469 = vmatpush1.bf16.msra.mxu0 %v8175_v42  ;;  %v354_v42 = vadd.f32 %v8267_v47, %v8209_v58 }
 0x369   :  { %1470 = vmatprep.subr.bf16.mxu0 %v8179_v45 }
 0x36a   :  { %6905 = vmatpush3.bf16.msra.mxu1 %v7427_v35  ;;  %v8395_v35 = vld [vmem:[#allocation9 + $0x90] ss:$12 sps:$4 sm:$0xff]  }
 0x36b   :  { %6906 = vmatprep.subr.bf16.mxu1 %v9382_v29 }
 0x36c   :  { %1471 = vmatpush1.bf16.msra.mxu0 %v8181_v46 }
 0x36d   :  { %1472 = vmatprep.subr.bf16.mxu0 %v8183_v48 }
 0x36e   :  { %6907 = vmatpush3.bf16.msra.mxu1 %v7428_v38  ;;  %v7438_v38 = vld [vmem:[#allocation9 + $0x98] ss:$12 sps:$4 sm:$0xff]  }
 0x36f   :  { %6908 = vmatprep.subr.bf16.mxu1 %v9382_v29 }
 0x370   :  { %1473 = vmatpush1.bf16.msra.mxu0 %v8190_v49 }
 0x371   :  { %1474 = vmatprep.subr.bf16.mxu0 %v8193_v51 }
 0x372   :  { %6909 = vmatpush3.bf16.msra.mxu1 %v7429_v39  ;;  %v8399_v39 = vld [vmem:[#allocation9 + $0x7c] ss:$12 sps:$4 sm:$0xff]  }
 0x373   :  { %6910 = vmatprep.subr.bf16.mxu1 %v9382_v29 }
 0x374   :  { %1475 = vmatpush1.bf16.msra.mxu0 %v8198_v52 }
 0x375   :  { %1727 = vmatprep.subr.bf16.mxu0 %v8386_v55 }
 0x376   :  { %6911 = vmatpush3.bf16.msra.mxu1 %v7430_v41  ;;  %v8402_v41 = vld [vmem:[#allocation9 + $0x78] ss:$12 sps:$4 sm:$0xff]  }
 0x377   :  { %6916 = vmatprep.subr.bf16.mxu1 %v9382_v29 }
 0x417   :  { %v1227_v7 = vpop.f32.mrf.mxu0  ;;  %v1268_v22 = vpop.f32.mrf.mxu1 }
 0x418   :  { %v1274_v37 = vadd.f32 %v1227_v7, %v354_v42  ;;  %v1288_v26 = vadd.f32 %v8228_v10, %v1268_v22  ;;  %v7442_v42 = vld [vmem:[#allocation9 + $0x80] ss:$12 sps:$4 sm:$0xff]   ;;  %v8408_v22 = vld [vmem:[#allocation9 + $0x64] ss:$12 sps:$4 sm:$0xff]  }
 0x419   :  { %v1229_v19 = vpop.f32.mrf.mxu0  ;;  %v6894_v18 = vpop.f32.mrf.mxu1  ;;  %v8406_v7 = vld [vmem:[#allocation9 + $0x60] ss:$12 sps:$4 sm:$0xff]  }
 0x41a   :  { %v6179_v40 = vmul.f32 -1.442695, %v1274_v37  ;;  %v1275_v14 = vadd.f32 %v1229_v19, %v356_v59  ;;  %v7446_v37 = vld [vmem:[#allocation9 + $0x68] ss:$12 sps:$4 sm:$0xff]   ;;  %v8411_v19 = vld [vmem:[#allocation9 + $0x4c] ss:$12 sps:$4 sm:$0xff]  }
 0x41b   :  { %v1231_v16 = vpop.f32.mrf.mxu0  ;;  %v1271_v21 = vpop.f32.mrf.mxu1  ;;  %v8415_v18 = vld [vmem:[#allocation9 + $0x48] ss:$12 sps:$4 sm:$0xff]  }
 0x41c   :  { %7725 = vpow2.f32 %v6179_v40  ;;  %v6180_v43 = vmul.f32 -1.442695, %v1275_v14  ;;  %v7450_v40 = vld [vmem:[#allocation9 + $0x50] ss:$12 sps:$4 sm:$0xff]   ;;  %v7451_v16 = vld [vmem:[#allocation9 + $0x38] ss:$12 sps:$4 sm:$0xff]  }
 0x41d   :  { %v1232_v23 = vpop.f32.mrf.mxu0  ;;  %v6895_v20 = vpop.f32.mrf.mxu1  ;;  %v7452_v21 = vld [vmem:[#allocation9 + $0x20] ss:$12 sps:$4 sm:$0xff]  }
 0x41e   :  { %7727 = vpow2.f32 %v6180_v43  ;;  %v7453_v23 = vld [vmem:[#allocation9 + $0x8] ss:$12 sps:$4 sm:$0xff]  }
 0x429   :  { %v7726_v24 = vpop.eup %7725 }
 0x42a   :  { %v1282_v25 = vadd.f32 1.0, %v7726_v24 }
 0x42b   :  { %v7728_v47 = vpop.eup %7727 }
 0x42c   :  { %7729 = vrcp.f32 %v1282_v25  ;;  %v1283_v44 = vadd.f32 1.0, %v7728_v47 }
 0x439   :  { %v7730_v28 = vpop.eup %7729 }
 0x43a   :  { %v1289_v33 = vmul.f32 %v7730_v28, %v1288_v26 }
 0x43c   :  { %v1290_v36 = vadd.f32 %v1289_v33, %v424_v30 }
 0x43e   :  { %7731 = vtanh.f32 %v1290_v36 }
 0x43f   :  { %7733 = vrcp.f32 %v1283_v44  ;;  %v429_v44 = vadd.f32 %v8285_v2, %v8223_v9  ;;  %v7454_v2 = vld [vmem:[#allocation9 + $0xb0] ss:$12 sps:$4 sm:$0xff]  }
 0x44b   :  { %v7732_v12 = vpop.eup %7731 }
 0x44c   :  { %v1292_v50 = vsub.f32 %v8341_v15, %v7732_v12  ;;  %v7734_v13 = vpop.eup %7733  ;;  %v7434_v15 = vld [vmem:[#allocation9 + $0xb0] ss:$12 sps:$4 sm:$0xff]  }
 0x44e   :  { %v1293_v17 = vmul.f32 %v7734_v13, %v1292_v50 }
 0x450   :  { %v8379_v27 = vadd.f32 %v7732_v12, %v1293_v17 }
 0x452   :  { %v1295_v31 = vpack.c.bf16 %v8379_v27, %v8379_v27 }
 0x454   :  { %1296 = vst [vmem:[#allocation2 + $0xc] sm:$0xf] %v1295_v31  ;;  %1493 = vmatmul.mubr.bf16.vlgmr.msra.gmra.mxu0 %v1295_v31  ;;  %6913 = vmatmul.mubr.bf16.vlgmr.msra.gmra.mxu1 %v1295_v31 }
 0x455   :  { %1759 = vmatprep.mubr.bf16.mxu0 %v9380_v0  ;;  %6932 = vmatprep.mubr.msk.bf16.mxu1 %vm8078_vm0, %v9382_v29 }
 0x456   :  { %1728 = vmatpush1.bf16.msra.mxu0 %v8388_v32  ;;  %6917 = vmatpush3.bf16.msra.mxu1 %v7434_v15 }
 0x457   :  { %6918 = vmatprep.subr.bf16.mxu1 %v9382_v29  ;;  %1729 = vmatprep.subr.bf16.mxu0 %v8392_v34 }
 0x45a   :  { %1730 = vmatpush1.bf16.msra.mxu0 %v8395_v35  ;;  %6919 = vmatpush3.bf16.msra.mxu1 %v7438_v38 }
 0x45b   :  { %6920 = vmatprep.subr.bf16.mxu1 %v9382_v29  ;;  %1731 = vmatprep.subr.bf16.mxu0 %v8399_v39 }
 0x45e   :  { %1732 = vmatpush1.bf16.msra.mxu0 %v8402_v41  ;;  %6921 = vmatpush3.bf16.msra.mxu1 %v7442_v42 }
 0x45f   :  { %6922 = vmatprep.subr.bf16.mxu1 %v9382_v29  ;;  %1733 = vmatprep.subr.bf16.mxu0 %v8408_v22 }
 0x462   :  { %1734 = vmatpush1.bf16.msra.mxu0 %v8406_v7  ;;  %6923 = vmatpush3.bf16.msra.mxu1 %v7446_v37  ;;  %v7456_v37 = vld [vmem:[#allocation9 + $0x80] ss:$12 sps:$4 sm:$0xff]  }
 0x463   :  { %1735 = vmatprep.subr.bf16.mxu0 %v8411_v19  ;;  %6924 = vmatprep.subr.bf16.mxu1 %v9382_v29 }
 0x466   :  { %1736 = vmatpush1.bf16.msra.mxu0 %v8415_v18  ;;  %6925 = vmatpush3.bf16.msra.mxu1 %v7450_v40  ;;  %v7457_v40 = vld [vmem:[#allocation9 + $0x68] ss:$12 sps:$4 sm:$0xff]  }
 0x467   :  { %1737 = vmatprep.subr.bf16.mxu0 %v8179_v45  ;;  %6926 = vmatprep.subr.bf16.mxu1 %v9382_v29  ;;  %v360_v45 = vadd.f32 %v8271_v53, %v8209_v58 }
 0x46a   :  { %1738 = vmatpush1.bf16.msra.mxu0 %v8181_v46  ;;  %6927 = vmatpush3.bf16.msra.mxu1 %v7451_v16  ;;  %v8458_v16 = vld [vmem:[#allocation9 + $0x30] ss:$12 sps:$4 sm:$0xff]  }
 0x46b   :  { %1739 = vmatprep.subr.bf16.mxu0 %v8183_v48  ;;  %6928 = vmatprep.subr.bf16.mxu1 %v9382_v29 }
 0x46e   :  { %1740 = vmatpush1.bf16.msra.mxu0 %v8190_v49  ;;  %6929 = vmatpush3.bf16.msra.mxu1 %v7452_v21  ;;  %v8460_v21 = vld [vmem:[#allocation9 + $0x34] ss:$12 sps:$4 sm:$0xff]  }
 0x46f   :  { %1741 = vmatprep.subr.bf16.mxu0 %v8193_v51  ;;  %6930 = vmatprep.subr.bf16.mxu1 %v9382_v29 }
 0x472   :  { %1742 = vmatpush1.bf16.msra.mxu0 %v8198_v52  ;;  %6931 = vmatpush3.bf16.msra.mxu1 %v7453_v23  ;;  %v362_v52 = vadd.f32 %v8273_v54, %v8215_v63  ;;  %v8462_v23 = vld [vmem:[#allocation9 + $0x1c] ss:$12 sps:$4 sm:$0xff]  }
 0x473   :  { %1994 = vmatprep.subr.bf16.mxu0 %v8386_v55  ;;  %6936 = vmatprep.subr.bf16.mxu1 %v9382_v29 }
 0x514   :  { %v1494_v46 = vpop.f32.mrf.mxu0  ;;  %v1535_v48 = vpop.f32.mrf.mxu1 }
 0x515   :  { %v1541_v20 = vadd.f32 %v1494_v46, %v360_v45  ;;  %v1555_v33 = vadd.f32 %v8228_v10, %v1535_v48  ;;  %v7458_v45 = vld [vmem:[#allocation9 + $0x50] ss:$12 sps:$4 sm:$0xff]   ;;  %v8467_v46 = vld [vmem:[#allocation9 + $0x18] ss:$12 sps:$4 sm:$0xff]  }
 0x516   :  { %v1496_v49 = vpop.f32.mrf.mxu0  ;;  %v6914_v59 = vpop.f32.mrf.mxu1  ;;  %v8470_v48 = vld [vmem:[#allocation9 + $0x4] ss:$12 sps:$4 sm:$0xff]  }
 0x517   :  { %v6205_v14 = vmul.f32 -1.442695, %v1541_v20  ;;  %v1542_v47 = vadd.f32 %v1496_v49, %v362_v52  ;;  %v7462_v20 = vld [vmem:[#allocation9 + $0x38] ss:$12 sps:$4 sm:$0xff]   ;;  %v8474_v49 = vld [vmem:[#allocation9] ss:$12 sps:$4 sm:$0xff]  }
 0x518   :  { %v1498_v43 = vpop.f32.mrf.mxu0  ;;  %v1538_v51 = vpop.f32.mrf.mxu1  ;;  %v7466_v59 = vld [vmem:[#allocation9 + $0x20] ss:$12 sps:$4 sm:$0xff]  }
 0x519   :  { %7735 = vpow2.f32 %v6205_v14  ;;  %v6206_v26 = vmul.f32 -1.442695, %v1542_v47  ;;  %v7470_v14 = vld [vmem:[#allocation9 + $0x8] ss:$12 sps:$4 sm:$0xff]   ;;  %v364_v43 = vadd.f32 %v8277_v57, %v8209_v58 }
 0x51a   :  { %v1499_v24 = vpop.f32.mrf.mxu0  ;;  %v6915_v25 = vpop.f32.mrf.mxu1 }
 0x51b   :  { %7737 = vpow2.f32 %v6206_v26 }
 0x526   :  { %v7736_v28 = vpop.eup %7735 }
 0x527   :  { %v1549_v30 = vadd.f32 1.0, %v7736_v28 }
 0x528   :  { %v7738_v53 = vpop.eup %7737 }
 0x529   :  { %7739 = vrcp.f32 %v1549_v30  ;;  %v1550_v13 = vadd.f32 1.0, %v7738_v53 }
 0x536   :  { %v7740_v36 = vpop.eup %7739 }
 0x537   :  { %v1556_v12 = vmul.f32 %v7740_v36, %v1555_v33  ;;  %v366_v33 = vadd.f32 %v8279_v60, %v8215_v63 }
 0x539   :  { %v1557_v50 = vadd.f32 %v1556_v12, %v429_v44 }
 0x53b   :  { %7741 = vtanh.f32 %v1557_v50 }
 0x53c   :  { %7743 = vrcp.f32 %v1550_v13 }
 0x548   :  { %v7742_v17 = vpop.eup %7741 }
 0x549   :  { %v1559_v54 = vsub.f32 %v8379_v27, %v7742_v17  ;;  %v7744_v31 = vpop.eup %7743  ;;  %v7455_v27 = vld [vmem:[#allocation9 + $0x98] ss:$12 sps:$4 sm:$0xff]  }
 0x54b   :  { %v1560_v15 = vmul.f32 %v7744_v31, %v1559_v54  ;;  %v432_v54 = vadd.f32 %v8293_v8, %v8223_v9  ;;  %v7472_v8 = vld [vmem:[#allocation9 + $0x98] ss:$12 sps:$4 sm:$0xff]  }
 0x54d   :  { %v8439_v38 = vadd.f32 %v7742_v17, %v1560_v15 }
 0x54f   :  { %v1562_v42 = vpack.c.bf16 %v8439_v38, %v8439_v38 }
 0x551   :  { %1563 = vst [vmem:[#allocation2 + $0x10] sm:$0xf] %v1562_v42  ;;  %1760 = vmatmul.mubr.bf16.vlgmr.msra.gmra.mxu0 %v1562_v42  ;;  %6933 = vmatmul.mubr.bf16.vlgmr.msra.gmra.mxu1 %v1562_v42 }
 0x552   :  { %1995 = vmatpush1.bf16.msra.mxu0 %v8388_v32  ;;  %2026 = vmatprep.mubr.bf16.mxu0 %v9380_v0 }
 0x553   :  { %1996 = vmatprep.subr.bf16.mxu0 %v8392_v34  ;;  %6952 = vmatprep.mubr.msk.bf16.mxu1 %vm8078_vm0, %v9382_v29 }
 0x554   :  { %6937 = vmatpush3.bf16.msra.mxu1 %v7454_v2 }
 0x555   :  { %6938 = vmatprep.subr.bf16.mxu1 %v9382_v29 }
 0x556   :  { %1997 = vmatpush1.bf16.msra.mxu0 %v8395_v35 }
 0x557   :  { %1998 = vmatprep.subr.bf16.mxu0 %v8399_v39 }
 0x558   :  { %6939 = vmatpush3.bf16.msra.mxu1 %v7455_v27 }
 0x559   :  { %6940 = vmatprep.subr.bf16.mxu1 %v9382_v29 }
 0x55a   :  { %1999 = vmatpush1.bf16.msra.mxu0 %v8402_v41 }
 0x55b   :  { %2000 = vmatprep.subr.bf16.mxu0 %v8408_v22 }
 0x55c   :  { %6941 = vmatpush3.bf16.msra.mxu1 %v7456_v37 }
 0x55d   :  { %6942 = vmatprep.subr.bf16.mxu1 %v9382_v29 }
 0x55e   :  { %2001 = vmatpush1.bf16.msra.mxu0 %v8406_v7 }
 0x55f   :  { %2002 = vmatprep.subr.bf16.mxu0 %v8411_v19 }
 0x560   :  { %6943 = vmatpush3.bf16.msra.mxu1 %v7457_v40 }
 0x561   :  { %6944 = vmatprep.subr.bf16.mxu1 %v9382_v29 }
 0x562   :  { %2003 = vmatpush1.bf16.msra.mxu0 %v8415_v18 }
 0x563   :  { %2004 = vmatprep.subr.bf16.mxu0 %v8460_v21 }
 0x564   :  { %6945 = vmatpush3.bf16.msra.mxu1 %v7458_v45 }
 0x565   :  { %6946 = vmatprep.subr.bf16.mxu1 %v9382_v29 }
 0x566   :  { %2005 = vmatpush1.bf16.msra.mxu0 %v8458_v16 }
 0x567   :  { %2006 = vmatprep.subr.bf16.mxu0 %v8462_v23 }
 0x568   :  { %6947 = vmatpush3.bf16.msra.mxu1 %v7462_v20 }
 0x569   :  { %6948 = vmatprep.subr.bf16.mxu1 %v9382_v29 }
 0x56a   :  { %2007 = vmatpush1.bf16.msra.mxu0 %v8467_v46 }
 0x56b   :  { %2008 = vmatprep.subr.bf16.mxu0 %v8470_v48 }
 0x56c   :  { %6949 = vmatpush3.bf16.msra.mxu1 %v7466_v59 }
 0x56d   :  { %6950 = vmatprep.subr.bf16.mxu1 %v9382_v29 }
 0x56e   :  { %2009 = vmatpush1.bf16.msra.mxu0 %v8474_v49 }
 0x56f   :  { %2261 = vmatprep.subr.bf16.mxu0 %v8386_v55 }
 0x570   :  { %6951 = vmatpush3.bf16.msra.mxu1 %v7470_v14 }
 0x571   :  { %6956 = vmatprep.subr.bf16.mxu1 %v9382_v29 }
 0x611   :  { %v1761_v51 = vpop.f32.mrf.mxu0  ;;  %v1802_v24 = vpop.f32.mrf.mxu1 }
 0x612   :  { %v1808_v25 = vadd.f32 %v1761_v51, %v364_v43  ;;  %v1822_v13 = vadd.f32 %v8228_v10, %v1802_v24  ;;  %v7471_v10 = vld [vmem:[#allocation9 + $0xb0] ss:$12 sps:$4 sm:$0xff]   ;;  %v372_v43 = vadd.f32 %v8287_v3, %v8215_v63 }
 0x613   :  { %v1763_v52 = vpop.f32.mrf.mxu0  ;;  %v6934_v47 = vpop.f32.mrf.mxu1 }
 0x614   :  { %v6231_v26 = vmul.f32 -1.442695, %v1808_v25  ;;  %v1809_v36 = vadd.f32 %v1763_v52, %v366_v33  ;;  %v8526_v47 = vld [vmem:[%s9376_s4] ss:$0 sm:$0xff] }
 0x615   :  { %v1765_v28 = vpop.f32.mrf.mxu0  ;;  %v1805_v30 = vpop.f32.mrf.mxu1 }
 0x616   :  { %7745 = vpow2.f32 %v6231_v26  ;;  %v6232_v44 = vmul.f32 -1.442695, %v1809_v36  ;;  %v437_v30 = vadd.f32 %v8281_v62, %v8223_v9  ;;  %v7483_v62 = vld [vmem:[#allocation2] sm:$0xff]  }
 0x617   :  { %v1766_v55 = vpop.f32.mrf.mxu0  ;;  %v6935_v53 = vpop.f32.mrf.mxu1 }
 0x618   :  { %7747 = vpow2.f32 %v6232_v44 }
 0x623   :  { %v7746_v12 = vpop.eup %7745 }
 0x624   :  { %v1816_v50 = vadd.f32 1.0, %v7746_v12 }
 0x625   :  { %v7748_v57 = vpop.eup %7747 }
 0x626   :  { %7749 = vrcp.f32 %v1816_v50  ;;  %v1817_v42 = vadd.f32 1.0, %v7748_v57  ;;  %v7479_v57 = vld [vmem:[#allocation7 + $0x168] ss:$12 sps:$4 sm:$0xff]  }
 0x633   :  { %v7750_v17 = vpop.eup %7749 }
 0x634   :  { %v1823_v31 = vmul.f32 %v7750_v17, %v1822_v13  ;;  %v7486_v17 = vld [vmem:[#allocation7 + $0x154] ss:$12 sps:$4 sm:$0xff]  }
 0x636   :  { %v1824_v15 = vadd.f32 %v1823_v31, %v432_v54  ;;  %v7487_v54 = vld [vmem:[#allocation7 + $0x158] ss:$12 sps:$4 sm:$0xff]   ;;  %v7484_v31 = vld [vmem:[#allocation7 + $0x150] ss:$12 sps:$4 sm:$0xff]  }
 0x638   :  { %7751 = vtanh.f32 %v1824_v15  ;;  %v7490_v15 = vld [vmem:[#allocation7 + $0x13c] ss:$12 sps:$4 sm:$0xff]  }
 0x639   :  { %7753 = vrcp.f32 %v1817_v42  ;;  %v7491_v42 = vld [vmem:[#allocation7 + $0x140] ss:$12 sps:$4 sm:$0xff]  }
 0x645   :  { %v7752_v2 = vpop.eup %7751 }
 0x646   :  { %v1826_v60 = vsub.f32 %v8439_v38, %v7752_v2  ;;  %v7754_v27 = vpop.eup %7753 }
 0x648   :  { %v1827_v37 = vmul.f32 %v7754_v27, %v1826_v60  ;;  %v7494_v60 = vld [vmem:[#allocation7 + $0x124] ss:$12 sps:$4 sm:$0xff]   ;;  %v7495_v27 = vld [vmem:[#allocation7 + $0x128] ss:$12 sps:$4 sm:$0xff]  }
 0x64a   :  { %v8490_v40 = vadd.f32 %v7752_v2, %v1827_v37  ;;  %v7488_v2 = vld [vmem:[#allocation7 + $0x138] ss:$12 sps:$4 sm:$0xff]   ;;  %v7492_v37 = vld [vmem:[#allocation7 + $0x120] ss:$12 sps:$4 sm:$0xff]  }
 0x64c   :  { %v1829_v45 = vpack.c.bf16 %v8490_v40, %v8490_v40 }
 0x64e   :  { %1830 = vst [vmem:[#allocation2 + $0x14] sm:$0xf] %v1829_v45  ;;  %2027 = vmatmul.mubr.bf16.vlgmr.msra.gmra.mxu0 %v1829_v45  ;;  %6953 = vmatmul.mubr.bf16.vlgmr.msra.gmra.mxu1 %v1829_v45  ;;  %v7499_v45 = vld [vmem:[#allocation7 + $0x110] ss:$12 sps:$4 sm:$0xff]  }
 0x64f   :  { %2262 = vmatpush1.bf16.msra.mxu0 %v8388_v32  ;;  %2293 = vmatprep.mubr.bf16.mxu0 %v9380_v0  ;;  %v7473_v32 = vld [vmem:[#allocation9 + $0x80] ss:$12 sps:$4 sm:$0xff]  }
 0x650   :  { %2263 = vmatprep.subr.bf16.mxu0 %v8392_v34  ;;  %6972 = vmatprep.mubr.msk.bf16.mxu1 %vm8078_vm0, %v9382_v29  ;;  %v7474_v34 = vld [vmem:[#allocation9 + $0x68] ss:$12 sps:$4 sm:$0xff]  }
 0x651   :  { %6957 = vmatpush3.bf16.msra.mxu1 %v7471_v10  ;;  %v7496_v10 = vld [vmem:[#allocation7 + $0x108] ss:$12 sps:$4 sm:$0xff]  }
 0x652   :  { %6958 = vmatprep.subr.bf16.mxu1 %v9382_v29 }
 0x653   :  { %2264 = vmatpush1.bf16.msra.mxu0 %v8395_v35  ;;  %v7475_v35 = vld [vmem:[#allocation9 + $0x50] ss:$12 sps:$4 sm:$0xff]  }
 0x654   :  { %2265 = vmatprep.subr.bf16.mxu0 %v8399_v39  ;;  %v7481_v39 = vld [vmem:[#allocation7 + $0x16c] ss:$12 sps:$4 sm:$0xff]  }
 0x655   :  { %6959 = vmatpush3.bf16.msra.mxu1 %v7472_v8  ;;  %v7502_v8 = vld [vmem:[#allocation7 + $0xf4] ss:$12 sps:$4 sm:$0xff]  }
 0x656   :  { %6960 = vmatprep.subr.bf16.mxu1 %v9382_v29 }
 0x657   :  { %2266 = vmatpush1.bf16.msra.mxu0 %v8402_v41  ;;  %v7476_v41 = vld [vmem:[#allocation9 + $0x38] ss:$12 sps:$4 sm:$0xff]  }
 0x658   :  { %2267 = vmatprep.subr.bf16.mxu0 %v8408_v22  ;;  %v7478_v22 = vld [vmem:[#allocation9 + $0x8] ss:$12 sps:$4 sm:$0xff]  }
 0x659   :  { %6961 = vmatpush3.bf16.msra.mxu1 %v7473_v32  ;;  %v7503_v32 = vld [vmem:[#allocation7 + $0xf8] ss:$12 sps:$4 sm:$0xff]  }
 0x65a   :  { %6962 = vmatprep.subr.bf16.mxu1 %v9382_v29 }
 0x65b   :  { %2268 = vmatpush1.bf16.msra.mxu0 %v8406_v7  ;;  %v7477_v7 = vld [vmem:[#allocation9 + $0x20] ss:$12 sps:$4 sm:$0xff]  }
 0x65c   :  { %2269 = vmatprep.subr.bf16.mxu0 %v8411_v19  ;;  %v7482_v19 = vld [vmem:[#allocation7 + $0x170] ss:$12 sps:$4 sm:$0xff]  }
 0x65d   :  { %6963 = vmatpush3.bf16.msra.mxu1 %v7474_v34  ;;  %v7500_v34 = vld [vmem:[#allocation7 + $0xf0] ss:$12 sps:$4 sm:$0xff]  }
 0x65e   :  { %6964 = vmatprep.subr.bf16.mxu1 %v9382_v29 }
 0x65f   :  { %2270 = vmatpush1.bf16.msra.mxu0 %v8415_v18  ;;  %v370_v18 = vadd.f32 %v8283_v1, %v8209_v58 }
 0x660   :  { %2271 = vmatprep.subr.bf16.mxu0 %v8460_v21 }
 0x661   :  { %6965 = vmatpush3.bf16.msra.mxu1 %v7475_v35  ;;  %v7506_v35 = vld [vmem:[#allocation7 + $0xdc] ss:$12 sps:$4 sm:$0xff]  }
 0x662   :  { %6966 = vmatprep.subr.bf16.mxu1 %v9382_v29 }
 0x663   :  { %2272 = vmatpush1.bf16.msra.mxu0 %v8458_v16 }
 0x664   :  { %2273 = vmatprep.subr.bf16.mxu0 %v8462_v23 }
 0x665   :  { %6967 = vmatpush3.bf16.msra.mxu1 %v7476_v41  ;;  %v7504_v41 = vld [vmem:[#allocation7 + $0xd8] ss:$12 sps:$4 sm:$0xff]  }
 0x666   :  { %6968 = vmatprep.subr.bf16.mxu1 %v9382_v29 }
 0x667   :  { %2274 = vmatpush1.bf16.msra.mxu0 %v8467_v46 }
 0x668   :  { %2275 = vmatprep.subr.bf16.mxu0 %v8470_v48 }
 0x669   :  { %6969 = vmatpush3.bf16.msra.mxu1 %v7477_v7  ;;  %v7510_v7 = vld [vmem:[#allocation7 + $0xc4] ss:$12 sps:$4 sm:$0xff]  }
 0x66a   :  { %6970 = vmatprep.subr.bf16.mxu1 %v9382_v29 }
 0x66b   :  { %2276 = vmatpush1.bf16.msra.mxu0 %v8474_v49 }
 0x66c   :  { %2576 = vmatprep.subr.bf16.mxu0 %v7481_v39  ;;  %v7507_v39 = vld [vmem:[#allocation7 + $0xe0] ss:$12 sps:$4 sm:$0xff]  }
 0x66d   :  { %6971 = vmatpush3.bf16.msra.mxu1 %v7478_v22  ;;  %v7511_v22 = vld [vmem:[#allocation7 + $0xc8] ss:$12 sps:$4 sm:$0xff]  }
 0x66e   :  { %6976 = vmatprep.subr.bf16.mxu1 %v7482_v19 }
 0x70e   :  { %v2028_v38 = vpop.f32.mrf.mxu0  ;;  %v2069_v16 = vpop.f32.mrf.mxu1 }
 0x70f   :  { %v2075_v21 = vadd.f32 %v2028_v38, %v370_v18  ;;  %v2089_v26 = vadd.f32 %v8526_v47, %v2069_v16  ;;  %v7512_v18 = vld [vmem:[#allocation2 + $0x8] sm:$0xff]   ;;  %v7513_v38 = vld [vmem:[#allocation2 + $0x10] sm:$0xff]  }
 0x710   :  { %v2030_v23 = vpop.f32.mrf.mxu0  ;;  %v6954_v46 = vpop.f32.mrf.mxu1  ;;  %v8541_v16 = vld [vmem:[#allocation9 + $0x16c] ss:$12 sps:$4 sm:$0xff]  }
 0x711   :  { %v6257_v48 = vmul.f32 -1.442695, %v2075_v21  ;;  %v2076_v51 = vadd.f32 %v2030_v23, %v372_v43  ;;  %v8543_v21 = vld [vmem:[#allocation9 + $0x168] ss:$12 sps:$4 sm:$0xff]   ;;  %v7517_v23 = vld [vmem:[#allocation9 + $0x170] ss:$12 sps:$4 sm:$0xff]  }
 0x712   :  { %v2032_v20 = vpop.f32.mrf.mxu0  ;;  %v2072_v49 = vpop.f32.mrf.mxu1  ;;  %v8547_v46 = vld [vmem:[#allocation9 + $0x154] ss:$12 sps:$4 sm:$0xff]   ;;  %v8561_v43 = vld [vmem:[#allocation9 + $0x124] ss:$12 sps:$4 sm:$0xff]  }
 0x713   :  { %7755 = vpow2.f32 %v6257_v48  ;;  %v6258_v24 = vmul.f32 -1.442695, %v2076_v51  ;;  %v8550_v48 = vld [vmem:[#allocation9 + $0x150] ss:$12 sps:$4 sm:$0xff]   ;;  %v7521_v20 = vld [vmem:[#allocation9 + $0x158] ss:$12 sps:$4 sm:$0xff]  }
 0x714   :  { %v2033_v59 = vpop.f32.mrf.mxu0  ;;  %v6955_v14 = vpop.f32.mrf.mxu1  ;;  %v8554_v49 = vld [vmem:[#allocation9 + $0x13c] ss:$12 sps:$4 sm:$0xff]   ;;  %v8564_v51 = vld [vmem:[#allocation9 + $0x120] ss:$12 sps:$4 sm:$0xff]  }
 0x715   :  { %7757 = vpow2.f32 %v6258_v24  ;;  %v8557_v59 = vld [vmem:[#allocation9 + $0x138] ss:$12 sps:$4 sm:$0xff]   ;;  %v7525_v14 = vld [vmem:[#allocation9 + $0x140] ss:$12 sps:$4 sm:$0xff]   ;;  %v7530_v24 = vld [vmem:[#allocation9 + $0x128] ss:$12 sps:$4 sm:$0xff]  }
 0x720   :  { %v7756_v25 = vpop.eup %7755 }
 0x721   :  { %v2083_v52 = vadd.f32 1.0, %v7756_v25  ;;  %v8567_v25 = vld [vmem:[#allocation9 + $0x10c] ss:$12 sps:$4 sm:$0xff]  }
 0x722   :  { %v7758_v1 = vpop.eup %7757 }
 0x723   :  { %7759 = vrcp.f32 %v2083_v52  ;;  %v2084_v53 = vadd.f32 1.0, %v7758_v1  ;;  %v8570_v52 = vld [vmem:[#allocation9 + $0x108] ss:$12 sps:$4 sm:$0xff]   ;;  %v7534_v1 = vld [vmem:[#allocation9 + $0x110] ss:$12 sps:$4 sm:$0xff]  }
 0x730   :  { %v7760_v28 = vpop.eup %7759 }
 0x731   :  { %v2090_v55 = vmul.f32 %v7760_v28, %v2089_v26  ;;  %v8574_v26 = vld [vmem:[#allocation9 + $0xf4] ss:$12 sps:$4 sm:$0xff]   ;;  %v8577_v28 = vld [vmem:[#allocation9 + $0xf0] ss:$12 sps:$4 sm:$0xff]  }
 0x733   :  { %v2091_v3 = vadd.f32 %v2090_v55, %v437_v30  ;;  %v7538_v30 = vld [vmem:[#allocation9 + $0xf8] ss:$12 sps:$4 sm:$0xff]   ;;  %v8581_v55 = vld [vmem:[#allocation9 + $0xdc] ss:$12 sps:$4 sm:$0xff]  }
 0x735   :  { %7761 = vtanh.f32 %v2091_v3  ;;  %v8584_v3 = vld [vmem:[#allocation9 + $0xd8] ss:$12 sps:$4 sm:$0xff]  }
 0x736   :  { %7763 = vrcp.f32 %v2084_v53  ;;  %v7542_v53 = vld [vmem:[#allocation9 + $0xe0] ss:$12 sps:$4 sm:$0xff]  }
 0x742   :  { %v7762_v33 = vpop.eup %7761 }
 0x743   :  { %v2093_v36 = vsub.f32 %v8490_v40, %v7762_v33  ;;  %v7764_v44 = vpop.eup %7763  ;;  %v7498_v40 = vld [vmem:[#allocation7 + $0x10c] ss:$12 sps:$4 sm:$0xff]  }
 0x745   :  { %v2094_v12 = vmul.f32 %v7764_v44, %v2093_v36  ;;  %v8591_v36 = vld [vmem:[#allocation9 + $0xc0] ss:$12 sps:$4 sm:$0xff]   ;;  %v7546_v44 = vld [vmem:[#allocation9 + $0xc8] ss:$12 sps:$4 sm:$0xff]  }
 0x747   :  { %v8532_v50 = vadd.f32 %v7762_v33, %v2094_v12  ;;  %v8588_v33 = vld [vmem:[#allocation9 + $0xc4] ss:$12 sps:$4 sm:$0xff]   ;;  %v374_v12 = vadd.f32 %v8291_v5, %v8209_v58 }
 0x748   :  { %v2407_v58 = vld [vmem:[#allocation10 + $0x3] sm:$0x7] }
 0x749   :  { %v2096_v13 = vpack.c.bf16 %v8532_v50, %v8532_v50  ;;  %v8603_v5 = vrot.slane %v2407_v58, %v8206_v56 }
 0x74b   :  { %2097 = vst [vmem:[#allocation2 + $0x18] sm:$0xf] %v2096_v13  ;;  %2294 = vmatmul.mubr.bf16.vlgmr.msra.gmra.mxu0 %v2096_v13  ;;  %6973 = vmatmul.mubr.bf16.vlgmr.msra.gmra.mxu1 %v2096_v13 }
 0x74c   :  { %2577 = vmatpush1.bf16.msra.mxu0 %v7479_v57  ;;  %6977 = vmatpush3.bf16.msra.mxu1 %v7482_v19  ;;  %v7508_v19 = vld [vmem:[#allocation7 + $0xc0] ss:$12 sps:$4 sm:$0xff]  }
 0x74d   :  { %6992 = vmatprep.mubr.bf16.mxu1 %v7483_v62  ;;  %2578 = vmatprep.subr.bf16.mxu0 %v7486_v17 }
 0x74e   :  { %6978 = vmatprep.subr.bf16.mxu1 %v7487_v54  ;;  %2608 = vmatprep.mubr.bf16.mxu0 %v9380_v0 }
 0x750   :  { %2579 = vmatpush1.bf16.msra.mxu0 %v7484_v31  ;;  %6979 = vmatpush3.bf16.msra.mxu1 %v7487_v54 }
 0x751   :  { %2580 = vmatprep.subr.bf16.mxu0 %v7490_v15  ;;  %6980 = vmatprep.subr.bf16.mxu1 %v7491_v42 }
 0x754   :  { %2581 = vmatpush1.bf16.msra.mxu0 %v7488_v2  ;;  %6981 = vmatpush3.bf16.msra.mxu1 %v7491_v42 }
 0x755   :  { %2582 = vmatprep.subr.bf16.mxu0 %v7494_v60  ;;  %6982 = vmatprep.subr.bf16.mxu1 %v7495_v27 }
 0x758   :  { %2583 = vmatpush1.bf16.msra.mxu0 %v7492_v37  ;;  %6983 = vmatpush3.bf16.msra.mxu1 %v7495_v27  ;;  %v376_v27 = vadd.f32 %v8295_v11, %v8215_v63  ;;  %v440_v63 = vadd.f32 %v8289_v4, %v8223_v9 }
 0x759   :  { %2584 = vmatprep.subr.bf16.mxu0 %v7498_v40  ;;  %6984 = vmatprep.subr.bf16.mxu1 %v7499_v45 }
 0x75c   :  { %2585 = vmatpush1.bf16.msra.mxu0 %v7496_v10  ;;  %6985 = vmatpush3.bf16.msra.mxu1 %v7499_v45 }
 0x75d   :  { %2586 = vmatprep.subr.bf16.mxu0 %v7502_v8  ;;  %6986 = vmatprep.subr.bf16.mxu1 %v7503_v32 }
 0x760   :  { %2587 = vmatpush1.bf16.msra.mxu0 %v7500_v34  ;;  %6987 = vmatpush3.bf16.msra.mxu1 %v7503_v32 }
 0x761   :  { %2588 = vmatprep.subr.bf16.mxu0 %v7506_v35  ;;  %6988 = vmatprep.subr.bf16.mxu1 %v7507_v39 }
 0x764   :  { %2589 = vmatpush1.bf16.msra.mxu0 %v7504_v41  ;;  %6989 = vmatpush3.bf16.msra.mxu1 %v7507_v39 }
 0x765   :  { %2590 = vmatprep.subr.bf16.mxu0 %v7510_v7  ;;  %6990 = vmatprep.subr.bf16.mxu1 %v7511_v22 }
 0x768   :  { %2591 = vmatpush1.bf16.msra.mxu0 %v7508_v19  ;;  %6991 = vmatpush3.bf16.msra.mxu1 %v7511_v22  ;;  %v8610_v19 = vrot.slane %v2407_v58, %v8212_v61 }
 0x769   :  { %7000 = vmatprep.subr.bf16.mxu1 %v9382_v29  ;;  %2932 = vmatprep.subr.bf16.mxu0 %v8541_v16 }
 0x76b   :  { %2609 = vmatmul.mubr.bf16.vlgmr.msra.gmra.mxu0 %v7483_v62  ;;  %6993 = vmatmul.mubr.bf16.vlgmr.msra.gmra.mxu1 %v7512_v18 }
 0x76c   :  { %6996 = vmatprep.mubr.bf16.mxu1 %v7513_v38  ;;  %2618 = vmatprep.mubr.bf16.mxu0 %v9380_v0 }
 0x76d   :  { %2933 = vmatpush1.bf16.msra.mxu0 %v8543_v21  ;;  %7001 = vmatpush3.bf16.msra.mxu1 %v7517_v23 }
 0x76e   :  { %7002 = vmatprep.subr.bf16.mxu1 %v9382_v29  ;;  %2934 = vmatprep.subr.bf16.mxu0 %v8547_v46 }
 0x771   :  { %2935 = vmatpush1.bf16.msra.mxu0 %v8550_v48  ;;  %7003 = vmatpush3.bf16.msra.mxu1 %v7521_v20 }
 0x772   :  { %7004 = vmatprep.subr.bf16.mxu1 %v9382_v29  ;;  %2936 = vmatprep.subr.bf16.mxu0 %v8554_v49 }
 0x773   :  { %2619 = vmatmul.mubr.bf16.gmra.mxu0 %v7512_v18 }
 0x774   :  { %2628 = vmatprep.mubr.bf16.mxu0 %v9380_v0 }
 0x775   :  { %2937 = vmatpush1.bf16.msra.mxu0 %v8557_v59  ;;  %7005 = vmatpush3.bf16.msra.mxu1 %v7525_v14 }
 0x776   :  { %7006 = vmatprep.subr.bf16.mxu1 %v9382_v29  ;;  %2938 = vmatprep.subr.bf16.mxu0 %v8561_v43 }
 0x779   :  { %2939 = vmatpush1.bf16.msra.mxu0 %v8564_v51  ;;  %7007 = vmatpush3.bf16.msra.mxu1 %v7530_v24 }
 0x77a   :  { %2940 = vmatprep.subr.bf16.mxu0 %v8567_v25  ;;  %7008 = vmatprep.subr.bf16.mxu1 %v9382_v29 }
 0x77b   :  { %2629 = vmatmul.mubr.bf16.gmra.mxu0 %v7513_v38 }
 0x77c   :  { %2638 = vmatprep.mubr.bf16.mxu0 %v9380_v0 }
 0x77d   :  { %2941 = vmatpush1.bf16.msra.mxu0 %v8570_v52  ;;  %7009 = vmatpush3.bf16.msra.mxu1 %v7534_v1 }
 0x77e   :  { %2942 = vmatprep.subr.bf16.mxu0 %v8574_v26  ;;  %7010 = vmatprep.subr.bf16.mxu1 %v9382_v29 }
 0x781   :  { %2943 = vmatpush1.bf16.msra.mxu0 %v8577_v28  ;;  %7011 = vmatpush3.bf16.msra.mxu1 %v7538_v30 }
 0x782   :  { %2944 = vmatprep.subr.bf16.mxu0 %v8581_v55  ;;  %7012 = vmatprep.subr.bf16.mxu1 %v9382_v29 }
 0x785   :  { %2945 = vmatpush1.bf16.msra.mxu0 %v8584_v3  ;;  %7013 = vmatpush3.bf16.msra.mxu1 %v7542_v53 }
 0x786   :  { %2946 = vmatprep.subr.bf16.mxu0 %v8588_v33  ;;  %7014 = vmatprep.subr.bf16.mxu1 %v9382_v29 }
 0x789   :  { %2947 = vmatpush1.bf16.msra.mxu0 %v8591_v36  ;;  %7015 = vmatpush3.bf16.msra.mxu1 %v7546_v44 }
 0x78a   :  { %3199 = vmatprep.subr.bf16.mxu0 %v8541_v16  ;;  %7020 = vmatprep.subr.bf16.mxu1 %v9382_v29 }
 0x80b   :  { %v2295_v57 = vpop.f32.mrf.mxu0  ;;  %v2336_v13 = vpop.f32.mrf.mxu1 }
 0x80c   :  { %v2342_v17 = vadd.f32 %v2295_v57, %v374_v12  ;;  %v2356_v34 = vadd.f32 %v8526_v47, %v2336_v13  ;;  %v8619_v57 = vld [vmem:[%s9376_s4 + $0x1] ss:$0 sm:$0xff]  ;;  %v8622_v13 = vrot.slane %v2407_v58, %v8218_v6  ;;  %v7550_v58 = vld [vmem:[#allocation9 + $0x128] ss:$12 sps:$4 sm:$0xff]  }
 0x80d   :  { %v2297_v54 = vpop.f32.mrf.mxu0  ;;  %v6974_v62 = vpop.f32.mrf.mxu1 }
 0x80e   :  { %v6283_v31 = vmul.f32 -1.442695, %v2342_v17  ;;  %v2343_v37 = vadd.f32 %v2297_v54, %v376_v27 }
 0x80f   :  { %v2299_v15 = vpop.f32.mrf.mxu0  ;;  %v2339_v42 = vpop.f32.mrf.mxu1 }
 0x810   :  { %7765 = vpow2.f32 %v6283_v31  ;;  %v6284_v40 = vmul.f32 -1.442695, %v2343_v37 }
 0x811   :  { %v2300_v2 = vpop.f32.mrf.mxu0  ;;  %v6975_v60 = vpop.f32.mrf.mxu1 }
 0x812   :  { %7767 = vpow2.f32 %v6284_v40  ;;  %v7547_v40 = vld [vmem:[#allocation9 + $0x170] ss:$12 sps:$4 sm:$0xff]  }
 0x81d   :  { %v7766_v45 = vpop.eup %7765 }
 0x81e   :  { %v2350_v10 = vadd.f32 1.0, %v7766_v45  ;;  %v7548_v45 = vld [vmem:[#allocation9 + $0x158] ss:$12 sps:$4 sm:$0xff]  }
 0x81f   :  { %v7768_v32 = vpop.eup %7767 }
 0x820   :  { %7769 = vrcp.f32 %v2350_v10  ;;  %v2351_v22 = vadd.f32 1.0, %v7768_v32  ;;  %v7549_v10 = vld [vmem:[#allocation9 + $0x140] ss:$12 sps:$4 sm:$0xff]   ;;  %v7552_v32 = vld [vmem:[#allocation9 + $0xf8] ss:$12 sps:$4 sm:$0xff]  }
 0x82b   :  { %v2610_v8 = vpop.f32.mrf.mxu0  ;;  %v8614_v53 = vpop.f32.mrf.mxu1 }
 0x82c   :  { %v2611_v35 = vadd.f32 %v2610_v8, %v8603_v5  ;;  %v7551_v8 = vld [vmem:[#allocation9 + $0x110] ss:$12 sps:$4 sm:$0xff]  }
 0x82d   :  { %v7770_v39 = vpop.eup %7769  ;;  %v2612_v18 = vpop.f32.mrf.mxu0 }
 0x82e   :  { %v2357_v11 = vmul.f32 %v7770_v39, %v2356_v34  ;;  %v6315_v41 = vmul.f32 -1.442695, %v2611_v35  ;;  %v2613_v38 = vadd.f32 %v2612_v18, %v8610_v19  ;;  %v2683_v12 = vpop.f32.mrf.mxu1  ;;  %v7553_v34 = vld [vmem:[#allocation9 + $0xe0] ss:$12 sps:$4 sm:$0xff]   ;;  %v7554_v35 = vld [vmem:[#allocation9 + $0xc8] ss:$12 sps:$4 sm:$0xff]  }
 0x82f   :  { %v2684_v54 = vadd.f32 %v2683_v12, %v8622_v13  ;;  %v2614_v39 = vpop.f32.mrf.mxu0 }
 0x830   :  { %v2358_v7 = vadd.f32 %v2357_v11, %v440_v63  ;;  %7771 = vpow2.f32 %v6315_v41  ;;  %v6316_v47 = vmul.f32 -1.442695, %v2613_v38 }
 0x831   :  { %v2616_v63 = vpop.f32.mrf.mxu0 }
 0x832   :  { %7773 = vtanh.f32 %v2358_v7 }
 0x833   :  { %7775 = vrcp.f32 %v2351_v22  ;;  %v8660_v11 = vpop.f32.mrf.mxu0 }
 0x834   :  { %7777 = vpow2.f32 %v6316_v47  ;;  %v8672_v47 = vpop.f32.mrf.mxu1 }
 0x835   :  { %v8662_v41 = vpop.f32.mrf.mxu0 }
 0x837   :  { %v8664_v7 = vpop.f32.mrf.mxu0 }
 0x839   :  { %v8666_v22 = vpop.f32.mrf.mxu0 }
 0x83b   :  { %v8668_v18 = vpop.f32.mrf.mxu0 }
 0x83d   :  { %v7772_v23 = vpop.eup %7771  ;;  %v8670_v38 = vpop.f32.mrf.mxu0 }
 0x83e   :  { %v2755_v20 = vadd.f32 1.0, %v7772_v23 }
 0x83f   :  { %v7774_v14 = vpop.eup %7773  ;;  %v8674_v23 = vpop.f32.mrf.mxu0 }
 0x840   :  { %v2360_v9 = vsub.f32 %v8532_v50, %v7774_v14  ;;  %7779 = vrcp.f32 %v2755_v20  ;;  %v7776_v4 = vpop.eup %7775  ;;  %v2686_v20 = vpop.f32.mrf.mxu1 }
 0x841   :  { %v7778_v44 = vpop.eup %7777 }
 0x842   :  { %v2361_v24 = vmul.f32 %v7776_v4, %v2360_v9  ;;  %v2756_v50 = vadd.f32 1.0, %v7778_v44 }
 0x844   :  { %v2362_v1 = vadd.f32 %v7774_v14, %v2361_v24  ;;  %7781 = vrcp.f32 %v2756_v50  ;;  %v8676_v14 = vpop.f32.mrf.mxu0  ;;  %v2615_v50 = vadd.f32 %v2614_v39, %v8603_v5 }
 0x846   :  { %v2363_v30 = vpack.c.bf16 %v2362_v1, %v2362_v1 }
 0x848   :  { %2364 = vst [vmem:[#allocation2 + $0x1c] sm:$0xf] %v2363_v30 }
 0x84d   :  { %v7780_v17 = vpop.eup %7779 }
 0x84e   :  { %v2761_v62 = vmul.f32 %v7780_v17, %v8619_v57 }
 0x84f   :  { %v7529_v31 = vld [vmem:[#allocation2 + $0x18] sm:$0xff]  }
 0x850   :  { %v2762_v15 = vadd.f32 %v2761_v62, %v2684_v54  ;;  %2639 = vmatmul.mubr.bf16.gmra.mxu0 %v7529_v31  ;;  %6997 = vmatmul.mubr.bf16.gmra.mxu1 %v7529_v31 }
 0x851   :  { %2964 = vmatprep.mubr.bf16.mxu0 %v9380_v0  ;;  %7016 = vmatprep.mubr.msk.bf16.mxu1 %vm8078_vm0, %v9382_v29  ;;  %v7782_v42 = vpop.eup %7781 }
 0x852   :  { %7783 = vtanh.f32 %v2762_v15 }
 0x85f   :  { %v7784_v2 = vpop.eup %7783 }
 0x860   :  { %v2764_v60 = vmul.f32 %v7784_v2, %v7782_v42 }
 0x862   :  { %v8629_v27 = vsub.f32 %v7784_v2, %v2764_v60 }
 0x864   :  { %v2766_v37 = vpack.c.bf16 %v8629_v27, %v8629_v27 }
 0x866   :  { %2767 = vst [vmem:[#allocation2] sm:$0xf] %v2766_v37  ;;  %2965 = vmatmul.mubr.bf16.vlgmr.msra.gmra.mxu0 %v2766_v37  ;;  %7017 = vmatmul.mubr.bf16.vlgmr.msra.gmra.mxu1 %v2766_v37 }
 0x867   :  { %3200 = vmatpush1.bf16.msra.mxu0 %v8543_v21  ;;  %3231 = vmatprep.mubr.bf16.mxu0 %v9380_v0 }
 0x868   :  { %3201 = vmatprep.subr.bf16.mxu0 %v8547_v46  ;;  %7036 = vmatprep.mubr.msk.bf16.mxu1 %vm8078_vm0, %v9382_v29 }
 0x869   :  { %7021 = vmatpush3.bf16.msra.mxu1 %v7547_v40 }
 0x86a   :  { %7022 = vmatprep.subr.bf16.mxu1 %v9382_v29 }
 0x86b   :  { %3202 = vmatpush1.bf16.msra.mxu0 %v8550_v48 }
 0x86c   :  { %3203 = vmatprep.subr.bf16.mxu0 %v8554_v49 }
 0x86d   :  { %7023 = vmatpush3.bf16.msra.mxu1 %v7548_v45 }
 0x86e   :  { %7024 = vmatprep.subr.bf16.mxu1 %v9382_v29 }
 0x86f   :  { %3204 = vmatpush1.bf16.msra.mxu0 %v8557_v59 }
 0x870   :  { %3205 = vmatprep.subr.bf16.mxu0 %v8561_v43 }
 0x871   :  { %7025 = vmatpush3.bf16.msra.mxu1 %v7549_v10  ;;  %v2617_v10 = vadd.f32 %v2616_v63, %v8610_v19 }
 0x872   :  { %7026 = vmatprep.subr.bf16.mxu1 %v9382_v29 }
 0x873   :  { %3206 = vmatpush1.bf16.msra.mxu0 %v8564_v51 }
 0x874   :  { %3207 = vmatprep.subr.bf16.mxu0 %v8567_v25 }
 0x875   :  { %7027 = vmatpush3.bf16.msra.mxu1 %v7550_v58 }
 0x876   :  { %7028 = vmatprep.subr.bf16.mxu1 %v9382_v29 }
 0x877   :  { %3208 = vmatpush1.bf16.msra.mxu0 %v8570_v52 }
 0x878   :  { %3209 = vmatprep.subr.bf16.mxu0 %v8574_v26 }
 0x879   :  { %7029 = vmatpush3.bf16.msra.mxu1 %v7551_v8 }
 0x87a   :  { %7030 = vmatprep.subr.bf16.mxu1 %v9382_v29 }
 0x87b   :  { %3210 = vmatpush1.bf16.msra.mxu0 %v8577_v28 }
 0x87c   :  { %3211 = vmatprep.subr.bf16.mxu0 %v8581_v55 }
 0x87d   :  { %7031 = vmatpush3.bf16.msra.mxu1 %v7552_v32 }
 0x87e   :  { %7032 = vmatprep.subr.bf16.mxu1 %v9382_v29 }
 0x87f   :  { %3212 = vmatpush1.bf16.msra.mxu0 %v8584_v3 }
 0x880   :  { %3213 = vmatprep.subr.bf16.mxu0 %v8588_v33 }
 0x881   :  { %7033 = vmatpush3.bf16.msra.mxu1 %v7553_v34 }
 0x882   :  { %7034 = vmatprep.subr.bf16.mxu1 %v9382_v29 }
 0x883   :  { %3214 = vmatpush1.bf16.msra.mxu0 %v8591_v36 }
 0x884   :  { %3466 = vmatprep.subr.bf16.mxu0 %v8541_v16 }
 0x885   :  { %7035 = vmatpush3.bf16.msra.mxu1 %v7554_v35 }
 0x886   :  { %7040 = vmatprep.subr.bf16.mxu1 %v9382_v29 }
 0x910   :  { %v8678_v9 = vpop.f32.mrf.mxu0  ;;  %v8680_v4 = vpop.f32.mrf.mxu1 }
 0x912   :  { %v8682_v24 = vpop.f32.mrf.mxu0  ;;  %v8684_v1 = vpop.f32.mrf.mxu1 }
 0x914   :  { %v8686_v30 = vpop.f32.mrf.mxu0  ;;  %v8688_v44 = vpop.f32.mrf.mxu1 }
 0x916   :  { %v8690_v12 = vpop.f32.mrf.mxu0  ;;  %v8692_v17 = vpop.f32.mrf.mxu1 }
 0x926   :  { %v2966_v54 = vpop.f32.mrf.mxu0  ;;  %v3007_v62 = vpop.f32.mrf.mxu1 }
 0x927   :  { %v3013_v31 = vadd.f32 %v2966_v54, %v2615_v50  ;;  %v3027_v39 = vadd.f32 %v8619_v57, %v3007_v62  ;;  %v2687_v54 = vadd.f32 %v2686_v20, %v8622_v13  ;;  %v7556_v20 = vld [vmem:[#allocation9 + $0x158] ss:$12 sps:$4 sm:$0xff]   ;;  %v7557_v62 = vld [vmem:[#allocation9 + $0x140] ss:$12 sps:$4 sm:$0xff]  }
 0x928   :  { %v2968_v15 = vpop.f32.mrf.mxu0  ;;  %v7018_v42 = vpop.f32.mrf.mxu1 }
 0x929   :  { %v6341_v2 = vmul.f32 -1.442695, %v3013_v31  ;;  %v3014_v58 = vadd.f32 %v2968_v15, %v2617_v10  ;;  %v7558_v10 = vld [vmem:[#allocation9 + $0x128] ss:$12 sps:$4 sm:$0xff]  }
 0x92a   :  { %v2970_v60 = vpop.f32.mrf.mxu0  ;;  %v3010_v37 = vpop.f32.mrf.mxu1 }
 0x92b   :  { %7785 = vpow2.f32 %v6341_v2  ;;  %v6342_v8 = vmul.f32 -1.442695, %v3014_v58  ;;  %v7559_v58 = vld [vmem:[#allocation9 + $0x110] ss:$12 sps:$4 sm:$0xff]  }
 0x92c   :  { %v2971_v40 = vpop.f32.mrf.mxu0  ;;  %v7019_v45 = vpop.f32.mrf.mxu1 }
 0x92d   :  { %7787 = vpow2.f32 %v6342_v8  ;;  %v7560_v8 = vld [vmem:[#allocation9 + $0xf8] ss:$12 sps:$4 sm:$0xff]  }
 0x938   :  { %v7786_v32 = vpop.eup %7785 }
 0x939   :  { %v3021_v34 = vadd.f32 1.0, %v7786_v32  ;;  %v7561_v32 = vld [vmem:[#allocation9 + $0xe0] ss:$12 sps:$4 sm:$0xff]  }
 0x93a   :  { %v7788_v35 = vpop.eup %7787 }
 0x93b   :  { %7789 = vrcp.f32 %v3021_v34  ;;  %v3022_v60 = vadd.f32 1.0, %v7788_v35  ;;  %v7562_v34 = vld [vmem:[#allocation9 + $0xc8] ss:$12 sps:$4 sm:$0xff]   ;;  %v2621_v35 = vadd.f32 %v8660_v11, %v8603_v5 }
 0x948   :  { %v7790_v50 = vpop.eup %7789 }
 0x949   :  { %v3028_v31 = vmul.f32 %v7790_v50, %v3027_v39 }
 0x94b   :  { %v3029_v42 = vadd.f32 %v3028_v31, %v2687_v54 }
 0x94d   :  { %7791 = vtanh.f32 %v3029_v42 }
 0x94e   :  { %7793 = vrcp.f32 %v3022_v60 }
 0x95a   :  { %v7792_v2 = vpop.eup %7791 }
 0x95b   :  { %v3031_v63 = vsub.f32 %v8629_v27, %v7792_v2  ;;  %v7794_v15 = vpop.eup %7793  ;;  %v7555_v27 = vld [vmem:[#allocation9 + $0x170] ss:$12 sps:$4 sm:$0xff]  }
 0x95d   :  { %v3032_v37 = vmul.f32 %v7794_v15, %v3031_v63 }
 0x95f   :  { %v8699_v40 = vadd.f32 %v7792_v2, %v3032_v37 }
 0x961   :  { %v3034_v45 = vpack.c.bf16 %v8699_v40, %v8699_v40 }
 0x963   :  { %3035 = vst [vmem:[#allocation2 + $0x4] sm:$0xf] %v3034_v45  ;;  %3232 = vmatmul.mubr.bf16.vlgmr.msra.gmra.mxu0 %v3034_v45  ;;  %7037 = vmatmul.mubr.bf16.vlgmr.msra.gmra.mxu1 %v3034_v45  ;;  %v2623_v45 = vadd.f32 %v8662_v41, %v8610_v19 }
 0x964   :  { %3467 = vmatpush1.bf16.msra.mxu0 %v8543_v21  ;;  %3498 = vmatprep.mubr.bf16.mxu0 %v9380_v0 }
 0x965   :  { %3468 = vmatprep.subr.bf16.mxu0 %v8547_v46  ;;  %7056 = vmatprep.mubr.msk.bf16.mxu1 %vm8078_vm0, %v9382_v29 }
 0x966   :  { %7041 = vmatpush3.bf16.msra.mxu1 %v7555_v27 }
 0x967   :  { %7042 = vmatprep.subr.bf16.mxu1 %v9382_v29 }
 0x968   :  { %3469 = vmatpush1.bf16.msra.mxu0 %v8550_v48 }
 0x969   :  { %3470 = vmatprep.subr.bf16.mxu0 %v8554_v49 }
 0x96a   :  { %7043 = vmatpush3.bf16.msra.mxu1 %v7556_v20 }
 0x96b   :  { %7044 = vmatprep.subr.bf16.mxu1 %v9382_v29 }
 0x96c   :  { %3471 = vmatpush1.bf16.msra.mxu0 %v8557_v59 }
 0x96d   :  { %3472 = vmatprep.subr.bf16.mxu0 %v8561_v43 }
 0x96e   :  { %7045 = vmatpush3.bf16.msra.mxu1 %v7557_v62 }
 0x96f   :  { %7046 = vmatprep.subr.bf16.mxu1 %v9382_v29 }
 0x970   :  { %3473 = vmatpush1.bf16.msra.mxu0 %v8564_v51 }
 0x971   :  { %3474 = vmatprep.subr.bf16.mxu0 %v8567_v25 }
 0x972   :  { %7047 = vmatpush3.bf16.msra.mxu1 %v7558_v10 }
 0x973   :  { %7048 = vmatprep.subr.bf16.mxu1 %v9382_v29 }
 0x974   :  { %3475 = vmatpush1.bf16.msra.mxu0 %v8570_v52 }
 0x975   :  { %3476 = vmatprep.subr.bf16.mxu0 %v8574_v26 }
 0x976   :  { %7049 = vmatpush3.bf16.msra.mxu1 %v7559_v58 }
 0x977   :  { %7050 = vmatprep.subr.bf16.mxu1 %v9382_v29 }
 0x978   :  { %3477 = vmatpush1.bf16.msra.mxu0 %v8577_v28 }
 0x979   :  { %3478 = vmatprep.subr.bf16.mxu0 %v8581_v55 }
 0x97a   :  { %7051 = vmatpush3.bf16.msra.mxu1 %v7560_v8 }
 0x97b   :  { %7052 = vmatprep.subr.bf16.mxu1 %v9382_v29 }
 0x97c   :  { %3479 = vmatpush1.bf16.msra.mxu0 %v8584_v3 }
 0x97d   :  { %3480 = vmatprep.subr.bf16.mxu0 %v8588_v33 }
 0x97e   :  { %7053 = vmatpush3.bf16.msra.mxu1 %v7561_v32  ;;  %v2692_v32 = vadd.f32 %v8614_v53, %v8622_v13  ;;  %v7563_v53 = vld [vmem:[#allocation9 + $0x170] ss:$12 sps:$4 sm:$0xff]  }
 0x97f   :  { %7054 = vmatprep.subr.bf16.mxu1 %v9382_v29 }
 0x980   :  { %3481 = vmatpush1.bf16.msra.mxu0 %v8591_v36 }
 0x981   :  { %3733 = vmatprep.subr.bf16.mxu0 %v8541_v16 }
 0x982   :  { %7055 = vmatpush3.bf16.msra.mxu1 %v7562_v34 }
 0x983   :  { %7060 = vmatprep.subr.bf16.mxu1 %v9382_v29 }
 0xa23   :  { %v3233_v39 = vpop.f32.mrf.mxu0  ;;  %v3274_v50 = vpop.f32.mrf.mxu1 }
 0xa24   :  { %v3280_v54 = vadd.f32 %v3233_v39, %v2621_v35  ;;  %v3294_v58 = vadd.f32 %v8619_v57, %v3274_v50  ;;  %v7565_v50 = vld [vmem:[#allocation9 + $0x140] ss:$12 sps:$4 sm:$0xff]  }
 0xa25   :  { %v3235_v31 = vpop.f32.mrf.mxu0  ;;  %v7038_v42 = vpop.f32.mrf.mxu1 }
 0xa26   :  { %v6367_v60 = vmul.f32 -1.442695, %v3280_v54  ;;  %v3281_v27 = vadd.f32 %v3235_v31, %v2623_v45  ;;  %v7570_v45 = vld [vmem:[#allocation9 + $0xc8] ss:$12 sps:$4 sm:$0xff]  }
 0xa27   :  { %v3237_v2 = vpop.f32.mrf.mxu0  ;;  %v3277_v63 = vpop.f32.mrf.mxu1 }
 0xa28   :  { %7795 = vpow2.f32 %v6367_v60  ;;  %v6368_v20 = vmul.f32 -1.442695, %v3281_v27  ;;  %v7566_v63 = vld [vmem:[#allocation9 + $0x128] ss:$12 sps:$4 sm:$0xff]   ;;  %v2625_v27 = vadd.f32 %v8664_v7, %v8603_v5 }
 0xa29   :  { %v3238_v15 = vpop.f32.mrf.mxu0  ;;  %v7039_v37 = vpop.f32.mrf.mxu1 }
 0xa2a   :  { %7797 = vpow2.f32 %v6368_v20  ;;  %v7567_v15 = vld [vmem:[#allocation9 + $0x110] ss:$12 sps:$4 sm:$0xff]   ;;  %v7568_v37 = vld [vmem:[#allocation9 + $0xf8] ss:$12 sps:$4 sm:$0xff]  }
 0xa35   :  { %v7796_v62 = vpop.eup %7795 }
 0xa36   :  { %v3288_v10 = vadd.f32 1.0, %v7796_v62 }
 0xa37   :  { %v7798_v11 = vpop.eup %7797 }
 0xa38   :  { %7799 = vrcp.f32 %v3288_v10  ;;  %v3289_v39 = vadd.f32 1.0, %v7798_v11 }
 0xa45   :  { %v7800_v8 = vpop.eup %7799 }
 0xa46   :  { %v3295_v34 = vmul.f32 %v7800_v8, %v3294_v58 }
 0xa48   :  { %v3296_v35 = vadd.f32 %v3295_v34, %v2692_v32 }
 0xa4a   :  { %7801 = vtanh.f32 %v3296_v35 }
 0xa4b   :  { %7803 = vrcp.f32 %v3289_v39 }
 0xa57   :  { %v7802_v54 = vpop.eup %7801 }
 0xa58   :  { %v3298_v41 = vsub.f32 %v8699_v40, %v7802_v54  ;;  %v7804_v31 = vpop.eup %7803  ;;  %v7564_v40 = vld [vmem:[#allocation9 + $0x158] ss:$12 sps:$4 sm:$0xff]  }
 0xa5a   :  { %v3299_v42 = vmul.f32 %v7804_v31, %v3298_v41 }
 0xa5c   :  { %v8738_v60 = vadd.f32 %v7802_v54, %v3299_v42  ;;  %v2627_v54 = vadd.f32 %v8666_v22, %v8610_v19 }
 0xa5e   :  { %v3301_v2 = vpack.c.bf16 %v8738_v60, %v8738_v60 }
 0xa60   :  { %3302 = vst [vmem:[#allocation2 + $0x8] sm:$0xf] %v3301_v2  ;;  %3499 = vmatmul.mubr.bf16.vlgmr.msra.gmra.mxu0 %v3301_v2  ;;  %7057 = vmatmul.mubr.bf16.vlgmr.msra.gmra.mxu1 %v3301_v2 }
 0xa61   :  { %3734 = vmatpush1.bf16.msra.mxu0 %v8543_v21  ;;  %3765 = vmatprep.mubr.bf16.mxu0 %v9380_v0 }
 0xa62   :  { %3735 = vmatprep.subr.bf16.mxu0 %v8547_v46  ;;  %7076 = vmatprep.mubr.msk.bf16.mxu1 %vm8078_vm0, %v9382_v29 }
 0xa63   :  { %7061 = vmatpush3.bf16.msra.mxu1 %v7563_v53 }
 0xa64   :  { %7062 = vmatprep.subr.bf16.mxu1 %v9382_v29 }
 0xa65   :  { %3736 = vmatpush1.bf16.msra.mxu0 %v8550_v48 }
 0xa66   :  { %3737 = vmatprep.subr.bf16.mxu0 %v8554_v49 }
 0xa67   :  { %7063 = vmatpush3.bf16.msra.mxu1 %v7564_v40 }
 0xa68   :  { %7064 = vmatprep.subr.bf16.mxu1 %v9382_v29 }
 0xa69   :  { %3738 = vmatpush1.bf16.msra.mxu0 %v8557_v59 }
 0xa6a   :  { %3739 = vmatprep.subr.bf16.mxu0 %v8561_v43 }
 0xa6b   :  { %7065 = vmatpush3.bf16.msra.mxu1 %v7565_v50  ;;  %v2695_v50 = vadd.f32 %v8672_v47, %v8622_v13 }
 0xa6c   :  { %7066 = vmatprep.subr.bf16.mxu1 %v9382_v29 }
 0xa6d   :  { %3740 = vmatpush1.bf16.msra.mxu0 %v8564_v51 }
 0xa6e   :  { %3741 = vmatprep.subr.bf16.mxu0 %v8567_v25 }
 0xa6f   :  { %7067 = vmatpush3.bf16.msra.mxu1 %v7566_v63 }
 0xa70   :  { %7068 = vmatprep.subr.bf16.mxu1 %v9382_v29 }
 0xa71   :  { %3742 = vmatpush1.bf16.msra.mxu0 %v8570_v52 }
 0xa72   :  { %3743 = vmatprep.subr.bf16.mxu0 %v8574_v26 }
 0xa73   :  { %7069 = vmatpush3.bf16.msra.mxu1 %v7567_v15 }
 0xa74   :  { %7070 = vmatprep.subr.bf16.mxu1 %v9382_v29 }
 0xa75   :  { %3744 = vmatpush1.bf16.msra.mxu0 %v8577_v28 }
 0xa76   :  { %3745 = vmatprep.subr.bf16.mxu0 %v8581_v55 }
 0xa77   :  { %7071 = vmatpush3.bf16.msra.mxu1 %v7568_v37 }
 0xa78   :  { %7072 = vmatprep.subr.bf16.mxu1 %v9382_v29 }
 0xa79   :  { %3746 = vmatpush1.bf16.msra.mxu0 %v8584_v3 }
 0xa7a   :  { %3747 = vmatprep.subr.bf16.mxu0 %v8588_v33 }
 0xa7d   :  { %3748 = vmatpush1.bf16.msra.mxu0 %v8591_v36 }
 0xa7e   :  { %4000 = vmatprep.subr.bf16.mxu0 %v8541_v16  ;;  %v7569_v16 = vld [vmem:[#allocation9 + $0xe0] ss:$12 sps:$4 sm:$0xff]  }
 0xa7f   :  { %7073 = vmatpush3.bf16.msra.mxu1 %v7569_v16 }
 0xa80   :  { %7074 = vmatprep.subr.bf16.mxu1 %v9382_v29 }
 0xa83   :  { %7075 = vmatpush3.bf16.msra.mxu1 %v7570_v45 }
 0xa84   :  { %7080 = vmatprep.subr.bf16.mxu1 %v9382_v29 }
 0xb20   :  { %v3500_v20 = vpop.f32.mrf.mxu0  ;;  %v3541_v62 = vpop.f32.mrf.mxu1 }
 0xb21   :  { %v3547_v10 = vadd.f32 %v3500_v20, %v2625_v27  ;;  %v3561_v53 = vadd.f32 %v8619_v57, %v3541_v62 }
 0xb22   :  { %v3502_v11 = vpop.f32.mrf.mxu0  ;;  %v7058_v58 = vpop.f32.mrf.mxu1 }
 0xb23   :  { %v6393_v8 = vmul.f32 -1.442695, %v3547_v10  ;;  %v3548_v41 = vadd.f32 %v3502_v11, %v2627_v54  ;;  %v2633_v58 = vadd.f32 %v8670_v38, %v8610_v19 }
 0xb24   :  { %v3504_v32 = vpop.f32.mrf.mxu0  ;;  %v3544_v34 = vpop.f32.mrf.mxu1 }
 0xb25   :  { %7805 = vpow2.f32 %v6393_v8  ;;  %v6394_v31 = vmul.f32 -1.442695, %v3548_v41  ;;  %v2700_v41 = vadd.f32 %v8684_v1, %v8622_v13  ;;  %v7581_v1 = vld [vmem:[#allocation9 + $0x16c] ss:$12 sps:$4 sm:$0xff]  }
 0xb26   :  { %v3505_v35 = vpop.f32.mrf.mxu0  ;;  %v7059_v39 = vpop.f32.mrf.mxu1 }
 0xb27   :  { %7807 = vpow2.f32 %v6394_v31 }
 0xb32   :  { %v7806_v42 = vpop.eup %7805 }
 0xb33   :  { %v3555_v2 = vadd.f32 1.0, %v7806_v42 }
 0xb34   :  { %v7808_v7 = vpop.eup %7807 }
 0xb35   :  { %7809 = vrcp.f32 %v3555_v2  ;;  %v3556_v37 = vadd.f32 1.0, %v7808_v7 }
 0xb42   :  { %v7810_v40 = vpop.eup %7809 }
 0xb43   :  { %v3562_v63 = vmul.f32 %v7810_v40, %v3561_v53 }
 0xb45   :  { %v3563_v15 = vadd.f32 %v3562_v63, %v2695_v50 }
 0xb47   :  { %7811 = vtanh.f32 %v3563_v15  ;;  %v8822_v15 = vld [vmem:[#allocation9 + $0x168] ss:$12 sps:$4 sm:$0xff]  }
 0xb48   :  { %7813 = vrcp.f32 %v3556_v37  ;;  %v7582_v37 = vld [vmem:[#allocation9 + $0x170] ss:$12 sps:$4 sm:$0xff]  }
 0xb54   :  { %v7812_v16 = vpop.eup %7811 }
 0xb55   :  { %v3565_v22 = vsub.f32 %v8738_v60, %v7812_v16  ;;  %v7814_v45 = vpop.eup %7813 }
 0xb57   :  { %v3566_v27 = vmul.f32 %v7814_v45, %v3565_v22  ;;  %v8828_v22 = vld [vmem:[#allocation9 + $0x150] ss:$12 sps:$4 sm:$0xff]   ;;  %v7586_v45 = vld [vmem:[#allocation9 + $0x158] ss:$12 sps:$4 sm:$0xff]  }
 0xb59   :  { %v8777_v20 = vadd.f32 %v7812_v16, %v3566_v27  ;;  %v8825_v16 = vld [vmem:[#allocation9 + $0x154] ss:$12 sps:$4 sm:$0xff]   ;;  %v8832_v27 = vld [vmem:[#allocation9 + $0x13c] ss:$12 sps:$4 sm:$0xff]  }
 0xb5b   :  { %v3568_v10 = vpack.c.bf16 %v8777_v20, %v8777_v20 }
 0xb5d   :  { %3569 = vst [vmem:[#allocation2 + $0xc] sm:$0xf] %v3568_v10  ;;  %3766 = vmatmul.mubr.bf16.vlgmr.msra.gmra.mxu0 %v3568_v10  ;;  %7077 = vmatmul.mubr.bf16.vlgmr.msra.gmra.mxu1 %v3568_v10  ;;  %v7590_v10 = vld [vmem:[#allocation9 + $0x140] ss:$12 sps:$4 sm:$0xff]  }
 0xb5e   :  { %4001 = vmatpush1.bf16.msra.mxu0 %v8543_v21  ;;  %4032 = vmatprep.mubr.bf16.mxu0 %v9380_v0  ;;  %v7571_v21 = vld [vmem:[#allocation9 + $0x170] ss:$12 sps:$4 sm:$0xff]  }
 0xb5f   :  { %4002 = vmatprep.subr.bf16.mxu0 %v8547_v46  ;;  %7096 = vmatprep.mubr.msk.bf16.mxu1 %vm8078_vm0, %v9382_v29  ;;  %v7572_v46 = vld [vmem:[#allocation9 + $0x158] ss:$12 sps:$4 sm:$0xff]  }
 0xb60   :  { %7081 = vmatpush3.bf16.msra.mxu1 %v7571_v21  ;;  %v8839_v21 = vld [vmem:[#allocation9 + $0x120] ss:$12 sps:$4 sm:$0xff]  }
 0xb61   :  { %7082 = vmatprep.subr.bf16.mxu1 %v9382_v29 }
 0xb62   :  { %4003 = vmatpush1.bf16.msra.mxu0 %v8550_v48  ;;  %v7573_v48 = vld [vmem:[#allocation9 + $0x140] ss:$12 sps:$4 sm:$0xff]  }
 0xb63   :  { %4004 = vmatprep.subr.bf16.mxu0 %v8554_v49  ;;  %v7574_v49 = vld [vmem:[#allocation9 + $0x128] ss:$12 sps:$4 sm:$0xff]  }
 0xb64   :  { %7083 = vmatpush3.bf16.msra.mxu1 %v7572_v46  ;;  %v8841_v46 = vld [vmem:[#allocation9 + $0x124] ss:$12 sps:$4 sm:$0xff]  }
 0xb65   :  { %7084 = vmatprep.subr.bf16.mxu1 %v9382_v29 }
 0xb66   :  { %4005 = vmatpush1.bf16.msra.mxu0 %v8557_v59  ;;  %v7575_v59 = vld [vmem:[#allocation9 + $0x110] ss:$12 sps:$4 sm:$0xff]  }
 0xb67   :  { %4006 = vmatprep.subr.bf16.mxu0 %v8561_v43  ;;  %v7576_v43 = vld [vmem:[#allocation9 + $0xf8] ss:$12 sps:$4 sm:$0xff]  }
 0xb68   :  { %7085 = vmatpush3.bf16.msra.mxu1 %v7573_v48  ;;  %v7594_v48 = vld [vmem:[#allocation9 + $0x128] ss:$12 sps:$4 sm:$0xff]  }
 0xb69   :  { %7086 = vmatprep.subr.bf16.mxu1 %v9382_v29 }
 0xb6a   :  { %4007 = vmatpush1.bf16.msra.mxu0 %v8564_v51  ;;  %v7577_v51 = vld [vmem:[#allocation9 + $0xe0] ss:$12 sps:$4 sm:$0xff]  }
 0xb6b   :  { %4008 = vmatprep.subr.bf16.mxu0 %v8567_v25  ;;  %v7578_v25 = vld [vmem:[#allocation9 + $0xc8] ss:$12 sps:$4 sm:$0xff]  }
 0xb6c   :  { %7087 = vmatpush3.bf16.msra.mxu1 %v7574_v49  ;;  %v8844_v49 = vld [vmem:[#allocation9 + $0x10c] ss:$12 sps:$4 sm:$0xff]  }
 0xb6d   :  { %7088 = vmatprep.subr.bf16.mxu1 %v9382_v29 }
 0xb6e   :  { %4009 = vmatpush1.bf16.msra.mxu0 %v8570_v52  ;;  %v2631_v52 = vadd.f32 %v8668_v18, %v8603_v5 }
 0xb6f   :  { %4010 = vmatprep.subr.bf16.mxu0 %v8574_v26 }
 0xb70   :  { %7089 = vmatpush3.bf16.msra.mxu1 %v7575_v59  ;;  %v8848_v59 = vld [vmem:[#allocation9 + $0x108] ss:$12 sps:$4 sm:$0xff]  }
 0xb71   :  { %7090 = vmatprep.subr.bf16.mxu1 %v9382_v29 }
 0xb72   :  { %4011 = vmatpush1.bf16.msra.mxu0 %v8577_v28 }
 0xb73   :  { %4012 = vmatprep.subr.bf16.mxu0 %v8581_v55 }
 0xb74   :  { %7091 = vmatpush3.bf16.msra.mxu1 %v7576_v43  ;;  %v7598_v43 = vld [vmem:[#allocation9 + $0x110] ss:$12 sps:$4 sm:$0xff]  }
 0xb75   :  { %7092 = vmatprep.subr.bf16.mxu1 %v9382_v29 }
 0xb76   :  { %4013 = vmatpush1.bf16.msra.mxu0 %v8584_v3 }
 0xb77   :  { %4014 = vmatprep.subr.bf16.mxu0 %v8588_v33 }
 0xb78   :  { %7093 = vmatpush3.bf16.msra.mxu1 %v7577_v51  ;;  %v8852_v51 = vld [vmem:[#allocation9 + $0xf4] ss:$12 sps:$4 sm:$0xff]  }
 0xb79   :  { %7094 = vmatprep.subr.bf16.mxu1 %v9382_v29 }
 0xb7a   :  { %4015 = vmatpush1.bf16.msra.mxu0 %v8591_v36 }
 0xb7b   :  { %4267 = vmatprep.subr.bf16.mxu0 %v7581_v1 }
 0xb7c   :  { %7095 = vmatpush3.bf16.msra.mxu1 %v7578_v25  ;;  %v8855_v25 = vld [vmem:[#allocation9 + $0xf0] ss:$12 sps:$4 sm:$0xff]  }
 0xb7d   :  { %7100 = vmatprep.subr.bf16.mxu1 %v9382_v29 }
 0xc1d   :  { %v3767_v26 = vpop.f32.mrf.mxu0  ;;  %v3808_v28 = vpop.f32.mrf.mxu1 }
 0xc1e   :  { %v3814_v55 = vadd.f32 %v3767_v26, %v2631_v52  ;;  %v3828_v39 = vadd.f32 %v8619_v57, %v3808_v28  ;;  %v7602_v52 = vld [vmem:[#allocation9 + $0xf8] ss:$12 sps:$4 sm:$0xff]   ;;  %v8859_v26 = vld [vmem:[#allocation9 + $0xdc] ss:$12 sps:$4 sm:$0xff]  }
 0xc1f   :  { %v3769_v3 = vpop.f32.mrf.mxu0  ;;  %v7078_v33 = vpop.f32.mrf.mxu1  ;;  %v8862_v28 = vld [vmem:[#allocation9 + $0xd8] ss:$12 sps:$4 sm:$0xff]  }
 0xc20   :  { %v6419_v36 = vmul.f32 -1.442695, %v3814_v55  ;;  %v3815_v8 = vadd.f32 %v3769_v3, %v2633_v58  ;;  %v7606_v55 = vld [vmem:[#allocation9 + $0xe0] ss:$12 sps:$4 sm:$0xff]   ;;  %v7609_v3 = vld [vmem:[#allocation9 + $0xc4] ss:$12 sps:$4 sm:$0xff]  }
 0xc21   :  { %v3771_v47 = vpop.f32.mrf.mxu0  ;;  %v3811_v60 = vpop.f32.mrf.mxu1  ;;  %v7607_v33 = vld [vmem:[#allocation9 + $0xc0] ss:$12 sps:$4 sm:$0xff]  }
 0xc22   :  { %7815 = vpow2.f32 %v6419_v36  ;;  %v6420_v32 = vmul.f32 -1.442695, %v3815_v8  ;;  %v7610_v36 = vld [vmem:[#allocation9 + $0xc8] ss:$12 sps:$4 sm:$0xff]   ;;  %v2635_v47 = vadd.f32 %v8674_v23, %v8603_v5 }
 0xc23   :  { %v3772_v62 = vpop.f32.mrf.mxu0  ;;  %v7079_v11 = vpop.f32.mrf.mxu1 }
 0xc24   :  { %7817 = vpow2.f32 %v6420_v32 }
 0xc2f   :  { %v7816_v34 = vpop.eup %7815 }
 0xc30   :  { %v3822_v35 = vadd.f32 1.0, %v7816_v34 }
 0xc31   :  { %v7818_v18 = vpop.eup %7817 }
 0xc32   :  { %7819 = vrcp.f32 %v3822_v35  ;;  %v3823_v2 = vadd.f32 1.0, %v7818_v18 }
 0xc3f   :  { %v7820_v54 = vpop.eup %7819 }
 0xc40   :  { %v3829_v31 = vmul.f32 %v7820_v54, %v3828_v39  ;;  %v2637_v54 = vadd.f32 %v8676_v14, %v8610_v19 }
 0xc42   :  { %v3830_v42 = vadd.f32 %v3829_v31, %v2700_v41 }
 0xc44   :  { %7821 = vtanh.f32 %v3830_v42 }
 0xc45   :  { %7823 = vrcp.f32 %v3823_v2 }
 0xc51   :  { %v7822_v7 = vpop.eup %7821 }
 0xc52   :  { %v3832_v38 = vsub.f32 %v8777_v20, %v7822_v7  ;;  %v7824_v53 = vpop.eup %7823  ;;  %v8835_v20 = vld [vmem:[#allocation9 + $0x138] ss:$12 sps:$4 sm:$0xff]  }
 0xc54   :  { %v3833_v40 = vmul.f32 %v7824_v53, %v3832_v38  ;;  %v2703_v53 = vadd.f32 %v8692_v17, %v8622_v13  ;;  %v7612_v17 = vld [vmem:[#allocation9 + $0x158] ss:$12 sps:$4 sm:$0xff]  }
 0xc56   :  { %v8815_v50 = vadd.f32 %v7822_v7, %v3833_v40 }
 0xc58   :  { %v3835_v63 = vpack.c.bf16 %v8815_v50, %v8815_v50 }
 0xc5a   :  { %3836 = vst [vmem:[#allocation2 + $0x10] sm:$0xf] %v3835_v63  ;;  %4033 = vmatmul.mubr.bf16.vlgmr.msra.gmra.mxu0 %v3835_v63  ;;  %7097 = vmatmul.mubr.bf16.vlgmr.msra.gmra.mxu1 %v3835_v63 }
 0xc5b   :  { %4299 = vmatprep.mubr.bf16.mxu0 %v9380_v0  ;;  %7116 = vmatprep.mubr.msk.bf16.mxu1 %vm8078_vm0, %v9382_v29 }
 0xc5c   :  { %4268 = vmatpush1.bf16.msra.mxu0 %v8822_v15  ;;  %7101 = vmatpush3.bf16.msra.mxu1 %v7582_v37 }
 0xc5d   :  { %7102 = vmatprep.subr.bf16.mxu1 %v9382_v29  ;;  %4269 = vmatprep.subr.bf16.mxu0 %v8825_v16 }
 0xc60   :  { %4270 = vmatpush1.bf16.msra.mxu0 %v8828_v22  ;;  %7103 = vmatpush3.bf16.msra.mxu1 %v7586_v45 }
 0xc61   :  { %7104 = vmatprep.subr.bf16.mxu1 %v9382_v29  ;;  %4271 = vmatprep.subr.bf16.mxu0 %v8832_v27 }
 0xc64   :  { %4272 = vmatpush1.bf16.msra.mxu0 %v8835_v20  ;;  %7105 = vmatpush3.bf16.msra.mxu1 %v7590_v10 }
 0xc65   :  { %7106 = vmatprep.subr.bf16.mxu1 %v9382_v29  ;;  %4273 = vmatprep.subr.bf16.mxu0 %v8841_v46 }
 0xc68   :  { %4274 = vmatpush1.bf16.msra.mxu0 %v8839_v21  ;;  %7107 = vmatpush3.bf16.msra.mxu1 %v7594_v48 }
 0xc69   :  { %4275 = vmatprep.subr.bf16.mxu0 %v8844_v49  ;;  %7108 = vmatprep.subr.bf16.mxu1 %v9382_v29 }
 0xc6c   :  { %4276 = vmatpush1.bf16.msra.mxu0 %v8848_v59  ;;  %7109 = vmatpush3.bf16.msra.mxu1 %v7598_v43 }
 0xc6d   :  { %4277 = vmatprep.subr.bf16.mxu0 %v8852_v51  ;;  %7110 = vmatprep.subr.bf16.mxu1 %v9382_v29 }
 0xc70   :  { %4278 = vmatpush1.bf16.msra.mxu0 %v8855_v25  ;;  %7111 = vmatpush3.bf16.msra.mxu1 %v7602_v52 }
 0xc71   :  { %4279 = vmatprep.subr.bf16.mxu0 %v8859_v26  ;;  %7112 = vmatprep.subr.bf16.mxu1 %v9382_v29 }
 0xc74   :  { %4280 = vmatpush1.bf16.msra.mxu0 %v8862_v28  ;;  %7113 = vmatpush3.bf16.msra.mxu1 %v7606_v55 }
 0xc75   :  { %4281 = vmatprep.subr.bf16.mxu0 %v7609_v3  ;;  %7114 = vmatprep.subr.bf16.mxu1 %v9382_v29 }
 0xc78   :  { %4282 = vmatpush1.bf16.msra.mxu0 %v7607_v33  ;;  %7115 = vmatpush3.bf16.msra.mxu1 %v7610_v36 }
 0xc79   :  { %4534 = vmatprep.subr.bf16.mxu0 %v7581_v1  ;;  %7120 = vmatprep.subr.bf16.mxu1 %v9382_v29 }
 0xd1a   :  { %v4034_v60 = vpop.f32.mrf.mxu0  ;;  %v4075_v62 = vpop.f32.mrf.mxu1 }
 0xd1b   :  { %v4081_v11 = vadd.f32 %v4034_v60, %v2635_v47  ;;  %v4095_v7 = vadd.f32 %v8619_v57, %v4075_v62  ;;  %v7611_v57 = vld [vmem:[#allocation9 + $0x170] ss:$12 sps:$4 sm:$0xff]   ;;  %v2643_v47 = vadd.f32 %v8682_v24, %v8610_v19 }
 0xd1c   :  { %v4036_v58 = vpop.f32.mrf.mxu0  ;;  %v7098_v8 = vpop.f32.mrf.mxu1 }
 0xd1d   :  { %v6445_v32 = vmul.f32 -1.442695, %v4081_v11  ;;  %v4082_v41 = vadd.f32 %v4036_v58, %v2637_v54  ;;  %v8911_v8 = vld [vmem:[%s9376_s4 + $0x1] ss:$0 sm:$0xff] }
 0xd1e   :  { %v4038_v34 = vpop.f32.mrf.mxu0  ;;  %v4078_v35 = vpop.f32.mrf.mxu1 }
 0xd1f   :  { %7825 = vpow2.f32 %v6445_v32  ;;  %v6446_v31 = vmul.f32 -1.442695, %v4082_v41  ;;  %v2708_v35 = vadd.f32 %v8680_v4, %v8622_v13  ;;  %v7623_v4 = vld [vmem:[#allocation2] sm:$0xff]  }
 0xd20   :  { %v4039_v18 = vpop.f32.mrf.mxu0  ;;  %v7099_v39 = vpop.f32.mrf.mxu1 }
 0xd21   :  { %7827 = vpow2.f32 %v6446_v31 }
 0xd2c   :  { %v7826_v42 = vpop.eup %7825 }
 0xd2d   :  { %v4089_v2 = vadd.f32 1.0, %v7826_v42 }
 0xd2e   :  { %v7828_v23 = vpop.eup %7827 }
 0xd2f   :  { %7829 = vrcp.f32 %v4089_v2  ;;  %v4090_v1 = vadd.f32 1.0, %v7828_v23  ;;  %v7619_v23 = vld [vmem:[#allocation7 + $0x228] ss:$12 sps:$4 sm:$0xff]  }
 0xd3c   :  { %v7830_v38 = vpop.eup %7829 }
 0xd3d   :  { %v4096_v40 = vmul.f32 %v7830_v38, %v4095_v7  ;;  %v7626_v38 = vld [vmem:[#allocation7 + $0x214] ss:$12 sps:$4 sm:$0xff]  }
 0xd3f   :  { %v4097_v63 = vadd.f32 %v4096_v40, %v2703_v53  ;;  %v7627_v53 = vld [vmem:[#allocation7 + $0x218] ss:$12 sps:$4 sm:$0xff]   ;;  %v7624_v40 = vld [vmem:[#allocation7 + $0x210] ss:$12 sps:$4 sm:$0xff]  }
 0xd41   :  { %7831 = vtanh.f32 %v4097_v63  ;;  %v7630_v63 = vld [vmem:[#allocation7 + $0x1fc] ss:$12 sps:$4 sm:$0xff]  }
 0xd42   :  { %7833 = vrcp.f32 %v4090_v1  ;;  %v7631_v1 = vld [vmem:[#allocation7 + $0x200] ss:$12 sps:$4 sm:$0xff]  }
 0xd4e   :  { %v7832_v37 = vpop.eup %7831 }
 0xd4f   :  { %v4099_v14 = vsub.f32 %v8815_v50, %v7832_v37  ;;  %v7834_v45 = vpop.eup %7833  ;;  %v7613_v50 = vld [vmem:[#allocation9 + $0x140] ss:$12 sps:$4 sm:$0xff]  }
 0xd51   :  { %v4100_v10 = vmul.f32 %v7834_v45, %v4099_v14  ;;  %v7634_v14 = vld [vmem:[#allocation7 + $0x1e4] ss:$12 sps:$4 sm:$0xff]   ;;  %v7635_v45 = vld [vmem:[#allocation7 + $0x1e8] ss:$12 sps:$4 sm:$0xff]  }
 0xd53   :  { %v8877_v48 = vadd.f32 %v7832_v37, %v4100_v10  ;;  %v7628_v37 = vld [vmem:[#allocation7 + $0x1f8] ss:$12 sps:$4 sm:$0xff]   ;;  %v7632_v10 = vld [vmem:[#allocation7 + $0x1e0] ss:$12 sps:$4 sm:$0xff]  }
 0xd55   :  { %v4102_v43 = vpack.c.bf16 %v8877_v48, %v8877_v48 }
 0xd57   :  { %4103 = vst [vmem:[#allocation2 + $0x14] sm:$0xf] %v4102_v43  ;;  %4300 = vmatmul.mubr.bf16.vlgmr.msra.gmra.mxu0 %v4102_v43  ;;  %7117 = vmatmul.mubr.bf16.vlgmr.msra.gmra.mxu1 %v4102_v43  ;;  %v7639_v43 = vld [vmem:[#allocation7 + $0x1d0] ss:$12 sps:$4 sm:$0xff]  }
 0xd58   :  { %4535 = vmatpush1.bf16.msra.mxu0 %v8822_v15  ;;  %4566 = vmatprep.mubr.bf16.mxu0 %v9380_v0  ;;  %v7614_v15 = vld [vmem:[#allocation9 + $0x128] ss:$12 sps:$4 sm:$0xff]  }
 0xd59   :  { %4536 = vmatprep.subr.bf16.mxu0 %v8825_v16  ;;  %7136 = vmatprep.mubr.msk.bf16.mxu1 %vm8078_vm0, %v9382_v29  ;;  %v7621_v16 = vld [vmem:[#allocation7 + $0x22c] ss:$12 sps:$4 sm:$0xff]  }
 0xd5a   :  { %7121 = vmatpush3.bf16.msra.mxu1 %v7611_v57  ;;  %v7636_v57 = vld [vmem:[#allocation7 + $0x1c8] ss:$12 sps:$4 sm:$0xff]  }
 0xd5b   :  { %7122 = vmatprep.subr.bf16.mxu1 %v9382_v29 }
 0xd5c   :  { %4537 = vmatpush1.bf16.msra.mxu0 %v8828_v22  ;;  %v7615_v22 = vld [vmem:[#allocation9 + $0x110] ss:$12 sps:$4 sm:$0xff]  }
 0xd5d   :  { %4538 = vmatprep.subr.bf16.mxu0 %v8832_v27  ;;  %v7616_v27 = vld [vmem:[#allocation9 + $0xf8] ss:$12 sps:$4 sm:$0xff]  }
 0xd5e   :  { %7123 = vmatpush3.bf16.msra.mxu1 %v7612_v17  ;;  %v7642_v17 = vld [vmem:[#allocation7 + $0x1b4] ss:$12 sps:$4 sm:$0xff]  }
 0xd5f   :  { %7124 = vmatprep.subr.bf16.mxu1 %v9382_v29 }
 0xd60   :  { %4539 = vmatpush1.bf16.msra.mxu0 %v8835_v20  ;;  %v7617_v20 = vld [vmem:[#allocation9 + $0xe0] ss:$12 sps:$4 sm:$0xff]  }
 0xd61   :  { %4540 = vmatprep.subr.bf16.mxu0 %v8841_v46  ;;  %v7622_v46 = vld [vmem:[#allocation7 + $0x230] ss:$12 sps:$4 sm:$0xff]  }
 0xd62   :  { %7125 = vmatpush3.bf16.msra.mxu1 %v7613_v50  ;;  %v7643_v50 = vld [vmem:[#allocation7 + $0x1b8] ss:$12 sps:$4 sm:$0xff]  }
 0xd63   :  { %7126 = vmatprep.subr.bf16.mxu1 %v9382_v29 }
 0xd64   :  { %4541 = vmatpush1.bf16.msra.mxu0 %v8839_v21  ;;  %v7618_v21 = vld [vmem:[#allocation9 + $0xc8] ss:$12 sps:$4 sm:$0xff]  }
 0xd65   :  { %4542 = vmatprep.subr.bf16.mxu0 %v8844_v49  ;;  %v2641_v49 = vadd.f32 %v8678_v9, %v8603_v5 }
 0xd66   :  { %7127 = vmatpush3.bf16.msra.mxu1 %v7614_v15  ;;  %v7640_v15 = vld [vmem:[#allocation7 + $0x1b0] ss:$12 sps:$4 sm:$0xff]  }
 0xd67   :  { %7128 = vmatprep.subr.bf16.mxu1 %v9382_v29 }
 0xd68   :  { %4543 = vmatpush1.bf16.msra.mxu0 %v8848_v59 }
 0xd69   :  { %4544 = vmatprep.subr.bf16.mxu0 %v8852_v51 }
 0xd6a   :  { %7129 = vmatpush3.bf16.msra.mxu1 %v7615_v22  ;;  %v7647_v22 = vld [vmem:[#allocation7 + $0x1a0] ss:$12 sps:$4 sm:$0xff]  }
 0xd6b   :  { %7130 = vmatprep.subr.bf16.mxu1 %v9382_v29 }
 0xd6c   :  { %4545 = vmatpush1.bf16.msra.mxu0 %v8855_v25 }
 0xd6d   :  { %4546 = vmatprep.subr.bf16.mxu0 %v8859_v26 }
 0xd6e   :  { %7131 = vmatpush3.bf16.msra.mxu1 %v7616_v27  ;;  %v7644_v27 = vld [vmem:[#allocation7 + $0x198] ss:$12 sps:$4 sm:$0xff]  }
 0xd6f   :  { %7132 = vmatprep.subr.bf16.mxu1 %v9382_v29 }
 0xd70   :  { %4547 = vmatpush1.bf16.msra.mxu0 %v8862_v28 }
 0xd71   :  { %4548 = vmatprep.subr.bf16.mxu0 %v7609_v3 }
 0xd72   :  { %7133 = vmatpush3.bf16.msra.mxu1 %v7617_v20  ;;  %v7650_v20 = vld [vmem:[#allocation7 + $0x184] ss:$12 sps:$4 sm:$0xff]  }
 0xd73   :  { %7134 = vmatprep.subr.bf16.mxu1 %v9382_v29 }
 0xd74   :  { %4549 = vmatpush1.bf16.msra.mxu0 %v7607_v33 }
 0xd75   :  { %4849 = vmatprep.subr.bf16.mxu0 %v7621_v16  ;;  %v7646_v16 = vld [vmem:[#allocation7 + $0x19c] ss:$12 sps:$4 sm:$0xff]  }
 0xd76   :  { %7135 = vmatpush3.bf16.msra.mxu1 %v7618_v21  ;;  %v7651_v21 = vld [vmem:[#allocation7 + $0x188] ss:$12 sps:$4 sm:$0xff]  }
 0xd77   :  { %7140 = vmatprep.subr.bf16.mxu1 %v7622_v46 }
 0xe17   :  { %v4301_v59 = vpop.f32.mrf.mxu0  ;;  %v4342_v51 = vpop.f32.mrf.mxu1 }
 0xe18   :  { %v4348_v25 = vadd.f32 %v4301_v59, %v2641_v49  ;;  %v4362_v32 = vadd.f32 %v8911_v8, %v4342_v51  ;;  %v7652_v49 = vld [vmem:[#allocation2 + $0x8] sm:$0xff]   ;;  %v7653_v59 = vld [vmem:[#allocation2 + $0x10] sm:$0xff]  }
 0xe19   :  { %v4303_v52 = vpop.f32.mrf.mxu0  ;;  %v7118_v26 = vpop.f32.mrf.mxu1  ;;  %v8926_v51 = vld [vmem:[#allocation9 + $0x22c] ss:$12 sps:$4 sm:$0xff]  }
 0xe1a   :  { %v6471_v28 = vmul.f32 -1.442695, %v4348_v25  ;;  %v4349_v60 = vadd.f32 %v4303_v52, %v2643_v47  ;;  %v8928_v25 = vld [vmem:[#allocation9 + $0x228] ss:$12 sps:$4 sm:$0xff]   ;;  %v8930_v52 = vld [vmem:[#allocation9 + $0x230] ss:$12 sps:$4 sm:$0xff]  }
 0xe1b   :  { %v4305_v55 = vpop.f32.mrf.mxu0  ;;  %v4345_v3 = vpop.f32.mrf.mxu1  ;;  %v8935_v26 = vld [vmem:[#allocation9 + $0x214] ss:$12 sps:$4 sm:$0xff]   ;;  %v8955_v47 = vld [vmem:[#allocation9 + $0x1e4] ss:$12 sps:$4 sm:$0xff]  }
 0xe1c   :  { %7835 = vpow2.f32 %v6471_v28  ;;  %v6472_v62 = vmul.f32 -1.442695, %v4349_v60  ;;  %v8938_v28 = vld [vmem:[#allocation9 + $0x210] ss:$12 sps:$4 sm:$0xff]   ;;  %v8940_v55 = vld [vmem:[#allocation9 + $0x218] ss:$12 sps:$4 sm:$0xff]  }
 0xe1d   :  { %v4306_v33 = vpop.f32.mrf.mxu0  ;;  %v7119_v36 = vpop.f32.mrf.mxu1  ;;  %v8945_v3 = vld [vmem:[#allocation9 + $0x1fc] ss:$12 sps:$4 sm:$0xff]   ;;  %v8958_v60 = vld [vmem:[#allocation9 + $0x1e0] ss:$12 sps:$4 sm:$0xff]  }
 0xe1e   :  { %7837 = vpow2.f32 %v6472_v62  ;;  %v8948_v33 = vld [vmem:[#allocation9 + $0x1f8] ss:$12 sps:$4 sm:$0xff]   ;;  %v8950_v36 = vld [vmem:[#allocation9 + $0x200] ss:$12 sps:$4 sm:$0xff]   ;;  %v8960_v62 = vld [vmem:[#allocation9 + $0x1e8] ss:$12 sps:$4 sm:$0xff]  }
 0xe29   :  { %v7836_v11 = vpop.eup %7835 }
 0xe2a   :  { %v4356_v58 = vadd.f32 1.0, %v7836_v11  ;;  %v8962_v11 = vld [vmem:[#allocation9 + $0x1cc] ss:$12 sps:$4 sm:$0xff]  }
 0xe2b   :  { %v7838_v9 = vpop.eup %7837 }
 0xe2c   :  { %7839 = vrcp.f32 %v4356_v58  ;;  %v4357_v39 = vadd.f32 1.0, %v7838_v9  ;;  %v8967_v58 = vld [vmem:[#allocation9 + $0x1c8] ss:$12 sps:$4 sm:$0xff]   ;;  %v8969_v9 = vld [vmem:[#allocation9 + $0x1d0] ss:$12 sps:$4 sm:$0xff]  }
 0xe39   :  { %v7840_v34 = vpop.eup %7839 }
 0xe3a   :  { %v4363_v18 = vmul.f32 %v7840_v34, %v4362_v32  ;;  %v8973_v32 = vld [vmem:[#allocation9 + $0x1b4] ss:$12 sps:$4 sm:$0xff]   ;;  %v8977_v34 = vld [vmem:[#allocation9 + $0x1b0] ss:$12 sps:$4 sm:$0xff]  }
 0xe3c   :  { %v4364_v24 = vadd.f32 %v4363_v18, %v2708_v35  ;;  %v8979_v35 = vld [vmem:[#allocation9 + $0x1b8] ss:$12 sps:$4 sm:$0xff]   ;;  %v8983_v18 = vld [vmem:[#allocation9 + $0x19c] ss:$12 sps:$4 sm:$0xff]  }
 0xe3e   :  { %7841 = vtanh.f32 %v4364_v24  ;;  %v8987_v24 = vld [vmem:[#allocation9 + $0x198] ss:$12 sps:$4 sm:$0xff]  }
 0xe3f   :  { %7843 = vrcp.f32 %v4357_v39  ;;  %v8989_v39 = vld [vmem:[#allocation9 + $0x1a0] ss:$12 sps:$4 sm:$0xff]  }
 0xe4b   :  { %v7842_v54 = vpop.eup %7841 }
 0xe4c   :  { %v4366_v41 = vsub.f32 %v8877_v48, %v7842_v54  ;;  %v7844_v31 = vpop.eup %7843  ;;  %v7638_v48 = vld [vmem:[#allocation7 + $0x1cc] ss:$12 sps:$4 sm:$0xff]  }
 0xe4e   :  { %v4367_v42 = vmul.f32 %v7844_v31, %v4366_v41  ;;  %v8997_v41 = vld [vmem:[#allocation9 + $0x180] ss:$12 sps:$4 sm:$0xff]   ;;  %v8999_v31 = vld [vmem:[#allocation9 + $0x188] ss:$12 sps:$4 sm:$0xff]  }
 0xe50   :  { %v8917_v2 = vadd.f32 %v7842_v54, %v4367_v42  ;;  %v8993_v54 = vld [vmem:[#allocation9 + $0x184] ss:$12 sps:$4 sm:$0xff]   ;;  %v2645_v42 = vadd.f32 %v8686_v30, %v8603_v5 }
 0xe51   :  { %v4680_v5 = vld [vmem:[#allocation10 + $0x6] sm:$0x7] }
 0xe52   :  { %v4369_v7 = vpack.c.bf16 %v8917_v2, %v8917_v2  ;;  %v9012_v30 = vrot.slane %v4680_v5, %v8206_v56 }
 0xe54   :  { %4370 = vst [vmem:[#allocation2 + $0x18] sm:$0xf] %v4369_v7  ;;  %4567 = vmatmul.mubr.bf16.vlgmr.msra.gmra.mxu0 %v4369_v7  ;;  %7137 = vmatmul.mubr.bf16.vlgmr.msra.gmra.mxu1 %v4369_v7 }
 0xe55   :  { %4850 = vmatpush1.bf16.msra.mxu0 %v7619_v23  ;;  %7141 = vmatpush3.bf16.msra.mxu1 %v7622_v46  ;;  %v7648_v46 = vld [vmem:[#allocation7 + $0x180] ss:$12 sps:$4 sm:$0xff]  }
 0xe56   :  { %7156 = vmatprep.mubr.bf16.mxu1 %v7623_v4  ;;  %4851 = vmatprep.subr.bf16.mxu0 %v7626_v38 }
 0xe57   :  { %7142 = vmatprep.subr.bf16.mxu1 %v7627_v53  ;;  %4881 = vmatprep.mubr.bf16.mxu0 %v9380_v0 }
 0xe59   :  { %4852 = vmatpush1.bf16.msra.mxu0 %v7624_v40  ;;  %7143 = vmatpush3.bf16.msra.mxu1 %v7627_v53 }
 0xe5a   :  { %4853 = vmatprep.subr.bf16.mxu0 %v7630_v63  ;;  %7144 = vmatprep.subr.bf16.mxu1 %v7631_v1 }
 0xe5d   :  { %4854 = vmatpush1.bf16.msra.mxu0 %v7628_v37  ;;  %7145 = vmatpush3.bf16.msra.mxu1 %v7631_v1 }
 0xe5e   :  { %4855 = vmatprep.subr.bf16.mxu0 %v7634_v14  ;;  %7146 = vmatprep.subr.bf16.mxu1 %v7635_v45 }
 0xe61   :  { %4856 = vmatpush1.bf16.msra.mxu0 %v7632_v10  ;;  %7147 = vmatpush3.bf16.msra.mxu1 %v7635_v45  ;;  %v2647_v45 = vadd.f32 %v8690_v12, %v8610_v19  ;;  %v2711_v19 = vadd.f32 %v8688_v44, %v8622_v13 }
 0xe62   :  { %4857 = vmatprep.subr.bf16.mxu0 %v7638_v48  ;;  %7148 = vmatprep.subr.bf16.mxu1 %v7639_v43 }
 0xe65   :  { %4858 = vmatpush1.bf16.msra.mxu0 %v7636_v57  ;;  %7149 = vmatpush3.bf16.msra.mxu1 %v7639_v43 }
 0xe66   :  { %4859 = vmatprep.subr.bf16.mxu0 %v7642_v17  ;;  %7150 = vmatprep.subr.bf16.mxu1 %v7643_v50 }
 0xe69   :  { %4860 = vmatpush1.bf16.msra.mxu0 %v7640_v15  ;;  %7151 = vmatpush3.bf16.msra.mxu1 %v7643_v50 }
 0xe6a   :  { %4861 = vmatprep.subr.bf16.mxu0 %v7646_v16  ;;  %7152 = vmatprep.subr.bf16.mxu1 %v7647_v22 }
 0xe6d   :  { %4862 = vmatpush1.bf16.msra.mxu0 %v7644_v27  ;;  %7153 = vmatpush3.bf16.msra.mxu1 %v7647_v22 }
 0xe6e   :  { %4863 = vmatprep.subr.bf16.mxu0 %v7650_v20  ;;  %7154 = vmatprep.subr.bf16.mxu1 %v7651_v21 }
 0xe71   :  { %4864 = vmatpush1.bf16.msra.mxu0 %v7648_v46  ;;  %7155 = vmatpush3.bf16.msra.mxu1 %v7651_v21  ;;  %v9019_v46 = vrot.slane %v4680_v5, %v8212_v61 }
 0xe72   :  { %7164 = vmatprep.subr.bf16.mxu1 %v9382_v29  ;;  %5204 = vmatprep.subr.bf16.mxu0 %v8926_v51 }
 0xe74   :  { %4882 = vmatmul.mubr.bf16.vlgmr.msra.gmra.mxu0 %v7623_v4  ;;  %7157 = vmatmul.mubr.bf16.vlgmr.msra.gmra.mxu1 %v7652_v49 }
 0xe75   :  { %7160 = vmatprep.mubr.bf16.mxu1 %v7653_v59  ;;  %4891 = vmatprep.mubr.bf16.mxu0 %v9380_v0 }
 0xe76   :  { %5205 = vmatpush1.bf16.msra.mxu0 %v8928_v25  ;;  %7165 = vmatpush3.bf16.msra.mxu1 %v8930_v52 }
 0xe77   :  { %7166 = vmatprep.subr.bf16.mxu1 %v9382_v29  ;;  %5206 = vmatprep.subr.bf16.mxu0 %v8935_v26 }
 0xe7a   :  { %5207 = vmatpush1.bf16.msra.mxu0 %v8938_v28  ;;  %7167 = vmatpush3.bf16.msra.mxu1 %v8940_v55 }
 0xe7b   :  { %7168 = vmatprep.subr.bf16.mxu1 %v9382_v29  ;;  %5208 = vmatprep.subr.bf16.mxu0 %v8945_v3 }
 0xe7c   :  { %4892 = vmatmul.mubr.bf16.gmra.mxu0 %v7652_v49 }
 0xe7d   :  { %4901 = vmatprep.mubr.bf16.mxu0 %v9380_v0 }
 0xe7e   :  { %5209 = vmatpush1.bf16.msra.mxu0 %v8948_v33  ;;  %7169 = vmatpush3.bf16.msra.mxu1 %v8950_v36 }
 0xe7f   :  { %7170 = vmatprep.subr.bf16.mxu1 %v9382_v29  ;;  %5210 = vmatprep.subr.bf16.mxu0 %v8955_v47 }
 0xe82   :  { %5211 = vmatpush1.bf16.msra.mxu0 %v8958_v60  ;;  %7171 = vmatpush3.bf16.msra.mxu1 %v8960_v62 }
 0xe83   :  { %5212 = vmatprep.subr.bf16.mxu0 %v8962_v11  ;;  %7172 = vmatprep.subr.bf16.mxu1 %v9382_v29 }
 0xe84   :  { %4902 = vmatmul.mubr.bf16.gmra.mxu0 %v7653_v59 }
 0xe85   :  { %4911 = vmatprep.mubr.bf16.mxu0 %v9380_v0 }
 0xe86   :  { %5213 = vmatpush1.bf16.msra.mxu0 %v8967_v58  ;;  %7173 = vmatpush3.bf16.msra.mxu1 %v8969_v9 }
 0xe87   :  { %5214 = vmatprep.subr.bf16.mxu0 %v8973_v32  ;;  %7174 = vmatprep.subr.bf16.mxu1 %v9382_v29 }
 0xe8a   :  { %5215 = vmatpush1.bf16.msra.mxu0 %v8977_v34  ;;  %7175 = vmatpush3.bf16.msra.mxu1 %v8979_v35 }
 0xe8b   :  { %5216 = vmatprep.subr.bf16.mxu0 %v8983_v18  ;;  %7176 = vmatprep.subr.bf16.mxu1 %v9382_v29 }
 0xe8e   :  { %5217 = vmatpush1.bf16.msra.mxu0 %v8987_v24  ;;  %7177 = vmatpush3.bf16.msra.mxu1 %v8989_v39 }
 0xe8f   :  { %5218 = vmatprep.subr.bf16.mxu0 %v8993_v54  ;;  %7178 = vmatprep.subr.bf16.mxu1 %v9382_v29 }
 0xe92   :  { %5219 = vmatpush1.bf16.msra.mxu0 %v8997_v41  ;;  %7179 = vmatpush3.bf16.msra.mxu1 %v8999_v31 }
 0xe93   :  { %5310 = vmatprep.subr.bf16.mxu0 %v8926_v51  ;;  %7184 = vmatprep.subr.bf16.mxu1 %v9382_v29 }
 0xf14   :  { %v4568_v23 = vpop.f32.mrf.mxu0  ;;  %v4609_v7 = vpop.f32.mrf.mxu1 }
 0xf15   :  { %v4615_v38 = vadd.f32 %v4568_v23, %v2645_v42  ;;  %v4629_v15 = vadd.f32 %v8911_v8, %v4609_v7 }
 0xf16   :  { %v4570_v53 = vpop.f32.mrf.mxu0  ;;  %v7138_v4 = vpop.f32.mrf.mxu1 }
 0xf17   :  { %v6497_v40 = vmul.f32 -1.442695, %v4615_v38  ;;  %v4616_v10 = vadd.f32 %v4570_v53, %v2647_v45 }
 0xf18   :  { %v4572_v63 = vpop.f32.mrf.mxu0  ;;  %v4612_v1 = vpop.f32.mrf.mxu1 }
 0xf19   :  { %7845 = vpow2.f32 %v6497_v40  ;;  %v6498_v48 = vmul.f32 -1.442695, %v4616_v10  ;;  %v9028_v63 = vld [vmem:[%s9376_s4 + $0x2] ss:$0 sm:$0xff]  ;;  %v9031_v1 = vrot.slane %v4680_v5, %v8218_v6 }
 0xf1a   :  { %v4573_v37 = vpop.f32.mrf.mxu0  ;;  %v7139_v14 = vpop.f32.mrf.mxu1 }
 0xf1b   :  { %7847 = vpow2.f32 %v6498_v48 }
 0xf26   :  { %v7846_v43 = vpop.eup %7845 }
 0xf27   :  { %v4623_v57 = vadd.f32 1.0, %v7846_v43 }
 0xf28   :  { %v7848_v50 = vpop.eup %7847 }
 0xf29   :  { %7849 = vrcp.f32 %v4623_v57  ;;  %v4624_v21 = vadd.f32 1.0, %v7848_v50 }
 0xf34   :  { %v4883_v17 = vpop.f32.mrf.mxu0  ;;  %v9023_v4 = vpop.f32.mrf.mxu1 }
 0xf35   :  { %v4884_v16 = vadd.f32 %v4883_v17, %v9012_v30 }
 0xf36   :  { %v7850_v22 = vpop.eup %7849  ;;  %v4885_v56 = vpop.f32.mrf.mxu0 }
 0xf37   :  { %v4630_v12 = vmul.f32 %v7850_v22, %v4629_v15  ;;  %v6529_v27 = vmul.f32 -1.442695, %v4884_v16  ;;  %v4886_v49 = vadd.f32 %v4885_v56, %v9019_v46  ;;  %v4956_v40 = vpop.f32.mrf.mxu1 }
 0xf38   :  { %v4957_v14 = vadd.f32 %v4956_v40, %v9031_v1  ;;  %v4887_v50 = vpop.f32.mrf.mxu0 }
 0xf39   :  { %v4631_v20 = vadd.f32 %v4630_v12, %v2711_v19  ;;  %7851 = vpow2.f32 %v6529_v27  ;;  %v6530_v8 = vmul.f32 -1.442695, %v4886_v49 }
 0xf3a   :  { %v4889_v15 = vpop.f32.mrf.mxu0 }
 0xf3b   :  { %7853 = vtanh.f32 %v4631_v20 }
 0xf3c   :  { %7855 = vrcp.f32 %v4624_v21  ;;  %v9077_v16 = vpop.f32.mrf.mxu0  ;;  %v9089_v21 = vpop.f32.mrf.mxu1 }
 0xf3d   :  { %7857 = vpow2.f32 %v6530_v8 }
 0xf3e   :  { %v9079_v22 = vpop.f32.mrf.mxu0  ;;  %v4959_v49 = vpop.f32.mrf.mxu1 }
 0xf40   :  { %v9081_v19 = vpop.f32.mrf.mxu0 }
 0xf42   :  { %v9083_v12 = vpop.f32.mrf.mxu0 }
 0xf44   :  { %v9085_v27 = vpop.f32.mrf.mxu0 }
 0xf46   :  { %v7852_v59 = vpop.eup %7851  ;;  %v9087_v20 = vpop.f32.mrf.mxu0 }
 0xf47   :  { %v5028_v42 = vadd.f32 1.0, %v7852_v59 }
 0xf48   :  { %v7854_v23 = vpop.eup %7853  ;;  %v9091_v56 = vpop.f32.mrf.mxu0 }
 0xf49   :  { %v4633_v13 = vsub.f32 %v8917_v2, %v7854_v23  ;;  %7859 = vrcp.f32 %v5028_v42  ;;  %v7856_v44 = vpop.eup %7855 }
 0xf4a   :  { %v7858_v61 = vpop.eup %7857  ;;  %v9093_v8 = vpop.f32.mrf.mxu0 }
 0xf4b   :  { %v4634_v7 = vmul.f32 %v7856_v44, %v4633_v13  ;;  %v5029_v2 = vadd.f32 1.0, %v7858_v61  ;;  %v4888_v61 = vadd.f32 %v4887_v50, %v9012_v30 }
 0xf4d   :  { %v4635_v38 = vadd.f32 %v7854_v23, %v4634_v7  ;;  %7861 = vrcp.f32 %v5029_v2 }
 0xf4f   :  { %v4636_v53 = vpack.c.bf16 %v4635_v38, %v4635_v38 }
 0xf51   :  { %4637 = vst [vmem:[#allocation2 + $0x1c] sm:$0xf] %v4636_v53 }
 0xf56   :  { %v7860_v37 = vpop.eup %7859 }
 0xf57   :  { %v5034_v45 = vmul.f32 %v7860_v37, %v9028_v63 }
 0xf58   :  { %v7669_v10 = vld [vmem:[#allocation2 + $0x18] sm:$0xff]  }
 0xf59   :  { %v5035_v48 = vadd.f32 %v5034_v45, %v4957_v14  ;;  %4912 = vmatmul.mubr.bf16.gmra.mxu0 %v7669_v10  ;;  %7161 = vmatmul.mubr.bf16.gmra.mxu1 %v7669_v10 }
 0xf5a   :  { %5236 = vmatprep.mubr.bf16.mxu0 %v9380_v0  ;;  %7180 = vmatprep.mubr.msk.bf16.mxu1 %vm8078_vm0, %v9382_v29  ;;  %v7862_v43 = vpop.eup %7861 }
 0xf5b   :  { %7863 = vtanh.f32 %v5035_v48 }
 0xf68   :  { %v7864_v6 = vpop.eup %7863 }
 0xf69   :  { %v5037_v57 = vmul.f32 %v7864_v6, %v7862_v43 }
 0xf6b   :  { %v9038_v5 = vsub.f32 %v7864_v6, %v5037_v57 }
 0xf6d   :  { %v5039_v17 = vpack.c.bf16 %v9038_v5, %v9038_v5 }
 0xf6f   :  { %5237 = vmatmul.mubr.bf16.vlgmr.msra.gmra.mxu0 %v5039_v17  ;;  %7181 = vmatmul.mubr.bf16.vlgmr.msra.gmra.mxu1 %v5039_v17  ;;  %v4890_v17 = vadd.f32 %v4889_v15, %v9019_v46 }
 0xf70   :  { %5311 = vmatpush1.bf16.msra.mxu0 %v8928_v25  ;;  %7185 = vmatpush3.bf16.msra.mxu1 %v8930_v52 }
 0xf71   :  { %5312 = vmatprep.subr.bf16.mxu0 %v8935_v26  ;;  %7186 = vmatprep.subr.bf16.mxu1 %v9382_v29 }
 0xf72   :  { %5342 = vmatprep.mubr.bf16.mxu0 %v9380_v0  ;;  %7200 = vmatprep.mubr.msk.bf16.mxu1 %vm8078_vm0, %v9382_v29 }
 0xf74   :  { %5313 = vmatpush1.bf16.msra.mxu0 %v8938_v28  ;;  %7187 = vmatpush3.bf16.msra.mxu1 %v8940_v55 }
 0xf75   :  { %5314 = vmatprep.subr.bf16.mxu0 %v8945_v3  ;;  %7188 = vmatprep.subr.bf16.mxu1 %v9382_v29 }
 0xf78   :  { %5315 = vmatpush1.bf16.msra.mxu0 %v8948_v33  ;;  %7189 = vmatpush3.bf16.msra.mxu1 %v8950_v36 }
 0xf79   :  { %5316 = vmatprep.subr.bf16.mxu0 %v8955_v47  ;;  %7190 = vmatprep.subr.bf16.mxu1 %v9382_v29 }
 0xf7c   :  { %5317 = vmatpush1.bf16.msra.mxu0 %v8958_v60  ;;  %7191 = vmatpush3.bf16.msra.mxu1 %v8960_v62 }
 0xf7d   :  { %5318 = vmatprep.subr.bf16.mxu0 %v8962_v11  ;;  %7192 = vmatprep.subr.bf16.mxu1 %v9382_v29 }
 0xf80   :  { %5319 = vmatpush1.bf16.msra.mxu0 %v8967_v58  ;;  %7193 = vmatpush3.bf16.msra.mxu1 %v8969_v9 }
 0xf81   :  { %5320 = vmatprep.subr.bf16.mxu0 %v8973_v32  ;;  %7194 = vmatprep.subr.bf16.mxu1 %v9382_v29 }
 0xf84   :  { %5321 = vmatpush1.bf16.msra.mxu0 %v8977_v34  ;;  %7195 = vmatpush3.bf16.msra.mxu1 %v8979_v35 }
 0xf85   :  { %5322 = vmatprep.subr.bf16.mxu0 %v8983_v18  ;;  %7196 = vmatprep.subr.bf16.mxu1 %v9382_v29 }
 0xf88   :  { %5323 = vmatpush1.bf16.msra.mxu0 %v8987_v24  ;;  %7197 = vmatpush3.bf16.msra.mxu1 %v8989_v39 }
 0xf89   :  { %5324 = vmatprep.subr.bf16.mxu0 %v8993_v54  ;;  %7198 = vmatprep.subr.bf16.mxu1 %v9382_v29 }
 0xf8c   :  { %5325 = vmatpush1.bf16.msra.mxu0 %v8997_v41  ;;  %7199 = vmatpush3.bf16.msra.mxu1 %v8999_v31 }
 0xf8d   :  { %5416 = vmatprep.subr.bf16.mxu0 %v8926_v51  ;;  %7204 = vmatprep.subr.bf16.mxu1 %v9382_v29 }
0x1019   :  { %v9095_v59 = vpop.f32.mrf.mxu0  ;;  %v9097_v42 = vpop.f32.mrf.mxu1 }
0x101b   :  { %v9099_v23 = vpop.f32.mrf.mxu0  ;;  %v9101_v13 = vpop.f32.mrf.mxu1 }
0x101d   :  { %v9103_v44 = vpop.f32.mrf.mxu0  ;;  %v9105_v7 = vpop.f32.mrf.mxu1 }
0x101e   :  { %9384 = vst [vmem:[#allocation18_spill] sm:$0xff] %v9103_v44  ;;  %9385 = vst [vmem:[#allocation19_spill] sm:$0xff] %v9105_v7 }
0x101f   :  { %v9107_v38 = vpop.f32.mrf.mxu0  ;;  %v9109_v53 = vpop.f32.mrf.mxu1 }
0x1020   :  { %9386 = vst [vmem:[#allocation20_spill] sm:$0xff] %v9107_v38 }
0x102f   :  { %v5238_v40 = vpop.f32.mrf.mxu0  ;;  %v5279_v37 = vpop.f32.mrf.mxu1 }
0x1030   :  { %v5285_v2 = vadd.f32 %v5238_v40, %v4888_v61  ;;  %v5299_v44 = vadd.f32 %v9028_v63, %v5279_v37  ;;  %v4960_v40 = vadd.f32 %v4959_v49, %v9031_v1  ;;  %v9387_v49 = vmov 0.0  }
0x1031   :  { %v5240_v14 = vpop.f32.mrf.mxu0  ;;  %v7182_v45 = vpop.f32.mrf.mxu1 }
0x1032   :  { %v6555_v10 = vmul.f32 -1.442695, %v5285_v2  ;;  %v5286_v0 = vadd.f32 %v5240_v14, %v4890_v17 }
0x1033   :  { %v5242_v48 = vpop.f32.mrf.mxu0  ;;  %v5282_v43 = vpop.f32.mrf.mxu1 }
0x1034   :  { %7865 = vpow2.f32 %v6555_v10  ;;  %v6556_v29 = vmul.f32 -1.442695, %v5286_v0 }
0x1035   :  { %v5243_v6 = vpop.f32.mrf.mxu0  ;;  %v7183_v57 = vpop.f32.mrf.mxu1 }
0x1036   :  { %7867 = vpow2.f32 %v6556_v29 }
0x1041   :  { %v7866_v7 = vpop.eup %7865 }
0x1042   :  { %v5293_v38 = vadd.f32 1.0, %v7866_v7 }
0x1043   :  { %v7868_v50 = vpop.eup %7867 }
0x1044   :  { %7869 = vrcp.f32 %v5293_v38  ;;  %v5294_v48 = vadd.f32 1.0, %v7868_v50 }
0x1051   :  { %v7870_v61 = vpop.eup %7869 }
0x1052   :  { %v5300_v2 = vmul.f32 %v7870_v61, %v5299_v44  ;;  %v9388_v44 = vmov 0  }
0x1054   :  { %v5301_v45 = vadd.f32 %v5300_v2, %v4960_v40 }
0x1056   :  { %7871 = vtanh.f32 %v5301_v45  ;;  %v4896_v45 = vadd.f32 %v9079_v22, %v9019_v46 }
0x1057   :  { %7873 = vrcp.f32 %v5294_v48 }
0x1063   :  { %v7872_v10 = vpop.eup %7871 }
0x1064   :  { %v5303_v15 = vsub.f32 %v9038_v5, %v7872_v10  ;;  %v7874_v14 = vpop.eup %7873  ;;  %v4894_v5 = vadd.f32 %v9077_v16, %v9012_v30 }
0x1066   :  { %v5304_v0 = vmul.f32 %v7874_v14, %v5303_v15 }
0x1068   :  { %v9116_v43 = vadd.f32 %v7872_v10, %v5304_v0 }
0x106a   :  { %v5306_v29 = vpack.c.bf16 %v9116_v43, %v9116_v43 }
0x106c   :  { %5343 = vmatmul.mubr.bf16.vlgmr.msra.gmra.mxu0 %v5306_v29  ;;  %7201 = vmatmul.mubr.bf16.vlgmr.msra.gmra.mxu1 %v5306_v29 }
0x106d   :  { %5417 = vmatpush1.bf16.msra.mxu0 %v8928_v25  ;;  %7205 = vmatpush3.bf16.msra.mxu1 %v8930_v52 }
0x106e   :  { %5418 = vmatprep.subr.bf16.mxu0 %v8935_v26  ;;  %7206 = vmatprep.subr.bf16.mxu1 %v9387_v49 }
0x106f   :  { %5448 = vmatprep.mubr.bf16.mxu0 %v9388_v44  ;;  %7220 = vmatprep.mubr.msk.bf16.mxu1 %vm8078_vm0, %v9387_v49 }
0x1071   :  { %5419 = vmatpush1.bf16.msra.mxu0 %v8938_v28  ;;  %7207 = vmatpush3.bf16.msra.mxu1 %v8940_v55 }
0x1072   :  { %5420 = vmatprep.subr.bf16.mxu0 %v8945_v3  ;;  %7208 = vmatprep.subr.bf16.mxu1 %v9387_v49 }
0x1075   :  { %5421 = vmatpush1.bf16.msra.mxu0 %v8948_v33  ;;  %7209 = vmatpush3.bf16.msra.mxu1 %v8950_v36 }
0x1076   :  { %5422 = vmatprep.subr.bf16.mxu0 %v8955_v47  ;;  %7210 = vmatprep.subr.bf16.mxu1 %v9387_v49 }
0x1079   :  { %5423 = vmatpush1.bf16.msra.mxu0 %v8958_v60  ;;  %7211 = vmatpush3.bf16.msra.mxu1 %v8960_v62 }
0x107a   :  { %5424 = vmatprep.subr.bf16.mxu0 %v8962_v11  ;;  %7212 = vmatprep.subr.bf16.mxu1 %v9387_v49 }
0x107d   :  { %5425 = vmatpush1.bf16.msra.mxu0 %v8967_v58  ;;  %7213 = vmatpush3.bf16.msra.mxu1 %v8969_v9 }
0x107e   :  { %5426 = vmatprep.subr.bf16.mxu0 %v8973_v32  ;;  %7214 = vmatprep.subr.bf16.mxu1 %v9387_v49 }
0x1081   :  { %5427 = vmatpush1.bf16.msra.mxu0 %v8977_v34  ;;  %7215 = vmatpush3.bf16.msra.mxu1 %v8979_v35 }
0x1082   :  { %5428 = vmatprep.subr.bf16.mxu0 %v8983_v18  ;;  %7216 = vmatprep.subr.bf16.mxu1 %v9387_v49 }
0x1085   :  { %5429 = vmatpush1.bf16.msra.mxu0 %v8987_v24  ;;  %7217 = vmatpush3.bf16.msra.mxu1 %v8989_v39 }
0x1086   :  { %5430 = vmatprep.subr.bf16.mxu0 %v8993_v54  ;;  %7218 = vmatprep.subr.bf16.mxu1 %v9387_v49 }
0x1089   :  { %5431 = vmatpush1.bf16.msra.mxu0 %v8997_v41  ;;  %7219 = vmatpush3.bf16.msra.mxu1 %v8999_v31 }
0x108a   :  { %5522 = vmatprep.subr.bf16.mxu0 %v8926_v51  ;;  %7224 = vmatprep.subr.bf16.mxu1 %v9387_v49 }
0x112c   :  { %v5344_v7 = vpop.f32.mrf.mxu0  ;;  %v5385_v38 = vpop.f32.mrf.mxu1 }
0x112d   :  { %v5391_v37 = vadd.f32 %v5344_v7, %v4894_v5  ;;  %v5405_v0 = vadd.f32 %v9028_v63, %v5385_v38  ;;  %v4965_v5 = vadd.f32 %v9023_v4, %v9031_v1  ;;  %v4898_v4 = vadd.f32 %v9081_v19, %v9012_v30 }
0x112e   :  { %v5346_v6 = vpop.f32.mrf.mxu0  ;;  %v7202_v57 = vpop.f32.mrf.mxu1 }
0x112f   :  { %v6557_v17 = vmul.f32 -1.442695, %v5391_v37  ;;  %v5392_v48 = vadd.f32 %v5346_v6, %v4896_v45 }
0x1130   :  { %v5348_v50 = vpop.f32.mrf.mxu0  ;;  %v5388_v61 = vpop.f32.mrf.mxu1 }
0x1131   :  { %7875 = vpow2.f32 %v6557_v17  ;;  %v6558_v10 = vmul.f32 -1.442695, %v5392_v48 }
0x1132   :  { %v5349_v40 = vpop.f32.mrf.mxu0  ;;  %v7203_v2 = vpop.f32.mrf.mxu1 }
0x1133   :  { %7877 = vpow2.f32 %v6558_v10 }
0x113e   :  { %v7876_v15 = vpop.eup %7875 }
0x113f   :  { %v5399_v14 = vadd.f32 1.0, %v7876_v15 }
0x1140   :  { %v7878_v16 = vpop.eup %7877 }
0x1141   :  { %7879 = vrcp.f32 %v5399_v14  ;;  %v5400_v57 = vadd.f32 1.0, %v7878_v16 }
0x114e   :  { %v7880_v29 = vpop.eup %7879 }
0x114f   :  { %v5406_v7 = vmul.f32 %v7880_v29, %v5405_v0  ;;  %v4900_v29 = vadd.f32 %v9083_v12, %v9019_v46 }
0x1151   :  { %v5407_v37 = vadd.f32 %v5406_v7, %v4965_v5 }
0x1153   :  { %7881 = vtanh.f32 %v5407_v37 }
0x1154   :  { %7883 = vrcp.f32 %v5400_v57 }
0x1160   :  { %v7882_v17 = vpop.eup %7881 }
0x1161   :  { %v5409_v22 = vsub.f32 %v9116_v43, %v7882_v17  ;;  %v7884_v6 = vpop.eup %7883 }
0x1163   :  { %v5410_v50 = vmul.f32 %v7884_v6, %v5409_v22  ;;  %v4968_v6 = vadd.f32 %v9089_v21, %v9031_v1  ;;  %v4904_v21 = vadd.f32 %v9085_v27, %v9012_v30 }
0x1165   :  { %v9163_v61 = vadd.f32 %v7882_v17, %v5410_v50 }
0x1167   :  { %v5412_v40 = vpack.c.bf16 %v9163_v61, %v9163_v61 }
0x1169   :  { %5449 = vmatmul.mubr.bf16.vlgmr.msra.gmra.mxu0 %v5412_v40  ;;  %7221 = vmatmul.mubr.bf16.vlgmr.msra.gmra.mxu1 %v5412_v40 }
0x116a   :  { %5523 = vmatpush1.bf16.msra.mxu0 %v8928_v25  ;;  %7225 = vmatpush3.bf16.msra.mxu1 %v8930_v52 }
0x116b   :  { %5524 = vmatprep.subr.bf16.mxu0 %v8935_v26  ;;  %7226 = vmatprep.subr.bf16.mxu1 %v9387_v49 }
0x116c   :  { %5554 = vmatprep.mubr.bf16.mxu0 %v9388_v44  ;;  %7240 = vmatprep.mubr.msk.bf16.mxu1 %vm8078_vm0, %v9387_v49 }
0x116e   :  { %5525 = vmatpush1.bf16.msra.mxu0 %v8938_v28  ;;  %7227 = vmatpush3.bf16.msra.mxu1 %v8940_v55 }
0x116f   :  { %5526 = vmatprep.subr.bf16.mxu0 %v8945_v3  ;;  %7228 = vmatprep.subr.bf16.mxu1 %v9387_v49 }
0x1172   :  { %5527 = vmatpush1.bf16.msra.mxu0 %v8948_v33  ;;  %7229 = vmatpush3.bf16.msra.mxu1 %v8950_v36 }
0x1173   :  { %5528 = vmatprep.subr.bf16.mxu0 %v8955_v47  ;;  %7230 = vmatprep.subr.bf16.mxu1 %v9387_v49 }
0x1176   :  { %5529 = vmatpush1.bf16.msra.mxu0 %v8958_v60  ;;  %7231 = vmatpush3.bf16.msra.mxu1 %v8960_v62 }
0x1177   :  { %5530 = vmatprep.subr.bf16.mxu0 %v8962_v11  ;;  %7232 = vmatprep.subr.bf16.mxu1 %v9387_v49 }
0x117a   :  { %5531 = vmatpush1.bf16.msra.mxu0 %v8967_v58  ;;  %7233 = vmatpush3.bf16.msra.mxu1 %v8969_v9 }
0x117b   :  { %5532 = vmatprep.subr.bf16.mxu0 %v8973_v32  ;;  %7234 = vmatprep.subr.bf16.mxu1 %v9387_v49 }
0x117e   :  { %5533 = vmatpush1.bf16.msra.mxu0 %v8977_v34  ;;  %7235 = vmatpush3.bf16.msra.mxu1 %v8979_v35 }
0x117f   :  { %5534 = vmatprep.subr.bf16.mxu0 %v8983_v18  ;;  %7236 = vmatprep.subr.bf16.mxu1 %v9387_v49 }
0x1182   :  { %5535 = vmatpush1.bf16.msra.mxu0 %v8987_v24  ;;  %7237 = vmatpush3.bf16.msra.mxu1 %v8989_v39 }
0x1183   :  { %5536 = vmatprep.subr.bf16.mxu0 %v8993_v54  ;;  %7238 = vmatprep.subr.bf16.mxu1 %v9387_v49 }
0x1186   :  { %5537 = vmatpush1.bf16.msra.mxu0 %v8997_v41  ;;  %7239 = vmatpush3.bf16.msra.mxu1 %v8999_v31 }
0x1187   :  { %5628 = vmatprep.subr.bf16.mxu0 %v8926_v51  ;;  %7244 = vmatprep.subr.bf16.mxu1 %v9387_v49 }
0x1229   :  { %v5450_v43 = vpop.f32.mrf.mxu0  ;;  %v5491_v38 = vpop.f32.mrf.mxu1 }
0x122a   :  { %v5497_v2 = vadd.f32 %v5450_v43, %v4898_v4  ;;  %v5511_v17 = vadd.f32 %v9028_v63, %v5491_v38 }
0x122b   :  { %v5452_v45 = vpop.f32.mrf.mxu0  ;;  %v7222_v48 = vpop.f32.mrf.mxu1 }
0x122c   :  { %v6559_v10 = vmul.f32 -1.442695, %v5497_v2  ;;  %v5498_v5 = vadd.f32 %v5452_v45, %v4900_v29 }
0x122d   :  { %v5454_v15 = vpop.f32.mrf.mxu0  ;;  %v5494_v14 = vpop.f32.mrf.mxu1 }
0x122e   :  { %7885 = vpow2.f32 %v6559_v10  ;;  %v6560_v7 = vmul.f32 -1.442695, %v5498_v5 }
0x122f   :  { %v5455_v16 = vpop.f32.mrf.mxu0  ;;  %v7223_v0 = vpop.f32.mrf.mxu1 }
0x1230   :  { %7887 = vpow2.f32 %v6560_v7 }
0x123b   :  { %v7886_v37 = vpop.eup %7885 }
0x123c   :  { %v5505_v57 = vadd.f32 1.0, %v7886_v37 }
0x123d   :  { %v7888_v19 = vpop.eup %7887 }
0x123e   :  { %7889 = vrcp.f32 %v5505_v57  ;;  %v5506_v4 = vadd.f32 1.0, %v7888_v19  ;;  %v4906_v57 = vadd.f32 %v9087_v20, %v9019_v46 }
0x124b   :  { %v7890_v22 = vpop.eup %7889 }
0x124c   :  { %v5512_v50 = vmul.f32 %v7890_v22, %v5511_v17 }
0x124e   :  { %v5513_v40 = vadd.f32 %v5512_v50, %v4968_v6 }
0x1250   :  { %7891 = vtanh.f32 %v5513_v40 }
0x1251   :  { %7893 = vrcp.f32 %v5506_v4  ;;  %v4973_v4 = vadd.f32 %v9101_v13, %v9031_v1  ;;  %v4908_v13 = vadd.f32 %v9091_v56, %v9012_v30 }
0x125d   :  { %v7892_v43 = vpop.eup %7891 }
0x125e   :  { %v5515_v12 = vsub.f32 %v9163_v61, %v7892_v43  ;;  %v7894_v2 = vpop.eup %7893 }
0x1260   :  { %v5516_v45 = vmul.f32 %v7894_v2, %v5515_v12 }
0x1262   :  { %v9210_v48 = vadd.f32 %v7892_v43, %v5516_v45 }
0x1264   :  { %v5518_v10 = vpack.c.bf16 %v9210_v48, %v9210_v48 }
0x1266   :  { %5555 = vmatmul.mubr.bf16.vlgmr.msra.gmra.mxu0 %v5518_v10  ;;  %7241 = vmatmul.mubr.bf16.vlgmr.msra.gmra.mxu1 %v5518_v10 }
0x1267   :  { %5629 = vmatpush1.bf16.msra.mxu0 %v8928_v25  ;;  %7245 = vmatpush3.bf16.msra.mxu1 %v8930_v52 }
0x1268   :  { %5630 = vmatprep.subr.bf16.mxu0 %v8935_v26  ;;  %7246 = vmatprep.subr.bf16.mxu1 %v9387_v49 }
0x1269   :  { %5660 = vmatprep.mubr.bf16.mxu0 %v9388_v44  ;;  %7260 = vmatprep.mubr.msk.bf16.mxu1 %vm8078_vm0, %v9387_v49 }
0x126b   :  { %5631 = vmatpush1.bf16.msra.mxu0 %v8938_v28  ;;  %7247 = vmatpush3.bf16.msra.mxu1 %v8940_v55 }
0x126c   :  { %5632 = vmatprep.subr.bf16.mxu0 %v8945_v3  ;;  %7248 = vmatprep.subr.bf16.mxu1 %v9387_v49 }
0x126f   :  { %5633 = vmatpush1.bf16.msra.mxu0 %v8948_v33  ;;  %7249 = vmatpush3.bf16.msra.mxu1 %v8950_v36 }
0x1270   :  { %5634 = vmatprep.subr.bf16.mxu0 %v8955_v47  ;;  %7250 = vmatprep.subr.bf16.mxu1 %v9387_v49 }
0x1273   :  { %5635 = vmatpush1.bf16.msra.mxu0 %v8958_v60  ;;  %7251 = vmatpush3.bf16.msra.mxu1 %v8960_v62 }
0x1274   :  { %5636 = vmatprep.subr.bf16.mxu0 %v8962_v11  ;;  %7252 = vmatprep.subr.bf16.mxu1 %v9387_v49 }
0x1277   :  { %5637 = vmatpush1.bf16.msra.mxu0 %v8967_v58  ;;  %7253 = vmatpush3.bf16.msra.mxu1 %v8969_v9 }
0x1278   :  { %5638 = vmatprep.subr.bf16.mxu0 %v8973_v32  ;;  %7254 = vmatprep.subr.bf16.mxu1 %v9387_v49 }
0x127b   :  { %5639 = vmatpush1.bf16.msra.mxu0 %v8977_v34  ;;  %7255 = vmatpush3.bf16.msra.mxu1 %v8979_v35 }
0x127c   :  { %5640 = vmatprep.subr.bf16.mxu0 %v8983_v18  ;;  %7256 = vmatprep.subr.bf16.mxu1 %v9387_v49 }
0x127f   :  { %5641 = vmatpush1.bf16.msra.mxu0 %v8987_v24  ;;  %7257 = vmatpush3.bf16.msra.mxu1 %v8989_v39 }
0x1280   :  { %5642 = vmatprep.subr.bf16.mxu0 %v8993_v54  ;;  %7258 = vmatprep.subr.bf16.mxu1 %v9387_v49 }
0x1283   :  { %5643 = vmatpush1.bf16.msra.mxu0 %v8997_v41  ;;  %7259 = vmatpush3.bf16.msra.mxu1 %v8999_v31 }
0x1284   :  { %5734 = vmatprep.subr.bf16.mxu0 %v8926_v51  ;;  %7264 = vmatprep.subr.bf16.mxu1 %v9387_v49 }
0x1326   :  { %v5556_v61 = vpop.f32.mrf.mxu0  ;;  %v5597_v38 = vpop.f32.mrf.mxu1 }
0x1327   :  { %v5603_v15 = vadd.f32 %v5556_v61, %v4904_v21  ;;  %v5617_v50 = vadd.f32 %v9028_v63, %v5597_v38 }
0x1328   :  { %v5558_v14 = vpop.f32.mrf.mxu0  ;;  %v7242_v16 = vpop.f32.mrf.mxu1 }
0x1329   :  { %v6561_v0 = vmul.f32 -1.442695, %v5603_v15  ;;  %v5604_v19 = vadd.f32 %v5558_v14, %v4906_v57 }
0x132a   :  { %v5560_v29 = vpop.f32.mrf.mxu0  ;;  %v5600_v5 = vpop.f32.mrf.mxu1 }
0x132b   :  { %7895 = vpow2.f32 %v6561_v0  ;;  %v6562_v17 = vmul.f32 -1.442695, %v5604_v19  ;;  %v4910_v19 = vadd.f32 %v9093_v8, %v9019_v46 }
0x132c   :  { %v5561_v7 = vpop.f32.mrf.mxu0  ;;  %v7243_v37 = vpop.f32.mrf.mxu1 }
0x132d   :  { %7897 = vpow2.f32 %v6562_v17 }
0x1338   :  { %v7896_v22 = vpop.eup %7895 }
0x1339   :  { %v5611_v6 = vadd.f32 1.0, %v7896_v22 }
0x133a   :  { %v7898_v27 = vpop.eup %7897 }
0x133b   :  { %7899 = vrcp.f32 %v5611_v6  ;;  %v5612_v2 = vadd.f32 1.0, %v7898_v27 }
0x1348   :  { %v7900_v40 = vpop.eup %7899 }
0x1349   :  { %v5618_v43 = vmul.f32 %v7900_v40, %v5617_v50  ;;  %v4976_v40 = vadd.f32 %v9109_v53, %v9031_v1 }
0x134b   :  { %v5619_v12 = vadd.f32 %v5618_v43, %v4973_v4 }
0x134d   :  { %7901 = vtanh.f32 %v5619_v12 }
0x134e   :  { %7903 = vrcp.f32 %v5612_v2 }
0x135a   :  { %v7902_v45 = vpop.eup %7901 }
0x135b   :  { %v5621_v20 = vsub.f32 %v9210_v48, %v7902_v45  ;;  %v7904_v10 = vpop.eup %7903 }
0x135d   :  { %v5622_v21 = vmul.f32 %v7904_v10, %v5621_v20 }
0x135f   :  { %v9257_v61 = vadd.f32 %v7902_v45, %v5622_v21 }
0x1361   :  { %v5624_v15 = vpack.c.bf16 %v9257_v61, %v9257_v61 }
0x1363   :  { %5661 = vmatmul.mubr.bf16.vlgmr.msra.gmra.mxu0 %v5624_v15  ;;  %7261 = vmatmul.mubr.bf16.vlgmr.msra.gmra.mxu1 %v5624_v15 }
0x1364   :  { %5735 = vmatpush1.bf16.msra.mxu0 %v8928_v25  ;;  %7265 = vmatpush3.bf16.msra.mxu1 %v8930_v52 }
0x1365   :  { %5736 = vmatprep.subr.bf16.mxu0 %v8935_v26  ;;  %7266 = vmatprep.subr.bf16.mxu1 %v9387_v49 }
0x1366   :  { %5766 = vmatprep.mubr.bf16.mxu0 %v9388_v44  ;;  %7280 = vmatprep.mubr.msk.bf16.mxu1 %vm8078_vm0, %v9387_v49 }
0x1368   :  { %5737 = vmatpush1.bf16.msra.mxu0 %v8938_v28  ;;  %7267 = vmatpush3.bf16.msra.mxu1 %v8940_v55 }
0x1369   :  { %5738 = vmatprep.subr.bf16.mxu0 %v8945_v3  ;;  %7268 = vmatprep.subr.bf16.mxu1 %v9387_v49 }
0x136c   :  { %5739 = vmatpush1.bf16.msra.mxu0 %v8948_v33  ;;  %7269 = vmatpush3.bf16.msra.mxu1 %v8950_v36 }
0x136d   :  { %5740 = vmatprep.subr.bf16.mxu0 %v8955_v47  ;;  %7270 = vmatprep.subr.bf16.mxu1 %v9387_v49 }
0x1370   :  { %5741 = vmatpush1.bf16.msra.mxu0 %v8958_v60  ;;  %7271 = vmatpush3.bf16.msra.mxu1 %v8960_v62 }
0x1371   :  { %5742 = vmatprep.subr.bf16.mxu0 %v8962_v11  ;;  %7272 = vmatprep.subr.bf16.mxu1 %v9387_v49 }
0x1374   :  { %5743 = vmatpush1.bf16.msra.mxu0 %v8967_v58  ;;  %7273 = vmatpush3.bf16.msra.mxu1 %v8969_v9 }
0x1375   :  { %5744 = vmatprep.subr.bf16.mxu0 %v8973_v32  ;;  %7274 = vmatprep.subr.bf16.mxu1 %v9387_v49 }
0x1378   :  { %5745 = vmatpush1.bf16.msra.mxu0 %v8977_v34  ;;  %7275 = vmatpush3.bf16.msra.mxu1 %v8979_v35 }
0x1379   :  { %5746 = vmatprep.subr.bf16.mxu0 %v8983_v18  ;;  %7276 = vmatprep.subr.bf16.mxu1 %v9387_v49 }
0x137c   :  { %5747 = vmatpush1.bf16.msra.mxu0 %v8987_v24  ;;  %7277 = vmatpush3.bf16.msra.mxu1 %v8989_v39 }
0x137d   :  { %5748 = vmatprep.subr.bf16.mxu0 %v8993_v54  ;;  %7278 = vmatprep.subr.bf16.mxu1 %v9387_v49 }
0x1380   :  { %5749 = vmatpush1.bf16.msra.mxu0 %v8997_v41  ;;  %7279 = vmatpush3.bf16.msra.mxu1 %v8999_v31 }
0x1381   :  { %5840 = vmatprep.subr.bf16.mxu0 %v8926_v51  ;;  %7284 = vmatprep.subr.bf16.mxu1 %v9387_v49 }
0x1423   :  { %v5662_v48 = vpop.f32.mrf.mxu0  ;;  %v5703_v38 = vpop.f32.mrf.mxu1 }
0x1424   :  { %v5709_v14 = vadd.f32 %v5662_v48, %v4908_v13  ;;  %v5723_v27 = vadd.f32 %v9028_v63, %v5703_v38  ;;  %v7687_v13 = vld [vmem:[#allocation12 + $0x38] sm:$0xff]   ;;  %v7689_v48 = vld [vmem:[#allocation12 + $0x28] sm:$0xff]   ;;  %v7690_v38 = vld [vmem:[#allocation12 + $0x20] sm:$0xff]  }
0x1425   :  { %v5664_v16 = vpop.f32.mrf.mxu0  ;;  %v7262_v0 = vpop.f32.mrf.mxu1 }
0x1426   :  { %v6563_v29 = vmul.f32 -1.442695, %v5709_v14  ;;  %v5710_v51 = vadd.f32 %v5664_v16, %v4910_v19  ;;  %v7691_v14 = vld [vmem:[#allocation12 + $0x18] sm:$0xff]   ;;  %v7692_v16 = vld [vmem:[#allocation12 + $0x10] sm:$0xff]   ;;  %v7693_v0 = vld [vmem:[#allocation12 + $0x8] sm:$0xff]  }
0x1427   :  { %v5666_v5 = vpop.f32.mrf.mxu0  ;;  %v5706_v7 = vpop.f32.mrf.mxu1 }
0x1428   :  { %7905 = vpow2.f32 %v6563_v29  ;;  %v6564_v17 = vmul.f32 -1.442695, %v5710_v51  ;;  %v7694_v29 = vld [vmem:[#allocation12] sm:$0xff]   ;;  %v9389_v5 = vld [vmem:[#allocation18_spill] sm:$0xff] }
0x1429   :  { %v5667_v37 = vpop.f32.mrf.mxu0  ;;  %v7263_v57 = vpop.f32.mrf.mxu1  ;;  %v4918_v7 = vadd.f32 %v9389_v5, %v9012_v30 }
0x142a   :  { %7907 = vpow2.f32 %v6564_v17 }
0x1435   :  { %v7906_v22 = vpop.eup %7905 }
0x1436   :  { %v5717_v6 = vadd.f32 1.0, %v7906_v22 }
0x1437   :  { %v7908_v56 = vpop.eup %7907 }
0x1438   :  { %7909 = vrcp.f32 %v5717_v6  ;;  %v5718_v12 = vadd.f32 1.0, %v7908_v56 }
0x1445   :  { %v7910_v50 = vpop.eup %7909 }
0x1446   :  { %v5724_v4 = vmul.f32 %v7910_v50, %v5723_v27 }
0x1448   :  { %v5725_v43 = vadd.f32 %v5724_v4, %v4976_v40  ;;  %v9390_v40 = vld [vmem:[#allocation20_spill] sm:$0xff] }
0x1449   :  { %v4920_v4 = vadd.f32 %v9390_v40, %v9019_v46 }
0x144a   :  { %7911 = vtanh.f32 %v5725_v43 }
0x144b   :  { %7913 = vrcp.f32 %v5718_v12 }
0x1457   :  { %v7912_v2 = vpop.eup %7911 }
0x1458   :  { %v5727_v8 = vsub.f32 %v9257_v61, %v7912_v2  ;;  %v7914_v45 = vpop.eup %7913 }
0x145a   :  { %v5728_v20 = vmul.f32 %v7914_v45, %v5727_v8 }
0x145c   :  { %v9304_v10 = vadd.f32 %v7912_v2, %v5728_v20  ;;  %v9391_v20 = vld [vmem:[#allocation19_spill] sm:$0xff] }
0x145e   :  { %v5730_v21 = vpack.c.bf16 %v9304_v10, %v9304_v10 }
0x1460   :  { %5767 = vmatmul.mubr.bf16.vlgmr.msra.gmra.mxu0 %v5730_v21  ;;  %7281 = vmatmul.mubr.bf16.vlgmr.msra.gmra.mxu1 %v5730_v21 }
0x1461   :  { %5841 = vmatpush1.bf16.msra.mxu0 %v8928_v25  ;;  %7285 = vmatpush3.bf16.msra.mxu1 %v8930_v52  ;;  %v4914_v25 = vadd.f32 %v9095_v59, %v9012_v30 }
0x1462   :  { %5842 = vmatprep.subr.bf16.mxu0 %v8935_v26  ;;  %7286 = vmatprep.subr.bf16.mxu1 %v9387_v49 }
0x1463   :  { %5872 = vmatprep.mubr.bf16.mxu0 %v9388_v44  ;;  %7300 = vmatprep.mubr.msk.bf16.mxu1 %vm8078_vm0, %v9387_v49 }
0x1465   :  { %5843 = vmatpush1.bf16.msra.mxu0 %v8938_v28  ;;  %7287 = vmatpush3.bf16.msra.mxu1 %v8940_v55 }
0x1466   :  { %5844 = vmatprep.subr.bf16.mxu0 %v8945_v3  ;;  %7288 = vmatprep.subr.bf16.mxu1 %v9387_v49 }
0x1469   :  { %5845 = vmatpush1.bf16.msra.mxu0 %v8948_v33  ;;  %7289 = vmatpush3.bf16.msra.mxu1 %v8950_v36 }
0x146a   :  { %5846 = vmatprep.subr.bf16.mxu0 %v8955_v47  ;;  %7290 = vmatprep.subr.bf16.mxu1 %v9387_v49 }
0x146d   :  { %5847 = vmatpush1.bf16.msra.mxu0 %v8958_v60  ;;  %7291 = vmatpush3.bf16.msra.mxu1 %v8960_v62 }
0x146e   :  { %5848 = vmatprep.subr.bf16.mxu0 %v8962_v11  ;;  %7292 = vmatprep.subr.bf16.mxu1 %v9387_v49  ;;  %v4916_v11 = vadd.f32 %v9099_v23, %v9019_v46 }
0x1471   :  { %5849 = vmatpush1.bf16.msra.mxu0 %v8967_v58  ;;  %7293 = vmatpush3.bf16.msra.mxu1 %v8969_v9 }
0x1472   :  { %5850 = vmatprep.subr.bf16.mxu0 %v8973_v32  ;;  %7294 = vmatprep.subr.bf16.mxu1 %v9387_v49 }
0x1475   :  { %5851 = vmatpush1.bf16.msra.mxu0 %v8977_v34  ;;  %7295 = vmatpush3.bf16.msra.mxu1 %v8979_v35 }
0x1476   :  { %5852 = vmatprep.subr.bf16.mxu0 %v8983_v18  ;;  %7296 = vmatprep.subr.bf16.mxu1 %v9387_v49 }
0x1479   :  { %5853 = vmatpush1.bf16.msra.mxu0 %v8987_v24  ;;  %7297 = vmatpush3.bf16.msra.mxu1 %v8989_v39  ;;  %v4981_v39 = vadd.f32 %v9097_v42, %v9031_v1  ;;  %v7688_v42 = vld [vmem:[#allocation12 + $0x30] sm:$0xff]  }
0x147a   :  { %5854 = vmatprep.subr.bf16.mxu0 %v8993_v54  ;;  %7298 = vmatprep.subr.bf16.mxu1 %v9387_v49 }
0x147d   :  { %5855 = vmatpush1.bf16.msra.mxu0 %v8997_v41  ;;  %7299 = vmatpush3.bf16.msra.mxu1 %v8999_v31 }
0x147e   :  { %7304 = vmatprep.subr.bf16.mxu0 %v9387_v49 }
0x1520   :  { %v5768_v52 = vpop.f32.mrf.mxu0  ;;  %v5809_v26 = vpop.f32.mrf.mxu1 }
0x1521   :  { %v5815_v28 = vadd.f32 %v5768_v52, %v4914_v25  ;;  %v5829_v18 = vadd.f32 %v9028_v63, %v5809_v26 }
0x1522   :  { %v5770_v55 = vpop.f32.mrf.mxu0  ;;  %v7282_v3 = vpop.f32.mrf.mxu1 }
0x1523   :  { %v6565_v33 = vmul.f32 -1.442695, %v5815_v28  ;;  %v5816_v58 = vadd.f32 %v5770_v55, %v4916_v11 }
0x1524   :  { %v5772_v36 = vpop.f32.mrf.mxu0  ;;  %v5812_v47 = vpop.f32.mrf.mxu1 }
0x1525   :  { %7915 = vpow2.f32 %v6565_v33  ;;  %v6566_v9 = vmul.f32 -1.442695, %v5816_v58 }
0x1526   :  { %v5773_v60 = vpop.f32.mrf.mxu0  ;;  %v7283_v62 = vpop.f32.mrf.mxu1 }
0x1527   :  { %7917 = vpow2.f32 %v6566_v9 }
0x1532   :  { %v7916_v32 = vpop.eup %7915 }
0x1533   :  { %v5823_v34 = vadd.f32 1.0, %v7916_v32 }
0x1534   :  { %v7918_v35 = vpop.eup %7917 }
0x1535   :  { %7919 = vrcp.f32 %v5823_v34  ;;  %v5824_v31 = vadd.f32 1.0, %v7918_v35 }
0x1542   :  { %v7920_v24 = vpop.eup %7919 }
0x1543   :  { %v5830_v54 = vmul.f32 %v7920_v24, %v5829_v18 }
0x1545   :  { %v5831_v41 = vadd.f32 %v5830_v54, %v4981_v39 }
0x1547   :  { %7921 = vtanh.f32 %v5831_v41 }
0x1548   :  { %7923 = vrcp.f32 %v5824_v31 }
0x1554   :  { %v7922_v59 = vpop.eup %7921 }
0x1555   :  { %v5833_v23 = vsub.f32 %v9304_v10, %v7922_v59  ;;  %v7924_v53 = vpop.eup %7923  ;;  %v4984_v10 = vadd.f32 %v9391_v20, %v9031_v1 }
0x1557   :  { %v5834_v44 = vmul.f32 %v7924_v53, %v5833_v23 }
0x1559   :  { %v5835_v61 = vadd.f32 %v7922_v59, %v5834_v44 }
0x155b   :  { %v5836_v15 = vpack.c.bf16 %v5835_v61, %v5835_v61 }
0x155d   :  { %5873 = vmatmul.mubr.bf16.vlgmr.msra.gmra.mxu0 %v5836_v15  ;;  %7301 = vmatmul.mubr.bf16.vlgmr.msra.gmra.mxu1 %v5836_v15 }
0x155e   :  { %7320 = vmatprep.mubr.msk.bf16.mxu0 %vm8078_vm0, %v9387_v49  ;;  %7305 = vmatpush3.bf16.msra.mxu0 %v7687_v13 }
0x155f   :  { %7306 = vmatprep.subr.bf16.mxu0 %v9387_v49 }
0x1562   :  { %7307 = vmatpush3.bf16.msra.mxu0 %v7688_v42 }
0x1563   :  { %7308 = vmatprep.subr.bf16.mxu0 %v9387_v49 }
0x1566   :  { %7309 = vmatpush3.bf16.msra.mxu0 %v7689_v48 }
0x1567   :  { %7310 = vmatprep.subr.bf16.mxu0 %v9387_v49 }
0x156a   :  { %7311 = vmatpush3.bf16.msra.mxu0 %v7690_v38 }
0x156b   :  { %7312 = vmatprep.subr.bf16.mxu0 %v9387_v49 }
0x156e   :  { %7313 = vmatpush3.bf16.msra.mxu0 %v7691_v14 }
0x156f   :  { %7314 = vmatprep.subr.bf16.mxu0 %v9387_v49 }
0x1572   :  { %7315 = vmatpush3.bf16.msra.mxu0 %v7692_v16 }
0x1573   :  { %7316 = vmatprep.subr.bf16.mxu0 %v9387_v49 }
0x1576   :  { %7317 = vmatpush3.bf16.msra.mxu0 %v7693_v0 }
0x1577   :  { %7318 = vmatprep.subr.bf16.mxu0 %v9387_v49 }
0x157a   :  { %7319 = vmatpush3.bf16.msra.mxu0 %v7694_v29 }
0x161d   :  { %v5874_v37 = vpop.f32.mrf.mxu0  ;;  %v5915_v57 = vpop.f32.mrf.mxu1 }
0x161e   :  { %v5921_v19 = vadd.f32 %v5874_v37, %v4918_v7  ;;  %v5935_v8 = vadd.f32 %v9028_v63, %v5915_v57  ;;  %v6569_v63 = vld [vmem:[%s9378_s6] ss:$0 sm:$0xff] }
0x161f   :  { %v5876_v51 = vpop.f32.mrf.mxu0  ;;  %v7302_v17 = vpop.f32.mrf.mxu1 }
0x1620   :  { %v6567_v22 = vmul.f32 -1.442695, %v5921_v19  ;;  %v5922_v43 = vadd.f32 %v5876_v51, %v4920_v4 }
0x1621   :  { %v5878_v6 = vpop.f32.mrf.mxu0  ;;  %v5918_v56 = vpop.f32.mrf.mxu1 }
0x1622   :  { %7925 = vpow2.f32 %v6567_v22  ;;  %v6568_v49 = vmul.f32 -1.442695, %v5922_v43 }
0x1623   :  { %v5879_v27 = vpop.f32.mrf.mxu0  ;;  %v7303_v50 = vpop.f32.mrf.mxu1 }
0x1624   :  { %7927 = vpow2.f32 %v6568_v49 }
0x162f   :  { %v7926_v12 = vpop.eup %7925 }
0x1630   :  { %v5929_v2 = vadd.f32 1.0, %v7926_v12 }
0x1631   :  { %v7928_v30 = vpop.eup %7927 }
0x1632   :  { %7929 = vrcp.f32 %v5929_v2  ;;  %v5930_v52 = vadd.f32 1.0, %v7928_v30 }
0x163f   :  { %v7930_v45 = vpop.eup %7929 }
0x1640   :  { %v5936_v21 = vmul.f32 %v7930_v45, %v5935_v8 }
0x1642   :  { %v5937_v25 = vadd.f32 %v5936_v21, %v4984_v10 }
0x1644   :  { %7931 = vtanh.f32 %v5937_v25 }
0x1645   :  { %7933 = vrcp.f32 %v5930_v52 }
0x1651   :  { %v7932_v26 = vpop.eup %7931 }
0x1652   :  { %v5939_v46 = vsub.f32 %v5835_v61, %v7932_v26  ;;  %v7934_v28 = vpop.eup %7933 }
0x1654   :  { %v5940_v55 = vmul.f32 %v7934_v28, %v5939_v46 }
0x1656   :  { %v5941_v3 = vadd.f32 %v7932_v26, %v5940_v55 }
0x1658   :  { %v5942_v33 = vpack.c.bf16 %v5941_v3, %v5941_v3 }
0x165a   :  { %7321 = vmatmul.mubr.bf16.vlgmr.msra.gmra.mxu0 %v5942_v33 }
0x171a   :  { %v6048_v36 = vpop.f32.mrf.mxu0 }
0x171b   :  { %v6049_v1 = vadd.f32 %v6569_v63, %v6048_v36 }
0x171c   :  { %v7322_v47 = vpop.f32.mrf.mxu0 }
0x171d   :  { %6054 = vst [vmem:[#allocation13] sm:$0xff] %v6049_v1 }
0x171e   :  { %v6051_v60 = vpop.f32.mrf.mxu0 }
0x171f   :  { %8048 = shalt.err (!%p8045_p1)
}
0x1720   :  { %6064 = dma.vmem_to_hbm [thread:$0]  %s6062_s17, 128, %s9379_s7, [#allocation6]   ;;  %v7323_v62 = vpop.f32.mrf.mxu0 }
0x1721   :  { %8063 = dma.done.wait [#allocation6], 128  }
0x1722   :  { %8064 = vsyncadd [#allocation6], 4294967168 }
0x1723   :  { %6068 = vsyncpa [#allocation5], 1 }
0x1724   :  { %6069 = vsyncpa [#allocation8], 1 }
0x1725   :  { %6070 = vsyncpa [#allocation11], 1 }
0x1726   :  { %6071 = vsyncpa [#allocation6], 1 }

</bundles_post_ra>
